<compile_context>
chip_gen: v7x
topology: tpu7x:2x2x1
jax: 0.10.0
libtpu: 0.0.40
codegen_flags: <defaults>
</compile_context>

<pallas_src>
import jax
import jax.numpy as jnp
from jax.experimental import pallas as pl
from jax.experimental.pallas import tpu as pltpu


_VMEM_LIMIT = 32 * 1024 * 1024
_CP_PAR = pltpu.CompilerParams(dimension_semantics=("parallel",),
                               vmem_limit_bytes=_VMEM_LIMIT)
_CP_ARB = pltpu.CompilerParams(dimension_semantics=("arbitrary",),
                               vmem_limit_bytes=_VMEM_LIMIT)


# ------------------------------- kernels -----------------------------------

def _conv_act_kernel(p_ref, w_ref, o_ref):
    """Layer 1: bf16 matmul (f32 accumulate) + LeakyReLU(0.2)."""
    y = jnp.dot(p_ref[...], w_ref[...], preferred_element_type=jnp.float32)
    o_ref[...] = jnp.where(y > 0, y, 0.2 * y).astype(o_ref.dtype)


def _conv_stats_kernel(p_ref, w_ref, y_ref, stats_ref):
    """Conv matmul + single-pass per-channel sum / sum-of-squares for BN.

    The (2, C) stats output block is revisited across the (sequential,
    "arbitrary") M grid axis and accumulated in f32.
    """
    @pl.when(pl.program_id(0) == 0)
    def _init():
        stats_ref[...] = jnp.zeros_like(stats_ref)

    y = jnp.dot(p_ref[...], w_ref[...], preferred_element_type=jnp.float32)
    y_ref[...] = y.astype(y_ref.dtype)
    s = jnp.sum(y, axis=0, keepdims=True)
    ss = jnp.sum(y * y, axis=0, keepdims=True)
    stats_ref[...] += jnp.concatenate([s, ss], axis=0)


def _bn_act_kernel(y_ref, scale_ref, shift_ref, o_ref):
    """Apply folded BN (y*scale + shift, one FMA) + LeakyReLU(0.2)."""
    a = y_ref[...].astype(jnp.float32) * scale_ref[...] + shift_ref[...]
    o_ref[...] = jnp.where(a > 0, a, 0.2 * a).astype(o_ref.dtype)


def _final_kernel(y_ref, scale_ref, shift_ref, w_ref, o_ref):
    """Fused: BN3 apply + LeakyReLU + full-spatial conv (lane-padded Cout) + sigmoid."""
    a = y_ref[...].astype(jnp.float32) * scale_ref[...] + shift_ref[...]
    a = jnp.where(a > 0, a, 0.2 * a)
    z = jnp.dot(a.astype(jnp.bfloat16), w_ref[...],
                preferred_element_type=jnp.float32)
    # numerically stable sigmoid: exp on the EUP + approximate reciprocal (EUP)
    e = jnp.exp(-jnp.abs(z))
    s = pl.reciprocal(1.0 + e, approx=True)
    o_ref[...] = jnp.where(z >= 0, s, 1.0 - s)


# --------------------------- pallas_call wrappers ---------------------------

def _row_tile(m, target=512):
    """Largest multiple-of-8 divisor of m that is <= target (else full m)."""
    if m <= target or m % 8 != 0:
        return m
    best = 8
    c = 8
    while c <= target:
        if m % c == 0:
            best = c
        c += 8
    return best


def _conv_act(p, w, tm):
    m, k = p.shape
    c = w.shape[1]
    return pl.pallas_call(
        _conv_act_kernel,
        grid=(m // tm,),
        in_specs=[pl.BlockSpec((tm, k), lambda i: (i, 0)),
                  pl.BlockSpec((k, c), lambda i: (0, 0))],
        out_specs=pl.BlockSpec((tm, c), lambda i: (i, 0)),
        out_shape=jax.ShapeDtypeStruct((m, c), jnp.bfloat16),
        compiler_params=_CP_PAR,
    )(p, w)


def _conv_stats(p, w, tm):
    m, k = p.shape
    c = w.shape[1]
    return pl.pallas_call(
        _conv_stats_kernel,
        grid=(m // tm,),
        in_specs=[pl.BlockSpec((tm, k), lambda i: (i, 0)),
                  pl.BlockSpec((k, c), lambda i: (0, 0))],
        out_specs=(pl.BlockSpec((tm, c), lambda i: (i, 0)),
                   pl.BlockSpec((2, c), lambda i: (0, 0))),
        out_shape=(jax.ShapeDtypeStruct((m, c), jnp.bfloat16),
                   jax.ShapeDtypeStruct((2, c), jnp.float32)),
        compiler_params=_CP_ARB,   # stats output is revisited across M
    )(p, w)


def _bn_act(y, scale, shift, tm):
    m, c = y.shape
    return pl.pallas_call(
        _bn_act_kernel,
        grid=(m // tm,),
        in_specs=[pl.BlockSpec((tm, c), lambda i: (i, 0)),
                  pl.BlockSpec((1, c), lambda i: (0, 0)),
                  pl.BlockSpec((1, c), lambda i: (0, 0))],
        out_specs=pl.BlockSpec((tm, c), lambda i: (i, 0)),
        out_shape=jax.ShapeDtypeStruct((m, c), jnp.bfloat16),
        compiler_params=_CP_PAR,
    )(y, scale, shift)


def _final(y_flat, scale_k, shift_k, w_pad, ts):
    n, k = y_flat.shape
    cpad = w_pad.shape[1]
    return pl.pallas_call(
        _final_kernel,
        grid=(n // ts,),
        in_specs=[pl.BlockSpec((ts, k), lambda i: (i, 0)),
                  pl.BlockSpec((1, k), lambda i: (0, 0)),
                  pl.BlockSpec((1, k), lambda i: (0, 0)),
                  pl.BlockSpec((k, cpad), lambda i: (0, 0))],
        out_specs=pl.BlockSpec((ts, cpad), lambda i: (i, 0)),
        out_shape=jax.ShapeDtypeStruct((n, cpad), jnp.float32),
        compiler_params=_CP_PAR,
    )(y_flat, scale_k, shift_k, w_pad)


# ------------------------------- glue (JAX) ---------------------------------

def _im2col(x_nhwc, kh, kw, stride, pad):
    """Patches [N*Ho*Wo, kh*kw*C] (patch-position major, channel minor)."""
    n, h, w, c = x_nhwc.shape
    if pad:
        x_nhwc = jnp.pad(x_nhwc, ((0, 0), (pad, pad), (pad, pad), (0, 0)))
    ho = (h + 2 * pad - kh) // stride + 1
    wo = (w + 2 * pad - kw) // stride + 1
    cols = []
    for i in range(kh):
        for j in range(kw):
            cols.append(x_nhwc[:, i:i + stride * ho:stride,
                               j:j + stride * wo:stride, :])
    p = jnp.stack(cols, axis=3)                       # [N, Ho, Wo, kh*kw, C]
    return p.reshape(n * ho * wo, kh * kw * c), ho, wo


def _w_to_mat(w_oihw):
    """[Cout, Cin, kh, kw] -> [kh*kw*Cin, Cout] matching the patch K layout."""
    cout, cin, kh, kw = w_oihw.shape
    return jnp.transpose(w_oihw, (2, 3, 1, 0)).reshape(kh * kw * cin, cout)


def _fold_bn(stats, m, gamma, beta, eps=1e-5):
    """Fold training-mode batch stats into a single per-channel scale/shift."""
    mean = stats[0] / m
    var = jnp.maximum(stats[1] / m - mean * mean, 0.0)    # biased batch var
    scale = gamma * jax.lax.rsqrt(var + eps)
    shift = beta - mean * scale
    return (scale[None, :].astype(jnp.float32),
            shift[None, :].astype(jnp.float32))


class NetDPallas:
    """Forward pass of _netD(ngpu, nc, ndf) on a single TPU core."""

    def __init__(self, nc, ndf, key):
        k1, k2, k3, k4, k5, k6 = jax.random.split(key, 6)
        self.nc = nc
        self.c1, self.c2, self.c3 = ndf * 2, ndf * 4, ndf * 8
        self.last_k = 4 if nc == 3 else 3

        def conv_w(k, cout, cin, ks):
            # DCGAN-style deterministic init: N(0, 0.02)
            return 0.02 * jax.random.normal(k, (cout, cin, ks, ks), jnp.float32)

        w1 = conv_w(k1, self.c1, nc, 4)
        w2 = conv_w(k2, self.c2, self.c1, 4)
        w3 = conv_w(k3, self.c3, self.c2, 4)
        w4 = conv_w(k4, 1, self.c3, self.last_k)

        # Lane-align layer-1 K (= 16*nc, e.g. 48) up to a multiple of 128.
        k1_raw = 4 * 4 * nc
        self.k1_pad = ((k1_raw + 127) // 128) * 128
        w1m = jnp.pad(_w_to_mat(w1), ((0, self.k1_pad - k1_raw), (0, 0)))
        self.w1m = w1m.astype(jnp.bfloat16)
        self.w2m = _w_to_mat(w2).astype(jnp.bfloat16)
        self.w3m = _w_to_mat(w3).astype(jnp.bfloat16)
        # Final conv: pad Cout 1 -> 128 so the output store is lane-dense.
        self.w4m = jnp.pad(_w_to_mat(w4), ((0, 0), (0, 127))).astype(jnp.bfloat16)

        self.g2 = 1.0 + 0.02 * jax.random.normal(k5, (self.c2,), jnp.float32)
        self.b2 = jnp.zeros((self.c2,), jnp.float32)
        self.g3 = 1.0 + 0.02 * jax.random.normal(k6, (self.c3,), jnp.float32)
        self.b3 = jnp.zeros((self.c3,), jnp.float32)

    def __call__(self, x_nchw):
        n = x_nchw.shape[0]
        x = jnp.transpose(x_nchw, (0, 2, 3, 1)).astype(jnp.bfloat16)   # NHWC

        # --- layer 1: Conv(nc -> 2ndf, 4, 2, 1) + LeakyReLU ----------------
        p, ho, wo = _im2col(x, 4, 4, 2, 1)
        p = jnp.pad(p, ((0, 0), (0, self.k1_pad - p.shape[1])))
        a1 = _conv_act(p, self.w1m, _row_tile(p.shape[0]))
        a1 = a1.reshape(n, ho, wo, self.c1)

        # --- layer 2: Conv(2ndf -> 4ndf, 4, 2, 1) + BN + LeakyReLU ---------
        # Two-phase BN: matmul+stats kernel, then cheap fold+apply kernel,
        # so batch statistics stay exact under M tiling.
        p, ho, wo = _im2col(a1, 4, 4, 2, 1)
        y2, st2 = _conv_stats(p, self.w2m, _row_tile(p.shape[0]))
        sc2, sh2 = _fold_bn(st2, float(y2.shape[0]), self.g2, self.b2)
        a2 = _bn_act(y2, sc2, sh2, _row_tile(y2.shape[0]))
        a2 = a2.reshape(n, ho, wo, self.c2)

        # --- layer 3: Conv(4ndf -> 8ndf, 4, 2, 1) + BN stats ---------------
        # (BN apply + LeakyReLU are fused into the final kernel.)
        p, ho, wo = _im2col(a2, 4, 4, 2, 1)
        y3, st3 = _conv_stats(p, self.w3m, _row_tile(p.shape[0]))
        sc3, sh3 = _fold_bn(st3, float(y3.shape[0]), self.g3, self.b3)

        # --- layer 4 (fused): BN3 apply + LeakyReLU + Conv(8ndf -> 1,
        #     last_k, 1, 0) + Sigmoid.  The last conv covers the whole
        #     remaining spatial extent, so its im2col is a free reshape.
        assert ho == self.last_k and wo == self.last_k, (ho, wo, self.last_k)
        y3_flat = y3.reshape(n, ho * wo * self.c3)
        sc3k = jnp.tile(sc3, (1, ho * wo))          # per-K folded scale/shift
        sh3k = jnp.tile(sh3, (1, ho * wo))
        out = _final(y3_flat, sc3k, sh3k, self.w4m, _row_tile(n, target=64))
        return out[:, :1]                            # .view(-1, 1)


# ---------------------------------- main -------------------------------------

if __name__ == "__main__":
    key = jax.random.PRNGKey(0)
    k_param, k_input = jax.random.split(key)

    nc, ndf = 3, 4            # structurally faithful (nc==3 -> 4x4 last conv)
    batch, spatial = 16, 32   # 32 -> 16 -> 8 -> 4 -> 1

    model = NetDPallas(nc, ndf, k_param)
    x = jax.random.normal(k_input, (batch, nc, spatial, spatial), jnp.float32)

    out = jax.jit(model.__call__)(x)
    out = jax.block_until_ready(out)
    assert out.shape == (batch, 1), out.shape
    assert bool(jnp.all(jnp.isfinite(out)))
    print("KERNEL_OK")
</pallas_src>

<mosaic_0001>
module attributes {stable_mosaic.version = 11 : i64} {
  func.func @_conv_act_kernel(%arg0: i32, %arg1: memref<512x128xbf16, #tpu.memory_space<vmem>>, %arg2: memref<128x8xbf16, #tpu.memory_space<vmem>>, %arg3: memref<512x8xbf16, #tpu.memory_space<vmem>>) attributes {dimension_semantics = [#tpu.dimension_semantics<parallel>], iteration_bounds = array<i64: 8>, scalar_prefetch = 0 : i64, scratch_operands = 0 : i64, tpu.core_type = #tpu.core_type<tc>, window_params = [{transform_indices = @transform_0, window_bounds = array<i64: 512, 128>}, {pipeline_mode = #tpu.pipeline_mode<synchronous>, transform_indices = @transform_1, window_bounds = array<i64: 128, 8>}, {transform_indices = @transform_2, window_bounds = array<i64: 512, 8>}]} {
    %c0 = arith.constant 0 : index
    %c0_0 = arith.constant 0 : index
    %0 = vector.load %arg1[%c0, %c0_0] : memref<512x128xbf16, #tpu.memory_space<vmem>>, vector<512x128xbf16>
    %c0_1 = arith.constant 0 : index
    %c0_2 = arith.constant 0 : index
    %1 = vector.load %arg2[%c0_1, %c0_2] : memref<128x8xbf16, #tpu.memory_space<vmem>>, vector<128x8xbf16>
    %cst = arith.constant dense<0.000000e+00> : vector<512x8xf32>
    %2 = tpu.matmul %0, %1, %cst {dimension_numbers = #tpu.dot_dimension_numbers<[1], [0], [0], [1], [0, 0, 1, 1], [], []>} : vector<512x128xbf16>, vector<128x8xbf16>, vector<512x8xf32> -> vector<512x8xf32>
    %cst_3 = arith.constant 0.000000e+00 : f32
    %3 = vector.broadcast %cst_3 : f32 to vector<512x8xf32>
    %4 = arith.cmpf ogt, %2, %3 : vector<512x8xf32>
    %cst_4 = arith.constant 2.000000e-01 : f32
    %5 = vector.broadcast %cst_4 : f32 to vector<512x8xf32>
    %6 = arith.mulf %5, %2 : vector<512x8xf32>
    %7 = arith.select %4, %2, %6 : vector<512x8xi1>, vector<512x8xf32>
    %8 = arith.truncf %7 : vector<512x8xf32> to vector<512x8xbf16>
    %c0_5 = arith.constant 0 : index
    %c0_6 = arith.constant 0 : index
    %9 = vector.load %arg3[%c0_5, %c0_6] : memref<512x8xbf16, #tpu.memory_space<vmem>>, vector<512x8xbf16>
    tpu.vector_store %arg3[%c0_5, %c0_6], %8 {strides = array<i32>} : memref<512x8xbf16, #tpu.memory_space<vmem>>, vector<512x8xbf16>,
    return
  }
  func.func @transform_0(%arg0: i32) -> (i32, i32) {
    %c0_i32 = arith.constant 0 : i32
    %c0_i32_0 = arith.constant 0 : i32
    return %arg0, %c0_i32 : i32, i32
  }
  func.func @transform_1(%arg0: i32) -> (i32, i32) {
    %c0_i32 = arith.constant 0 : i32
    %c0_i32_0 = arith.constant 0 : i32
    %c0_i32_1 = arith.constant 0 : i32
    return %c0_i32, %c0_i32_0 : i32, i32
  }
  func.func @transform_2(%arg0: i32) -> (i32, i32) {
    %c0_i32 = arith.constant 0 : i32
    %c0_i32_0 = arith.constant 0 : i32
    return %arg0, %c0_i32 : i32, i32
  }
}

module attributes {stable_mosaic.version = 11 : i64} {
  func.func @_conv_stats_kernel(%arg0: i32, %arg1: memref<512x128xbf16, #tpu.memory_space<vmem>>, %arg2: memref<128x16xbf16, #tpu.memory_space<vmem>>, %arg3: memref<512x16xbf16, #tpu.memory_space<vmem>>, %arg4: memref<2x16xf32, #tpu.memory_space<vmem>>) attributes {dimension_semantics = [#tpu.dimension_semantics<arbitrary>], iteration_bounds = array<i64: 2>, scalar_prefetch = 0 : i64, scratch_operands = 0 : i64, tpu.core_type = #tpu.core_type<tc>, window_params = [{transform_indices = @transform_0, window_bounds = array<i64: 512, 128>}, {pipeline_mode = #tpu.pipeline_mode<synchronous>, transform_indices = @transform_1, window_bounds = array<i64: 128, 16>}, {transform_indices = @transform_2, window_bounds = array<i64: 512, 16>}, {pipeline_mode = #tpu.pipeline_mode<synchronous>, transform_indices = @transform_3, window_bounds = array<i64: 2, 16>}]} {
    %c0_i32 = arith.constant 0 : i32
    %0 = arith.cmpi eq, %arg0, %c0_i32 : i32
    %1 = arith.extui %0 : i1 to i32
    %c0_i32_0 = arith.constant 0 : i32
    %2 = arith.cmpi ne, %1, %c0_i32_0 : i32
    scf.if %2 {
      %cst_12 = arith.constant 0.000000e+00 : f32
      %17 = vector.broadcast %cst_12 : f32 to vector<2x16xf32>
      %c0_13 = arith.constant 0 : index
      %c0_14 = arith.constant 0 : index
      %18 = vector.load %arg4[%c0_13, %c0_14] : memref<2x16xf32, #tpu.memory_space<vmem>>, vector<2x16xf32>
      tpu.vector_store %arg4[%c0_13, %c0_14], %17 {strides = array<i32>} : memref<2x16xf32, #tpu.memory_space<vmem>>, vector<2x16xf32>,
    } else {
    }
    %c0 = arith.constant 0 : index
    %c0_1 = arith.constant 0 : index
    %3 = vector.load %arg1[%c0, %c0_1] : memref<512x128xbf16, #tpu.memory_space<vmem>>, vector<512x128xbf16>
    %c0_2 = arith.constant 0 : index
    %c0_3 = arith.constant 0 : index
    %4 = vector.load %arg2[%c0_2, %c0_3] : memref<128x16xbf16, #tpu.memory_space<vmem>>, vector<128x16xbf16>
    %cst = arith.constant dense<0.000000e+00> : vector<512x16xf32>
    %5 = tpu.matmul %3, %4, %cst {dimension_numbers = #tpu.dot_dimension_numbers<[1], [0], [0], [1], [0, 0, 1, 1], [], []>} : vector<512x128xbf16>, vector<128x16xbf16>, vector<512x16xf32> -> vector<512x16xf32>
    %6 = arith.truncf %5 : vector<512x16xf32> to vector<512x16xbf16>
    %c0_4 = arith.constant 0 : index
    %c0_5 = arith.constant 0 : index
    %7 = vector.load %arg3[%c0_4, %c0_5] : memref<512x16xbf16, #tpu.memory_space<vmem>>, vector<512x16xbf16>
    tpu.vector_store %arg3[%c0_4, %c0_5], %6 {strides = array<i32>} : memref<512x16xbf16, #tpu.memory_space<vmem>>, vector<512x16xbf16>,
    %cst_6 = arith.constant dense<0.000000e+00> : vector<16xf32>
    %8 = vector.multi_reduction <add>, %5, %cst_6 [0] : vector<512x16xf32> to vector<16xf32>
    %9 = vector.shape_cast %8 : vector<16xf32> to vector<1x16xf32>
    %10 = arith.mulf %5, %5 : vector<512x16xf32>
    %cst_7 = arith.constant dense<0.000000e+00> : vector<16xf32>
    %11 = vector.multi_reduction <add>, %10, %cst_7 [0] : vector<512x16xf32> to vector<16xf32>
    %12 = vector.shape_cast %11 : vector<16xf32> to vector<1x16xf32>
    %c0_8 = arith.constant 0 : index
    %c0_9 = arith.constant 0 : index
    %13 = vector.load %arg4[%c0_8, %c0_9] : memref<2x16xf32, #tpu.memory_space<vmem>>, vector<2x16xf32>
    %14 = tpu.concatenate %9, %12 in 0 : vector<1x16xf32>, vector<1x16xf32> -> vector<2x16xf32>
    %15 = arith.addf %13, %14 : vector<2x16xf32>
    %c0_10 = arith.constant 0 : index
    %c0_11 = arith.constant 0 : index
    %16 = vector.load %arg4[%c0_10, %c0_11] : memref<2x16xf32, #tpu.memory_space<vmem>>, vector<2x16xf32>
    tpu.vector_store %arg4[%c0_10, %c0_11], %15 {strides = array<i32>} : memref<2x16xf32, #tpu.memory_space<vmem>>, vector<2x16xf32>,
    return
  }
  func.func @transform_0(%arg0: i32) -> (i32, i32) {
    %c0_i32 = arith.constant 0 : i32
    %c0_i32_0 = arith.constant 0 : i32
    return %arg0, %c0_i32 : i32, i32
  }
  func.func @transform_1(%arg0: i32) -> (i32, i32) {
    %c0_i32 = arith.constant 0 : i32
    %c0_i32_0 = arith.constant 0 : i32
    %c0_i32_1 = arith.constant 0 : i32
    return %c0_i32, %c0_i32_0 : i32, i32
  }
  func.func @transform_2(%arg0: i32) -> (i32, i32) {
    %c0_i32 = arith.constant 0 : i32
    %c0_i32_0 = arith.constant 0 : i32
    return %arg0, %c0_i32 : i32, i32
  }
  func.func @transform_3(%arg0: i32) -> (i32, i32) {
    %c0_i32 = arith.constant 0 : i32
    %c0_i32_0 = arith.constant 0 : i32
    %c0_i32_1 = arith.constant 0 : i32
    return %c0_i32, %c0_i32_0 : i32, i32
  }
}

module attributes {stable_mosaic.version = 11 : i64} {
  func.func @_bn_act_kernel(%arg0: i32, %arg1: memref<512x16xbf16, #tpu.memory_space<vmem>>, %arg2: memref<1x16xf32, #tpu.memory_space<vmem>>, %arg3: memref<1x16xf32, #tpu.memory_space<vmem>>, %arg4: memref<512x16xbf16, #tpu.memory_space<vmem>>) attributes {dimension_semantics = [#tpu.dimension_semantics<parallel>], iteration_bounds = array<i64: 2>, scalar_prefetch = 0 : i64, scratch_operands = 0 : i64, tpu.core_type = #tpu.core_type<tc>, window_params = [{transform_indices = @transform_0, window_bounds = array<i64: 512, 16>}, {pipeline_mode = #tpu.pipeline_mode<synchronous>, transform_indices = @transform_1, window_bounds = array<i64: 1, 16>}, {pipeline_mode = #tpu.pipeline_mode<synchronous>, transform_indices = @transform_2, window_bounds = array<i64: 1, 16>}, {transform_indices = @transform_3, window_bounds = array<i64: 512, 16>}]} {
    %c0 = arith.constant 0 : index
    %c0_0 = arith.constant 0 : index
    %0 = vector.load %arg1[%c0, %c0_0] : memref<512x16xbf16, #tpu.memory_space<vmem>>, vector<512x16xbf16>
    %1 = arith.extf %0 : vector<512x16xbf16> to vector<512x16xf32>
    %c0_1 = arith.constant 0 : index
    %c0_2 = arith.constant 0 : index
    %2 = vector.load %arg2[%c0_1, %c0_2] : memref<1x16xf32, #tpu.memory_space<vmem>>, vector<1x16xf32>
    %3 = vector.broadcast %2 : vector<1x16xf32> to vector<512x16xf32>
    %4 = arith.mulf %1, %3 : vector<512x16xf32>
    %c0_3 = arith.constant 0 : index
    %c0_4 = arith.constant 0 : index
    %5 = vector.load %arg3[%c0_3, %c0_4] : memref<1x16xf32, #tpu.memory_space<vmem>>, vector<1x16xf32>
    %6 = vector.broadcast %5 : vector<1x16xf32> to vector<512x16xf32>
    %7 = arith.addf %4, %6 : vector<512x16xf32>
    %cst = arith.constant 0.000000e+00 : f32
    %8 = vector.broadcast %cst : f32 to vector<512x16xf32>
    %9 = arith.cmpf ogt, %7, %8 : vector<512x16xf32>
    %cst_5 = arith.constant 2.000000e-01 : f32
    %10 = vector.broadcast %cst_5 : f32 to vector<512x16xf32>
    %11 = arith.mulf %10, %7 : vector<512x16xf32>
    %12 = arith.select %9, %7, %11 : vector<512x16xi1>, vector<512x16xf32>
    %13 = arith.truncf %12 : vector<512x16xf32> to vector<512x16xbf16>
    %c0_6 = arith.constant 0 : index
    %c0_7 = arith.constant 0 : index
    %14 = vector.load %arg4[%c0_6, %c0_7] : memref<512x16xbf16, #tpu.memory_space<vmem>>, vector<512x16xbf16>
    tpu.vector_store %arg4[%c0_6, %c0_7], %13 {strides = array<i32>} : memref<512x16xbf16, #tpu.memory_space<vmem>>, vector<512x16xbf16>,
    return
  }
  func.func @transform_0(%arg0: i32) -> (i32, i32) {
    %c0_i32 = arith.constant 0 : i32
    %c0_i32_0 = arith.constant 0 : i32
    return %arg0, %c0_i32 : i32, i32
  }
  func.func @transform_1(%arg0: i32) -> (i32, i32) {
    %c0_i32 = arith.constant 0 : i32
    %c0_i32_0 = arith.constant 0 : i32
    %c0_i32_1 = arith.constant 0 : i32
    return %c0_i32, %c0_i32_0 : i32, i32
  }
  func.func @transform_2(%arg0: i32) -> (i32, i32) {
    %c0_i32 = arith.constant 0 : i32
    %c0_i32_0 = arith.constant 0 : i32
    %c0_i32_1 = arith.constant 0 : i32
    return %c0_i32, %c0_i32_0 : i32, i32
  }
  func.func @transform_3(%arg0: i32) -> (i32, i32) {
    %c0_i32 = arith.constant 0 : i32
    %c0_i32_0 = arith.constant 0 : i32
    return %arg0, %c0_i32 : i32, i32
  }
}

module attributes {stable_mosaic.version = 11 : i64} {
  func.func @_conv_stats_kernel(%arg0: i32, %arg1: memref<256x256xbf16, #tpu.memory_space<vmem>>, %arg2: memref<256x32xbf16, #tpu.memory_space<vmem>>, %arg3: memref<256x32xbf16, #tpu.memory_space<vmem>>, %arg4: memref<2x32xf32, #tpu.memory_space<vmem>>) attributes {dimension_semantics = [#tpu.dimension_semantics<arbitrary>], iteration_bounds = array<i64: 1>, scalar_prefetch = 0 : i64, scratch_operands = 0 : i64, tpu.core_type = #tpu.core_type<tc>, window_params = [{transform_indices = @transform_0, window_bounds = array<i64: 256, 256>}, {pipeline_mode = #tpu.pipeline_mode<synchronous>, transform_indices = @transform_1, window_bounds = array<i64: 256, 32>}, {transform_indices = @transform_2, window_bounds = array<i64: 256, 32>}, {pipeline_mode = #tpu.pipeline_mode<synchronous>, transform_indices = @transform_3, window_bounds = array<i64: 2, 32>}]} {
    %c0_i32 = arith.constant 0 : i32
    %0 = arith.cmpi eq, %arg0, %c0_i32 : i32
    %1 = arith.extui %0 : i1 to i32
    %c0_i32_0 = arith.constant 0 : i32
    %2 = arith.cmpi ne, %1, %c0_i32_0 : i32
    scf.if %2 {
      %cst_12 = arith.constant 0.000000e+00 : f32
      %17 = vector.broadcast %cst_12 : f32 to vector<2x32xf32>
      %c0_13 = arith.constant 0 : index
      %c0_14 = arith.constant 0 : index
      %18 = vector.load %arg4[%c0_13, %c0_14] : memref<2x32xf32, #tpu.memory_space<vmem>>, vector<2x32xf32>
      tpu.vector_store %arg4[%c0_13, %c0_14], %17 {strides = array<i32>} : memref<2x32xf32, #tpu.memory_space<vmem>>, vector<2x32xf32>,
    } else {
    }
    %c0 = arith.constant 0 : index
    %c0_1 = arith.constant 0 : index
    %3 = vector.load %arg1[%c0, %c0_1] : memref<256x256xbf16, #tpu.memory_space<vmem>>, vector<256x256xbf16>
    %c0_2 = arith.constant 0 : index
    %c0_3 = arith.constant 0 : index
    %4 = vector.load %arg2[%c0_2, %c0_3] : memref<256x32xbf16, #tpu.memory_space<vmem>>, vector<256x32xbf16>
    %cst = arith.constant dense<0.000000e+00> : vector<256x32xf32>
    %5 = tpu.matmul %3, %4, %cst {dimension_numbers = #tpu.dot_dimension_numbers<[1], [0], [0], [1], [0, 0, 1, 1], [], []>} : vector<256x256xbf16>, vector<256x32xbf16>, vector<256x32xf32> -> vector<256x32xf32>
    %6 = arith.truncf %5 : vector<256x32xf32> to vector<256x32xbf16>
    %c0_4 = arith.constant 0 : index
    %c0_5 = arith.constant 0 : index
    %7 = vector.load %arg3[%c0_4, %c0_5] : memref<256x32xbf16, #tpu.memory_space<vmem>>, vector<256x32xbf16>
    tpu.vector_store %arg3[%c0_4, %c0_5], %6 {strides = array<i32>} : memref<256x32xbf16, #tpu.memory_space<vmem>>, vector<256x32xbf16>,
    %cst_6 = arith.constant dense<0.000000e+00> : vector<32xf32>
    %8 = vector.multi_reduction <add>, %5, %cst_6 [0] : vector<256x32xf32> to vector<32xf32>
    %9 = vector.shape_cast %8 : vector<32xf32> to vector<1x32xf32>
    %10 = arith.mulf %5, %5 : vector<256x32xf32>
    %cst_7 = arith.constant dense<0.000000e+00> : vector<32xf32>
    %11 = vector.multi_reduction <add>, %10, %cst_7 [0] : vector<256x32xf32> to vector<32xf32>
    %12 = vector.shape_cast %11 : vector<32xf32> to vector<1x32xf32>
    %c0_8 = arith.constant 0 : index
    %c0_9 = arith.constant 0 : index
    %13 = vector.load %arg4[%c0_8, %c0_9] : memref<2x32xf32, #tpu.memory_space<vmem>>, vector<2x32xf32>
    %14 = tpu.concatenate %9, %12 in 0 : vector<1x32xf32>, vector<1x32xf32> -> vector<2x32xf32>
    %15 = arith.addf %13, %14 : vector<2x32xf32>
    %c0_10 = arith.constant 0 : index
    %c0_11 = arith.constant 0 : index
    %16 = vector.load %arg4[%c0_10, %c0_11] : memref<2x32xf32, #tpu.memory_space<vmem>>, vector<2x32xf32>
    tpu.vector_store %arg4[%c0_10, %c0_11], %15 {strides = array<i32>} : memref<2x32xf32, #tpu.memory_space<vmem>>, vector<2x32xf32>,
    return
  }
  func.func @transform_0(%arg0: i32) -> (i32, i32) {
    %c0_i32 = arith.constant 0 : i32
    %c0_i32_0 = arith.constant 0 : i32
    return %arg0, %c0_i32 : i32, i32
  }
  func.func @transform_1(%arg0: i32) -> (i32, i32) {
    %c0_i32 = arith.constant 0 : i32
    %c0_i32_0 = arith.constant 0 : i32
    %c0_i32_1 = arith.constant 0 : i32
    return %c0_i32, %c0_i32_0 : i32, i32
  }
  func.func @transform_2(%arg0: i32) -> (i32, i32) {
    %c0_i32 = arith.constant 0 : i32
    %c0_i32_0 = arith.constant 0 : i32
    return %arg0, %c0_i32 : i32, i32
  }
  func.func @transform_3(%arg0: i32) -> (i32, i32) {
    %c0_i32 = arith.constant 0 : i32
    %c0_i32_0 = arith.constant 0 : i32
    %c0_i32_1 = arith.constant 0 : i32
    return %c0_i32, %c0_i32_0 : i32, i32
  }
}

module attributes {stable_mosaic.version = 11 : i64} {
  func.func @_final_kernel(%arg0: i32, %arg1: memref<16x512xbf16, #tpu.memory_space<vmem>>, %arg2: memref<1x512xf32, #tpu.memory_space<vmem>>, %arg3: memref<1x512xf32, #tpu.memory_space<vmem>>, %arg4: memref<512x128xbf16, #tpu.memory_space<vmem>>, %arg5: memref<16x128xf32, #tpu.memory_space<vmem>>) attributes {dimension_semantics = [#tpu.dimension_semantics<parallel>], iteration_bounds = array<i64: 1>, scalar_prefetch = 0 : i64, scratch_operands = 0 : i64, tpu.core_type = #tpu.core_type<tc>, window_params = [{transform_indices = @transform_0, window_bounds = array<i64: 16, 512>}, {pipeline_mode = #tpu.pipeline_mode<synchronous>, transform_indices = @transform_1, window_bounds = array<i64: 1, 512>}, {pipeline_mode = #tpu.pipeline_mode<synchronous>, transform_indices = @transform_2, window_bounds = array<i64: 1, 512>}, {pipeline_mode = #tpu.pipeline_mode<synchronous>, transform_indices = @transform_3, window_bounds = array<i64: 512, 128>}, {transform_indices = @transform_4, window_bounds = array<i64: 16, 128>}]} {
    %c0 = arith.constant 0 : index
    %c0_0 = arith.constant 0 : index
    %0 = vector.load %arg1[%c0, %c0_0] : memref<16x512xbf16, #tpu.memory_space<vmem>>, vector<16x512xbf16>
    %1 = arith.extf %0 : vector<16x512xbf16> to vector<16x512xf32>
    %c0_1 = arith.constant 0 : index
    %c0_2 = arith.constant 0 : index
    %2 = vector.load %arg2[%c0_1, %c0_2] : memref<1x512xf32, #tpu.memory_space<vmem>>, vector<1x512xf32>
    %3 = vector.broadcast %2 : vector<1x512xf32> to vector<16x512xf32>
    %4 = arith.mulf %1, %3 : vector<16x512xf32>
    %c0_3 = arith.constant 0 : index
    %c0_4 = arith.constant 0 : index
    %5 = vector.load %arg3[%c0_3, %c0_4] : memref<1x512xf32, #tpu.memory_space<vmem>>, vector<1x512xf32>
    %6 = vector.broadcast %5 : vector<1x512xf32> to vector<16x512xf32>
    %7 = arith.addf %4, %6 : vector<16x512xf32>
    %cst = arith.constant 0.000000e+00 : f32
    %8 = vector.broadcast %cst : f32 to vector<16x512xf32>
    %9 = arith.cmpf ogt, %7, %8 : vector<16x512xf32>
    %cst_5 = arith.constant 2.000000e-01 : f32
    %10 = vector.broadcast %cst_5 : f32 to vector<16x512xf32>
    %11 = arith.mulf %10, %7 : vector<16x512xf32>
    %12 = arith.select %9, %7, %11 : vector<16x512xi1>, vector<16x512xf32>
    %13 = arith.truncf %12 : vector<16x512xf32> to vector<16x512xbf16>
    %c0_6 = arith.constant 0 : index
    %c0_7 = arith.constant 0 : index
    %14 = vector.load %arg4[%c0_6, %c0_7] : memref<512x128xbf16, #tpu.memory_space<vmem>>, vector<512x128xbf16>
    %cst_8 = arith.constant dense<0.000000e+00> : vector<16x128xf32>
    %15 = tpu.matmul %13, %14, %cst_8 {dimension_numbers = #tpu.dot_dimension_numbers<[1], [0], [0], [1], [0, 0, 1, 1], [], []>} : vector<16x512xbf16>, vector<512x128xbf16>, vector<16x128xf32> -> vector<16x128xf32>
    %16 = math.absf %15 : vector<16x128xf32>
    %cst_9 = arith.constant 0.000000e+00 : f32
    %17 = vector.broadcast %cst_9 : f32 to vector<16x128xf32>
    %18 = arith.subf %17, %16 : vector<16x128xf32>
    %19 = math.exp %18 : vector<16x128xf32>
    %cst_10 = arith.constant 1.000000e+00 : f32
    %20 = vector.broadcast %cst_10 : f32 to vector<16x128xf32>
    %21 = arith.addf %20, %19 : vector<16x128xf32>
    %22 = tpu.reciprocal %21 {approx = true} : vector<16x128xf32> -> vector<16x128xf32>
    %cst_11 = arith.constant 0.000000e+00 : f32
    %23 = vector.broadcast %cst_11 : f32 to vector<16x128xf32>
    %24 = arith.cmpf oge, %15, %23 : vector<16x128xf32>
    %cst_12 = arith.constant 1.000000e+00 : f32
    %25 = vector.broadcast %cst_12 : f32 to vector<16x128xf32>
    %26 = arith.subf %25, %22 : vector<16x128xf32>
    %27 = arith.select %24, %22, %26 : vector<16x128xi1>, vector<16x128xf32>
    %c0_13 = arith.constant 0 : index
    %c0_14 = arith.constant 0 : index
    %28 = vector.load %arg5[%c0_13, %c0_14] : memref<16x128xf32, #tpu.memory_space<vmem>>, vector<16x128xf32>
    tpu.vector_store %arg5[%c0_13, %c0_14], %27 {strides = array<i32>} : memref<16x128xf32, #tpu.memory_space<vmem>>, vector<16x128xf32>,
    return
  }
  func.func @transform_0(%arg0: i32) -> (i32, i32) {
    %c0_i32 = arith.constant 0 : i32
    %c0_i32_0 = arith.constant 0 : i32
    return %arg0, %c0_i32 : i32, i32
  }
  func.func @transform_1(%arg0: i32) -> (i32, i32) {
    %c0_i32 = arith.constant 0 : i32
    %c0_i32_0 = arith.constant 0 : i32
    %c0_i32_1 = arith.constant 0 : i32
    return %c0_i32, %c0_i32_0 : i32, i32
  }
  func.func @transform_2(%arg0: i32) -> (i32, i32) {
    %c0_i32 = arith.constant 0 : i32
    %c0_i32_0 = arith.constant 0 : i32
    %c0_i32_1 = arith.constant 0 : i32
    return %c0_i32, %c0_i32_0 : i32, i32
  }
  func.func @transform_3(%arg0: i32) -> (i32, i32) {
    %c0_i32 = arith.constant 0 : i32
    %c0_i32_0 = arith.constant 0 : i32
    %c0_i32_1 = arith.constant 0 : i32
    return %c0_i32, %c0_i32_0 : i32, i32
  }
  func.func @transform_4(%arg0: i32) -> (i32, i32) {
    %c0_i32 = arith.constant 0 : i32
    %c0_i32_0 = arith.constant 0 : i32
    return %arg0, %c0_i32 : i32, i32
  }
}

</mosaic_0001>

<bundles_post_ra>
// kernel: a_call__.5
= control target key start
LH: loop header
LB: loop body
LE: loop exit
PB: predicated region body
PF: predicated region fallthrough
CT: control target
= control target key end

     0   :  { %s1712_s9 = smov 0   ;;  %s1925_s0 = inlined_call_operand.vmem [shape: bf16[4096,128], index: 0, kind: input, shape index: {}]   ;;  %s1926_s1 = inlined_call_operand.vmem [shape: bf16[128,8], index: 1, kind: input, shape index: {}]   ;;  %s1927_s2 = inlined_call_operand.vmem [shape: bf16[4096,8], index: 2, kind: output, shape index: {}]  }
   0x1 LB: > { %s1326_s10 = sadd.s32 4294967295, %s1695_s9   ;;  %p1330_p0 = scmp.ge.s32.totalorder %s1695_s9, 1  ;;  %s1695_s9 = sphi %s1712_s9, %s12_s9  }
   0x2   : > { %p113_p1 = scmp.lt.s32.totalorder %s1695_s9, 9 }
   0x4   : > { %p114_p2 = pnand %p1330_p0, %p113_p1 }
   0x5   : > { %v1649_v0 = vld [vmem:[%s1926_s1] sm:$0xff] (!%p114_p2)   ;;  %s1331_s13 = sshll.u32 (!%p114_p2), %s1326_s10, 6  ;;  %v1650_v1 = vld [vmem:[%s1926_s1 + $0x8] sm:$0xff] (!%p114_p2)   ;;  %v1651_v2 = vld [vmem:[%s1926_s1 + $0x10] sm:$0xff] (!%p114_p2)   ;;  %vm1205_vm2 = vcmask (!%p114_p2), 60416  }
   0x6   : > { %117 = sbr.rel (%p114_p2) target bundleno = 322 (0x142), region = 28  ;;  %p136_p3 = scmp.lt.s32.totalorder (!%p114_p2), %s1331_s13, 511  ;;  %1545 = vmatprep.subr.bf16.mxu0 (!%p114_p2), %v1649_v0  ;;  %1625 = vmatprep.subr.bf16.mxu1 (!%p114_p2), %v1649_v0  ;;  %v1652_v3 = vld [vmem:[%s1926_s1 + $0x18] sm:$0xff] (!%p114_p2)   ;;  %v1653_v6 = vld [vmem:[%s1926_s1 + $0x20] sm:$0xff] (!%p114_p2)   ;;  %v1654_v7 = vld [vmem:[%s1926_s1 + $0x28] sm:$0xff] (!%p114_p2)  }
   0x7   : > { %1546 = vmatpush3.bf16.msra.mxu0 (!%p114_p2), %v1649_v0  ;;  %1633 = vmatpush3.bf16.msra.mxu1 (!%p114_p2), %v1649_v0  ;;  %v1655_v8 = vld [vmem:[%s1926_s1 + $0x30] sm:$0xff] (!%p114_p2)   ;;  %v1656_v9 = vld [vmem:[%s1926_s1 + $0x38] sm:$0xff] (!%p114_p2)  }
   0x8   : > { %1547 = vmatprep.subr.bf16.mxu0 (!%p114_p2), %v1650_v1  ;;  %1626 = vmatprep.subr.bf16.mxu1 (!%p114_p2), %v1650_v1 }
   0xb   : > { %1548 = vmatpush3.bf16.msra.mxu0 (!%p114_p2), %v1650_v1  ;;  %1634 = vmatpush3.bf16.msra.mxu1 (!%p114_p2), %v1650_v1 }
   0xc   : > { %1549 = vmatprep.subr.bf16.mxu0 (!%p114_p2), %v1651_v2  ;;  %1627 = vmatprep.subr.bf16.mxu1 (!%p114_p2), %v1651_v2 }
   0xd   : > { %s1929_s13 = smov (!%p136_p3, %s1331_s13), 511 }
   0xe   : > { %s1332_s18 = sshll.u32 %s1929_s13, 2 }
   0xf   : > { %s1737_s21 = scalar_lea.vmem %s1925_s0, %s1332_s18  ;;  %1550 = vmatpush3.bf16.msra.mxu0 %v1651_v2  ;;  %1635 = vmatpush3.bf16.msra.mxu1 %v1651_v2  ;;  %s1791_s6 = scalar_lea.vmem %s1927_s2, %s1332_s18 }
  0x10   : > { %v1657_v4 = vld [vmem:[%s1737_s21] sm:$0xff]   ;;  %1551 = vmatprep.subr.bf16.mxu0 %v1652_v3  ;;  %1628 = vmatprep.subr.bf16.mxu1 %v1652_v3  ;;  %v1659_v10 = vld [vmem:[%s1737_s21 + $0x8] sm:$0xff]   ;;  %v1661_v12 = vld [vmem:[%s1737_s21 + $0x10] sm:$0xff]  }
  0x11   : > { %v1658_v5 = vld [vmem:[%s1737_s21 + $0x80] sm:$0xff]   ;;  %1561 = vmatprep.mubr.bf16.mxu0 %v1657_v4  ;;  %v1660_v11 = vld [vmem:[%s1737_s21 + $0x88] sm:$0xff]   ;;  %v1662_v13 = vld [vmem:[%s1737_s21 + $0x90] sm:$0xff]  }
  0x12   : > { %1593 = vmatprep.mubr.bf16.mxu1 %v1658_v5  ;;  %v1663_v14 = vld [vmem:[%s1737_s21 + $0x18] sm:$0xff]   ;;  %v1665_v16 = vld [vmem:[%s1737_s21 + $0x20] sm:$0xff]   ;;  %v1667_v18 = vld [vmem:[%s1737_s21 + $0x28] sm:$0xff]  }
  0x13   : > { %1552 = vmatpush3.bf16.msra.mxu0 %v1652_v3  ;;  %1636 = vmatpush3.bf16.msra.mxu1 %v1652_v3  ;;  %v1664_v15 = vld [vmem:[%s1737_s21 + $0x98] sm:$0xff]   ;;  %v1666_v17 = vld [vmem:[%s1737_s21 + $0xa0] sm:$0xff]   ;;  %v1668_v19 = vld [vmem:[%s1737_s21 + $0xa8] sm:$0xff]  }
  0x14   : > { %1553 = vmatprep.subr.bf16.mxu0 %v1653_v6  ;;  %1629 = vmatprep.subr.bf16.mxu1 %v1653_v6  ;;  %v1669_v20 = vld [vmem:[%s1737_s21 + $0x30] sm:$0xff]   ;;  %v1671_v22 = vld [vmem:[%s1737_s21 + $0x38] sm:$0xff]   ;;  %v1673_v24 = vld [vmem:[%s1737_s21 + $0x40] sm:$0xff]  }
  0x15   : > { %v1670_v21 = vld [vmem:[%s1737_s21 + $0xb0] sm:$0xff]   ;;  %v1672_v23 = vld [vmem:[%s1737_s21 + $0xb8] sm:$0xff]   ;;  %v1674_v25 = vld [vmem:[%s1737_s21 + $0xc0] sm:$0xff]  }
  0x16   : > { %v1675_v26 = vld [vmem:[%s1737_s21 + $0x48] sm:$0xff]   ;;  %v1677_v28 = vld [vmem:[%s1737_s21 + $0x50] sm:$0xff]   ;;  %v1679_v30 = vld [vmem:[%s1737_s21 + $0x58] sm:$0xff]  }
  0x17   : > { %1554 = vmatpush3.bf16.msra.mxu0 %v1653_v6  ;;  %1637 = vmatpush3.bf16.msra.mxu1 %v1653_v6  ;;  %v1676_v27 = vld [vmem:[%s1737_s21 + $0xc8] sm:$0xff]   ;;  %v1678_v29 = vld [vmem:[%s1737_s21 + $0xd0] sm:$0xff]   ;;  %v1680_v31 = vld [vmem:[%s1737_s21 + $0xd8] sm:$0xff]  }
  0x18   : > { %1555 = vmatprep.subr.bf16.mxu0 %v1654_v7  ;;  %1630 = vmatprep.subr.bf16.mxu1 %v1654_v7  ;;  %v1681_v32 = vld [vmem:[%s1737_s21 + $0x60] sm:$0xff]   ;;  %v1683_v34 = vld [vmem:[%s1737_s21 + $0x68] sm:$0xff]   ;;  %v1685_v36 = vld [vmem:[%s1737_s21 + $0x70] sm:$0xff]  }
  0x19   : > { %v1682_v33 = vld [vmem:[%s1737_s21 + $0xe0] sm:$0xff]   ;;  %v1684_v35 = vld [vmem:[%s1737_s21 + $0xe8] sm:$0xff]   ;;  %v1686_v37 = vld [vmem:[%s1737_s21 + $0xf0] sm:$0xff]  }
  0x1a   : > { %v1687_v38 = vld [vmem:[%s1737_s21 + $0x78] sm:$0xff]  }
  0x1b   : > { %1556 = vmatpush3.bf16.msra.mxu0 %v1654_v7  ;;  %1638 = vmatpush3.bf16.msra.mxu1 %v1654_v7  ;;  %v1688_v39 = vld [vmem:[%s1737_s21 + $0xf8] sm:$0xff]  }
  0x1c   : > { %1557 = vmatprep.subr.bf16.mxu0 %v1655_v8  ;;  %1631 = vmatprep.subr.bf16.mxu1 %v1655_v8 }
  0x1f   : > { %1558 = vmatpush3.bf16.msra.mxu0 %v1655_v8  ;;  %1639 = vmatpush3.bf16.msra.mxu1 %v1655_v8 }
  0x20   : > { %1559 = vmatprep.subr.bf16.mxu0 %v1656_v9  ;;  %1632 = vmatprep.subr.bf16.mxu1 %v1656_v9 }
  0x23   : > { %1560 = vmatpush3.bf16.msra.mxu0 %v1656_v9  ;;  %1640 = vmatpush3.bf16.msra.mxu1 %v1656_v9 }
  0x26   : > { %1562 = vmatmul.mubr.bf16.vlgmr.msra.gmra.mrb[0].mxu0 %v1659_v10  ;;  %1594 = vmatmul.mubr.bf16.vlgmr.msra.gmra.mrb[0].mxu1 %v1660_v11 }
  0x27   : > { %1565 = vmatprep.mubr.bf16.mxu0 %v1661_v12  ;;  %1597 = vmatprep.mubr.bf16.mxu1 %v1662_v13 }
  0x2e   : > { %1566 = vmatmul.mubr.bf16.gmra.mrb[4].mxu0 %v1663_v14  ;;  %1598 = vmatmul.mubr.bf16.gmra.mrb[4].mxu1 %v1664_v15 }
  0x2f   : > { %1569 = vmatprep.mubr.bf16.mxu0 %v1665_v16  ;;  %1601 = vmatprep.mubr.bf16.mxu1 %v1666_v17 }
  0x36   : > { %1570 = vmatmul.mubr.bf16.gmra.mrb[8].mxu0 %v1667_v18  ;;  %1602 = vmatmul.mubr.bf16.gmra.mrb[8].mxu1 %v1668_v19 }
  0x37   : > { %1573 = vmatprep.mubr.bf16.mxu0 %v1669_v20  ;;  %1605 = vmatprep.mubr.bf16.mxu1 %v1670_v21 }
  0x3e   : > { %1574 = vmatmul.mubr.bf16.gmra.mrb[12].mxu0 %v1671_v22  ;;  %1606 = vmatmul.mubr.bf16.gmra.mrb[12].mxu1 %v1672_v23 }
  0x3f   : > { %1577 = vmatprep.mubr.bf16.mxu0 %v1673_v24  ;;  %1609 = vmatprep.mubr.bf16.mxu1 %v1674_v25 }
  0x46   : > { %1578 = vmatmul.mubr.bf16.gmra.mrb[16].mxu0 %v1675_v26  ;;  %1610 = vmatmul.mubr.bf16.gmra.mrb[16].mxu1 %v1676_v27 }
  0x47   : > { %1581 = vmatprep.mubr.bf16.mxu0 %v1677_v28  ;;  %1613 = vmatprep.mubr.bf16.mxu1 %v1678_v29 }
  0x4e   : > { %1582 = vmatmul.mubr.bf16.gmra.mrb[20].mxu0 %v1679_v30  ;;  %1614 = vmatmul.mubr.bf16.gmra.mrb[20].mxu1 %v1680_v31 }
  0x4f   : > { %1585 = vmatprep.mubr.bf16.mxu0 %v1681_v32  ;;  %1617 = vmatprep.mubr.bf16.mxu1 %v1682_v33 }
  0x56   : > { %1586 = vmatmul.mubr.bf16.gmra.mrb[24].mxu0 %v1683_v34  ;;  %1618 = vmatmul.mubr.bf16.gmra.mrb[24].mxu1 %v1684_v35 }
  0x57   : > { %1589 = vmatprep.mubr.bf16.mxu0 %v1685_v36  ;;  %1621 = vmatprep.mubr.bf16.mxu1 %v1686_v37 }
  0x5e   : > { %1590 = vmatmul.mubr.bf16.gmra.mrb[28].mxu0 %v1687_v38  ;;  %1622 = vmatmul.mubr.bf16.gmra.mrb[28].mxu1 %v1688_v39 }
  0xf9   : > { %v1563_v40 = vpop.f32.mrb[0].mxu0  ;;  %v1595_v41 = vpop.f32.mrb[0].mxu1 }
  0xfa   : > { %vm759_vm0 = vcmp.gt.f32.partialorder %v1563_v40, 0.0  ;;  %v823_v42 = vmul.f32 0.2, %v1563_v40  ;;  %vm791_vm1 = vcmp.gt.f32.partialorder %v1595_v41, 0.0  ;;  %v855_v43 = vmul.f32 0.2, %v1595_v41 }
  0xfb   : > { %v502_v44 = vpop.f32.mrb[1].mxu0  ;;  %v630_v45 = vpop.f32.mrb[1].mxu1 }
  0xfc   : > { %v887_v46 = vsel %vm759_vm0, %v1563_v40, %v823_v42  ;;  %v919_v47 = vsel %vm791_vm1, %v1595_v41, %v855_v43  ;;  %vm757_vm3 = vcmp.gt.f32.partialorder %v502_v44, 0.0  ;;  %v821_v48 = vmul.f32 0.2, %v502_v44  ;;  %v1564_v49 = vpop.f32.mrb[2].mxu0  ;;  %v1596_v50 = vpop.f32.mrb[2].mxu1 }
  0xfd   : > { %v1443_v51 = vpack.c.bf16 %v887_v46, %v887_v46  ;;  %v1475_v52 = vpack.c.bf16 %v919_v47, %v919_v47  ;;  %vm789_vm4 = vcmp.gt.f32.partialorder %v630_v45, 0.0  ;;  %v853_v53 = vmul.f32 0.2, %v630_v45  ;;  %v505_v54 = vpop.f32.mrb[3].mxu0  ;;  %v633_v55 = vpop.f32.mrb[3].mxu1 }
  0xfe   : > { %v885_v56 = vsel %vm757_vm3, %v502_v44, %v821_v48  ;;  %vm760_vm5 = vcmp.gt.f32.partialorder %v1564_v49, 0.0  ;;  %v824_v57 = vmul.f32 0.2, %v1564_v49  ;;  %vm792_vm6 = vcmp.gt.f32.partialorder %v1596_v50, 0.0 }
  0xff   : > { %1208 = vst.msk [vmem:[%s1791_s6 + $0x8] sm:$0xf] %vm1205_vm2, %v1443_v51  ;;  %1240 = vst.msk [vmem:[%s1791_s6 + $0x88] sm:$0xf] %vm1205_vm2, %v1475_v52  ;;  %v1441_v58 = vpack.c.bf16 %v885_v56, %v885_v56  ;;  %v917_v59 = vsel %vm789_vm4, %v630_v45, %v853_v53  ;;  %v856_v60 = vmul.f32 0.2, %v1596_v50 }
 0x100   : > { %vm758_vm7 = vcmp.gt.f32.partialorder %v505_v54, 0.0  ;;  %v1473_v61 = vpack.c.bf16 %v917_v59, %v917_v59  ;;  %v888_v62 = vsel %vm760_vm5, %v1564_v49, %v824_v57  ;;  %v822_v63 = vmul.f32 0.2, %v505_v54 }
 0x101   : > { %vm790_vm8 = vcmp.gt.f32.partialorder %v633_v55, 0.0  ;;  %1206 = vst.msk [vmem:[%s1791_s6] sm:$0xf] %vm1205_vm2, %v1441_v58  ;;  %v1444_v0 = vpack.c.bf16 %v888_v62, %v888_v62  ;;  %v920_v1 = vsel %vm792_vm6, %v1596_v50, %v856_v60  ;;  %v854_v2 = vmul.f32 0.2, %v633_v55  ;;  %v1567_v3 = vpop.f32.mrb[4].mxu0 }
 0x102   : > { %v1599_v4 = vpop.f32.mrb[4].mxu1  ;;  %1238 = vst.msk [vmem:[%s1791_s6 + $0x80] sm:$0xf] %vm1205_vm2, %v1473_v61  ;;  %v1476_v5 = vpack.c.bf16 %v920_v1, %v920_v1  ;;  %v886_v6 = vsel %vm758_vm7, %v505_v54, %v822_v63  ;;  %vm763_vm9 = vcmp.gt.f32.partialorder %v1567_v3, 0.0  ;;  %v827_v7 = vmul.f32 0.2, %v1567_v3 }
 0x103   : > { %v518_v8 = vpop.f32.mrb[5].mxu0  ;;  %v646_v9 = vpop.f32.mrb[5].mxu1  ;;  %1209 = vst.msk [vmem:[%s1791_s6 + $0xc] sm:$0xf] %vm1205_vm2, %v1444_v0  ;;  %v1442_v10 = vpack.c.bf16 %v886_v6, %v886_v6  ;;  %v918_v11 = vsel %vm790_vm8, %v633_v55, %v854_v2  ;;  %vm795_vm10 = vcmp.gt.f32.partialorder %v1599_v4, 0.0 }
 0x104   : > { %v859_v12 = vmul.f32 0.2, %v1599_v4  ;;  %v1568_v13 = vpop.f32.mrb[6].mxu0  ;;  %v1600_v14 = vpop.f32.mrb[6].mxu1  ;;  %1241 = vst.msk [vmem:[%s1791_s6 + $0x8c] sm:$0xf] %vm1205_vm2, %v1476_v5  ;;  %v1474_v15 = vpack.c.bf16 %v918_v11, %v918_v11  ;;  %v891_v16 = vsel %vm763_vm9, %v1567_v3, %v827_v7 }
 0x105   : > { %vm761_vm11 = vcmp.gt.f32.partialorder %v518_v8, 0.0  ;;  %v825_v17 = vmul.f32 0.2, %v518_v8  ;;  %v521_v18 = vpop.f32.mrb[7].mxu0  ;;  %v649_v19 = vpop.f32.mrb[7].mxu1  ;;  %v1447_v20 = vpack.c.bf16 %v891_v16, %v891_v16  ;;  %vm793_vm12 = vcmp.gt.f32.partialorder %v646_v9, 0.0 }
 0x106   : > { %1207 = vst.msk [vmem:[%s1791_s6 + $0x4] sm:$0xf] %vm1205_vm2, %v1442_v10  ;;  %v923_v21 = vsel %vm795_vm10, %v1599_v4, %v859_v12  ;;  %v857_v22 = vmul.f32 0.2, %v646_v9  ;;  %1239 = vst.msk [vmem:[%s1791_s6 + $0x84] sm:$0xf] %vm1205_vm2, %v1474_v15 }
 0x107   : > { %v1479_v23 = vpack.c.bf16 %v923_v21, %v923_v21  ;;  %v889_v24 = vsel %vm761_vm11, %v518_v8, %v825_v17  ;;  %vm764_vm13 = vcmp.gt.f32.partialorder %v1568_v13, 0.0  ;;  %v828_v25 = vmul.f32 0.2, %v1568_v13  ;;  %1212 = vst.msk [vmem:[%s1791_s6 + $0x18] sm:$0xf] %vm1205_vm2, %v1447_v20 }
 0x108   : > { %v1445_v26 = vpack.c.bf16 %v889_v24, %v889_v24  ;;  %v921_v27 = vsel %vm793_vm12, %v646_v9, %v857_v22  ;;  %vm796_vm14 = vcmp.gt.f32.partialorder %v1600_v14, 0.0  ;;  %v860_v28 = vmul.f32 0.2, %v1600_v14 }
 0x109   : > { %1244 = vst.msk [vmem:[%s1791_s6 + $0x98] sm:$0xf] %vm1205_vm2, %v1479_v23  ;;  %v1477_v29 = vpack.c.bf16 %v921_v27, %v921_v27  ;;  %v892_v30 = vsel %vm764_vm13, %v1568_v13, %v828_v25  ;;  %vm762_vm15 = vcmp.gt.f32.partialorder %v521_v18, 0.0  ;;  %v826_v31 = vmul.f32 0.2, %v521_v18  ;;  %v1571_v35 = vpop.f32.mrb[8].mxu0 }
 0x10a   : > { %1210 = vst.msk [vmem:[%s1791_s6 + $0x10] sm:$0xf] %vm1205_vm2, %v1445_v26  ;;  %v1448_v32 = vpack.c.bf16 %v892_v30, %v892_v30  ;;  %v924_v33 = vsel %vm796_vm14, %v1600_v14, %v860_v28  ;;  %vm794_vm0 = vcmp.gt.f32.partialorder %v649_v19, 0.0  ;;  %v858_v34 = vmul.f32 0.2, %v649_v19  ;;  %v1603_v36 = vpop.f32.mrb[8].mxu1 }
 0x10b   : > { %1242 = vst.msk [vmem:[%s1791_s6 + $0x90] sm:$0xf] %vm1205_vm2, %v1477_v29  ;;  %v1480_v37 = vpack.c.bf16 %v924_v33, %v924_v33  ;;  %v890_v38 = vsel %vm762_vm15, %v521_v18, %v826_v31  ;;  %vm767_vm1 = vcmp.gt.f32.partialorder %v1571_v35, 0.0  ;;  %v831_v39 = vmul.f32 0.2, %v1571_v35  ;;  %v534_v40 = vpop.f32.mrb[9].mxu0 }
 0x10c   : > { %v662_v41 = vpop.f32.mrb[9].mxu1  ;;  %1213 = vst.msk [vmem:[%s1791_s6 + $0x1c] sm:$0xf] %vm1205_vm2, %v1448_v32  ;;  %v1446_v42 = vpack.c.bf16 %v890_v38, %v890_v38  ;;  %v922_v43 = vsel %vm794_vm0, %v649_v19, %v858_v34  ;;  %vm799_vm3 = vcmp.gt.f32.partialorder %v1603_v36, 0.0  ;;  %v863_v44 = vmul.f32 0.2, %v1603_v36 }
 0x10d   : > { %v1572_v45 = vpop.f32.mrb[10].mxu0  ;;  %v1604_v46 = vpop.f32.mrb[10].mxu1  ;;  %1245 = vst.msk [vmem:[%s1791_s6 + $0x9c] sm:$0xf] %vm1205_vm2, %v1480_v37  ;;  %v1478_v47 = vpack.c.bf16 %v922_v43, %v922_v43  ;;  %v895_v48 = vsel %vm767_vm1, %v1571_v35, %v831_v39  ;;  %vm765_vm4 = vcmp.gt.f32.partialorder %v534_v40, 0.0  ;;  %vm797_vm5 = vcmp.gt.f32.partialorder %v662_v41, 0.0 }
 0x10e   : > { %v829_v49 = vmul.f32 0.2, %v534_v40  ;;  %v537_v50 = vpop.f32.mrb[11].mxu0  ;;  %v665_v51 = vpop.f32.mrb[11].mxu1  ;;  %1211 = vst.msk [vmem:[%s1791_s6 + $0x14] sm:$0xf] %vm1205_vm2, %v1446_v42  ;;  %v1451_v52 = vpack.c.bf16 %v895_v48, %v895_v48  ;;  %v927_v53 = vsel %vm799_vm3, %v1603_v36, %v863_v44 }
 0x10f   : > { %v861_v54 = vmul.f32 0.2, %v662_v41  ;;  %1243 = vst.msk [vmem:[%s1791_s6 + $0x94] sm:$0xf] %vm1205_vm2, %v1478_v47  ;;  %v1483_v55 = vpack.c.bf16 %v927_v53, %v927_v53  ;;  %vm768_vm6 = vcmp.gt.f32.partialorder %v1572_v45, 0.0  ;;  %vm800_vm7 = vcmp.gt.f32.partialorder %v1604_v46, 0.0 }
 0x110   : > { %v893_v56 = vsel %vm765_vm4, %v534_v40, %v829_v49  ;;  %v832_v57 = vmul.f32 0.2, %v1572_v45  ;;  %1216 = vst.msk [vmem:[%s1791_s6 + $0x28] sm:$0xf] %vm1205_vm2, %v1451_v52  ;;  %v864_v60 = vmul.f32 0.2, %v1604_v46 }
 0x111   : > { %v1449_v58 = vpack.c.bf16 %v893_v56, %v893_v56  ;;  %v925_v59 = vsel %vm797_vm5, %v662_v41, %v861_v54  ;;  %1248 = vst.msk [vmem:[%s1791_s6 + $0xa8] sm:$0xf] %vm1205_vm2, %v1483_v55  ;;  %vm766_vm8 = vcmp.gt.f32.partialorder %v537_v50, 0.0  ;;  %v830_v63 = vmul.f32 0.2, %v537_v50  ;;  %v1575_v3 = vpop.f32.mrb[12].mxu0 }
 0x112   : > { %v1481_v61 = vpack.c.bf16 %v925_v59, %v925_v59  ;;  %v896_v62 = vsel %vm768_vm6, %v1572_v45, %v832_v57  ;;  %v928_v1 = vsel %vm800_vm7, %v1604_v46, %v864_v60  ;;  %vm798_vm9 = vcmp.gt.f32.partialorder %v665_v51, 0.0  ;;  %v1607_v4 = vpop.f32.mrb[12].mxu1  ;;  %v550_v8 = vpop.f32.mrb[13].mxu0 }
 0x113   : > { %1214 = vst.msk [vmem:[%s1791_s6 + $0x20] sm:$0xf] %vm1205_vm2, %v1449_v58  ;;  %v1452_v0 = vpack.c.bf16 %v896_v62, %v896_v62  ;;  %v862_v2 = vmul.f32 0.2, %v665_v51  ;;  %v1484_v5 = vpack.c.bf16 %v928_v1, %v928_v1  ;;  %v894_v6 = vsel %vm766_vm8, %v537_v50, %v830_v63  ;;  %v678_v9 = vpop.f32.mrb[13].mxu1  ;;  %v1576_v13 = vpop.f32.mrb[14].mxu0 }
 0x114   : > { %1246 = vst.msk [vmem:[%s1791_s6 + $0xa0] sm:$0xf] %vm1205_vm2, %v1481_v61  ;;  %vm771_vm10 = vcmp.gt.f32.partialorder %v1575_v3, 0.0  ;;  %v835_v7 = vmul.f32 0.2, %v1575_v3  ;;  %v1450_v10 = vpack.c.bf16 %v894_v6, %v894_v6  ;;  %vm803_vm11 = vcmp.gt.f32.partialorder %v1607_v4, 0.0 }
 0x115   : > { %1217 = vst.msk [vmem:[%s1791_s6 + $0x2c] sm:$0xf] %vm1205_vm2, %v1452_v0  ;;  %v926_v11 = vsel %vm798_vm9, %v665_v51, %v862_v2  ;;  %v867_v12 = vmul.f32 0.2, %v1607_v4  ;;  %v1608_v14 = vpop.f32.mrb[14].mxu1  ;;  %vm769_vm12 = vcmp.gt.f32.partialorder %v550_v8, 0.0 }
 0x116   : > { %1249 = vst.msk [vmem:[%s1791_s6 + $0xac] sm:$0xf] %vm1205_vm2, %v1484_v5  ;;  %v1482_v15 = vpack.c.bf16 %v926_v11, %v926_v11  ;;  %v899_v16 = vsel %vm771_vm10, %v1575_v3, %v835_v7  ;;  %v833_v17 = vmul.f32 0.2, %v550_v8  ;;  %v553_v18 = vpop.f32.mrb[15].mxu0  ;;  %v681_v19 = vpop.f32.mrb[15].mxu1 }
 0x117   : > { %1215 = vst.msk [vmem:[%s1791_s6 + $0x24] sm:$0xf] %vm1205_vm2, %v1450_v10  ;;  %v1455_v20 = vpack.c.bf16 %v899_v16, %v899_v16  ;;  %v931_v21 = vsel %vm803_vm11, %v1607_v4, %v867_v12  ;;  %vm801_vm13 = vcmp.gt.f32.partialorder %v678_v9, 0.0  ;;  %v865_v22 = vmul.f32 0.2, %v678_v9 }
 0x118   : > { %1247 = vst.msk [vmem:[%s1791_s6 + $0xa4] sm:$0xf] %vm1205_vm2, %v1482_v15  ;;  %v1487_v23 = vpack.c.bf16 %v931_v21, %v931_v21  ;;  %v897_v24 = vsel %vm769_vm12, %v550_v8, %v833_v17  ;;  %vm772_vm14 = vcmp.gt.f32.partialorder %v1576_v13, 0.0  ;;  %v836_v25 = vmul.f32 0.2, %v1576_v13 }
 0x119   : > { %1220 = vst.msk [vmem:[%s1791_s6 + $0x38] sm:$0xf] %vm1205_vm2, %v1455_v20  ;;  %v1453_v26 = vpack.c.bf16 %v897_v24, %v897_v24  ;;  %v929_v27 = vsel %vm801_vm13, %v678_v9, %v865_v22  ;;  %vm804_vm15 = vcmp.gt.f32.partialorder %v1608_v14, 0.0  ;;  %v868_v28 = vmul.f32 0.2, %v1608_v14  ;;  %v1579_v35 = vpop.f32.mrb[16].mxu0 }
 0x11a   : > { %1252 = vst.msk [vmem:[%s1791_s6 + $0xb8] sm:$0xf] %vm1205_vm2, %v1487_v23  ;;  %v1485_v29 = vpack.c.bf16 %v929_v27, %v929_v27  ;;  %v900_v30 = vsel %vm772_vm14, %v1576_v13, %v836_v25  ;;  %vm770_vm0 = vcmp.gt.f32.partialorder %v553_v18, 0.0  ;;  %v834_v31 = vmul.f32 0.2, %v553_v18  ;;  %v1611_v36 = vpop.f32.mrb[16].mxu1 }
 0x11b   : > { %1218 = vst.msk [vmem:[%s1791_s6 + $0x30] sm:$0xf] %vm1205_vm2, %v1453_v26  ;;  %v1456_v32 = vpack.c.bf16 %v900_v30, %v900_v30  ;;  %v932_v33 = vsel %vm804_vm15, %v1608_v14, %v868_v28  ;;  %vm802_vm1 = vcmp.gt.f32.partialorder %v681_v19, 0.0  ;;  %v866_v34 = vmul.f32 0.2, %v681_v19  ;;  %v566_v40 = vpop.f32.mrb[17].mxu0 }
 0x11c   : > { %1250 = vst.msk [vmem:[%s1791_s6 + $0xb0] sm:$0xf] %vm1205_vm2, %v1485_v29  ;;  %v1488_v37 = vpack.c.bf16 %v932_v33, %v932_v33  ;;  %v898_v38 = vsel %vm770_vm0, %v553_v18, %v834_v31  ;;  %vm775_vm3 = vcmp.gt.f32.partialorder %v1579_v35, 0.0  ;;  %v839_v39 = vmul.f32 0.2, %v1579_v35  ;;  %v694_v41 = vpop.f32.mrb[17].mxu1 }
 0x11d   : > { %1221 = vst.msk [vmem:[%s1791_s6 + $0x3c] sm:$0xf] %vm1205_vm2, %v1456_v32  ;;  %v1454_v42 = vpack.c.bf16 %v898_v38, %v898_v38  ;;  %v930_v43 = vsel %vm802_vm1, %v681_v19, %v866_v34  ;;  %vm807_vm4 = vcmp.gt.f32.partialorder %v1611_v36, 0.0  ;;  %v871_v44 = vmul.f32 0.2, %v1611_v36  ;;  %v1580_v45 = vpop.f32.mrb[18].mxu0 }
 0x11e   : > { %v1612_v46 = vpop.f32.mrb[18].mxu1  ;;  %1253 = vst.msk [vmem:[%s1791_s6 + $0xbc] sm:$0xf] %vm1205_vm2, %v1488_v37  ;;  %v1486_v47 = vpack.c.bf16 %v930_v43, %v930_v43  ;;  %v903_v48 = vsel %vm775_vm3, %v1579_v35, %v839_v39  ;;  %vm773_vm5 = vcmp.gt.f32.partialorder %v566_v40, 0.0  ;;  %v837_v49 = vmul.f32 0.2, %v566_v40 }
 0x11f   : > { %v569_v50 = vpop.f32.mrb[19].mxu0  ;;  %v697_v51 = vpop.f32.mrb[19].mxu1  ;;  %1219 = vst.msk [vmem:[%s1791_s6 + $0x34] sm:$0xf] %vm1205_vm2, %v1454_v42  ;;  %v1459_v52 = vpack.c.bf16 %v903_v48, %v903_v48  ;;  %v935_v53 = vsel %vm807_vm4, %v1611_v36, %v871_v44  ;;  %vm805_vm6 = vcmp.gt.f32.partialorder %v694_v41, 0.0  ;;  %vm776_vm7 = vcmp.gt.f32.partialorder %v1580_v45, 0.0 }
 0x120   : > { %v869_v54 = vmul.f32 0.2, %v694_v41  ;;  %1251 = vst.msk [vmem:[%s1791_s6 + $0xb4] sm:$0xf] %vm1205_vm2, %v1486_v47  ;;  %v1491_v55 = vpack.c.bf16 %v935_v53, %v935_v53  ;;  %v901_v56 = vsel %vm773_vm5, %v566_v40, %v837_v49  ;;  %v840_v57 = vmul.f32 0.2, %v1580_v45 }
 0x121   : > { %1224 = vst.msk [vmem:[%s1791_s6 + $0x48] sm:$0xf] %vm1205_vm2, %v1459_v52  ;;  %v1457_v58 = vpack.c.bf16 %v901_v56, %v901_v56  ;;  %vm808_vm8 = vcmp.gt.f32.partialorder %v1612_v46, 0.0  ;;  %v872_v60 = vmul.f32 0.2, %v1612_v46  ;;  %vm774_vm9 = vcmp.gt.f32.partialorder %v569_v50, 0.0 }
 0x122   : > { %v933_v59 = vsel %vm805_vm6, %v694_v41, %v869_v54  ;;  %1256 = vst.msk [vmem:[%s1791_s6 + $0xc8] sm:$0xf] %vm1205_vm2, %v1491_v55  ;;  %v904_v62 = vsel %vm776_vm7, %v1580_v45, %v840_v57  ;;  %v838_v63 = vmul.f32 0.2, %v569_v50  ;;  %vm806_vm10 = vcmp.gt.f32.partialorder %v697_v51, 0.0  ;;  %v1583_v3 = vpop.f32.mrb[20].mxu0 }
 0x123   : > { %v1489_v61 = vpack.c.bf16 %v933_v59, %v933_v59  ;;  %1222 = vst.msk [vmem:[%s1791_s6 + $0x40] sm:$0xf] %vm1205_vm2, %v1457_v58  ;;  %v1460_v0 = vpack.c.bf16 %v904_v62, %v904_v62  ;;  %v936_v1 = vsel %vm808_vm8, %v1612_v46, %v872_v60  ;;  %v870_v2 = vmul.f32 0.2, %v697_v51  ;;  %v1615_v4 = vpop.f32.mrb[20].mxu1  ;;  %v582_v8 = vpop.f32.mrb[21].mxu0 }
 0x124   : > { %v1492_v5 = vpack.c.bf16 %v936_v1, %v936_v1  ;;  %v902_v6 = vsel %vm774_vm9, %v569_v50, %v838_v63  ;;  %vm779_vm11 = vcmp.gt.f32.partialorder %v1583_v3, 0.0  ;;  %v843_v7 = vmul.f32 0.2, %v1583_v3  ;;  %v710_v9 = vpop.f32.mrb[21].mxu1  ;;  %v1584_v13 = vpop.f32.mrb[22].mxu0 }
 0x125   : > { %1254 = vst.msk [vmem:[%s1791_s6 + $0xc0] sm:$0xf] %vm1205_vm2, %v1489_v61  ;;  %1225 = vst.msk [vmem:[%s1791_s6 + $0x4c] sm:$0xf] %vm1205_vm2, %v1460_v0  ;;  %v1458_v10 = vpack.c.bf16 %v902_v6, %v902_v6  ;;  %v934_v11 = vsel %vm806_vm10, %v697_v51, %v870_v2  ;;  %vm811_vm12 = vcmp.gt.f32.partialorder %v1615_v4, 0.0  ;;  %v1616_v14 = vpop.f32.mrb[22].mxu1 }
 0x126   : > { %v875_v12 = vmul.f32 0.2, %v1615_v4  ;;  %1257 = vst.msk [vmem:[%s1791_s6 + $0xcc] sm:$0xf] %vm1205_vm2, %v1492_v5  ;;  %v1490_v15 = vpack.c.bf16 %v934_v11, %v934_v11  ;;  %v907_v16 = vsel %vm779_vm11, %v1583_v3, %v843_v7  ;;  %vm777_vm13 = vcmp.gt.f32.partialorder %v582_v8, 0.0  ;;  %v585_v18 = vpop.f32.mrb[23].mxu0 }
 0x127   : > { %v841_v17 = vmul.f32 0.2, %v582_v8  ;;  %v713_v19 = vpop.f32.mrb[23].mxu1  ;;  %1223 = vst.msk [vmem:[%s1791_s6 + $0x44] sm:$0xf] %vm1205_vm2, %v1458_v10  ;;  %v1463_v20 = vpack.c.bf16 %v907_v16, %v907_v16  ;;  %vm809_vm14 = vcmp.gt.f32.partialorder %v710_v9, 0.0 }
 0x128   : > { %v939_v21 = vsel %vm811_vm12, %v1615_v4, %v875_v12  ;;  %v873_v22 = vmul.f32 0.2, %v710_v9  ;;  %1255 = vst.msk [vmem:[%s1791_s6 + $0xc4] sm:$0xf] %vm1205_vm2, %v1490_v15  ;;  %vm780_vm15 = vcmp.gt.f32.partialorder %v1584_v13, 0.0  ;;  %vm812_vm0 = vcmp.gt.f32.partialorder %v1616_v14, 0.0 }
 0x129   : > { %v1495_v23 = vpack.c.bf16 %v939_v21, %v939_v21  ;;  %v905_v24 = vsel %vm777_vm13, %v582_v8, %v841_v17  ;;  %v844_v25 = vmul.f32 0.2, %v1584_v13  ;;  %1228 = vst.msk [vmem:[%s1791_s6 + $0x58] sm:$0xf] %vm1205_vm2, %v1463_v20  ;;  %v876_v28 = vmul.f32 0.2, %v1616_v14 }
 0x12a   : > { %v1461_v26 = vpack.c.bf16 %v905_v24, %v905_v24  ;;  %v937_v27 = vsel %vm809_vm14, %v710_v9, %v873_v22  ;;  %vm778_vm1 = vcmp.gt.f32.partialorder %v585_v18, 0.0  ;;  %v842_v31 = vmul.f32 0.2, %v585_v18  ;;  %v1587_v35 = vpop.f32.mrb[24].mxu0  ;;  %v1619_v36 = vpop.f32.mrb[24].mxu1 }
 0x12b   : > { %1260 = vst.msk [vmem:[%s1791_s6 + $0xd8] sm:$0xf] %vm1205_vm2, %v1495_v23  ;;  %v1493_v29 = vpack.c.bf16 %v937_v27, %v937_v27  ;;  %v908_v30 = vsel %vm780_vm15, %v1584_v13, %v844_v25  ;;  %v940_v33 = vsel %vm812_vm0, %v1616_v14, %v876_v28  ;;  %vm810_vm3 = vcmp.gt.f32.partialorder %v713_v19, 0.0  ;;  %v598_v40 = vpop.f32.mrb[25].mxu0  ;;  %v726_v41 = vpop.f32.mrb[25].mxu1 }
 0x12c   : > { %1226 = vst.msk [vmem:[%s1791_s6 + $0x50] sm:$0xf] %vm1205_vm2, %v1461_v26  ;;  %v1464_v32 = vpack.c.bf16 %v908_v30, %v908_v30  ;;  %v874_v34 = vmul.f32 0.2, %v713_v19  ;;  %v1496_v37 = vpack.c.bf16 %v940_v33, %v940_v33  ;;  %v906_v38 = vsel %vm778_vm1, %v585_v18, %v842_v31  ;;  %v1588_v45 = vpop.f32.mrb[26].mxu0  ;;  %v1620_v46 = vpop.f32.mrb[26].mxu1 }
 0x12d   : > { %1258 = vst.msk [vmem:[%s1791_s6 + $0xd0] sm:$0xf] %vm1205_vm2, %v1493_v29  ;;  %vm783_vm4 = vcmp.gt.f32.partialorder %v1587_v35, 0.0  ;;  %v847_v39 = vmul.f32 0.2, %v1587_v35  ;;  %v1462_v42 = vpack.c.bf16 %v906_v38, %v906_v38  ;;  %vm815_vm5 = vcmp.gt.f32.partialorder %v1619_v36, 0.0 }
 0x12e   : > { %1229 = vst.msk [vmem:[%s1791_s6 + $0x5c] sm:$0xf] %vm1205_vm2, %v1464_v32  ;;  %v938_v43 = vsel %vm810_vm3, %v713_v19, %v874_v34  ;;  %v879_v44 = vmul.f32 0.2, %v1619_v36  ;;  %1261 = vst.msk [vmem:[%s1791_s6 + $0xdc] sm:$0xf] %vm1205_vm2, %v1496_v37 }
 0x12f   : > { %v1494_v47 = vpack.c.bf16 %v938_v43, %v938_v43  ;;  %v911_v48 = vsel %vm783_vm4, %v1587_v35, %v847_v39  ;;  %vm781_vm6 = vcmp.gt.f32.partialorder %v598_v40, 0.0  ;;  %v845_v49 = vmul.f32 0.2, %v598_v40  ;;  %v601_v50 = vpop.f32.mrb[27].mxu0  ;;  %v729_v51 = vpop.f32.mrb[27].mxu1 }
 0x130   : > { %1227 = vst.msk [vmem:[%s1791_s6 + $0x54] sm:$0xf] %vm1205_vm2, %v1462_v42  ;;  %v1467_v52 = vpack.c.bf16 %v911_v48, %v911_v48  ;;  %v943_v53 = vsel %vm815_vm5, %v1619_v36, %v879_v44  ;;  %vm813_vm7 = vcmp.gt.f32.partialorder %v726_v41, 0.0  ;;  %v877_v54 = vmul.f32 0.2, %v726_v41 }
 0x131   : > { %1259 = vst.msk [vmem:[%s1791_s6 + $0xd4] sm:$0xf] %vm1205_vm2, %v1494_v47  ;;  %v1499_v55 = vpack.c.bf16 %v943_v53, %v943_v53  ;;  %v909_v56 = vsel %vm781_vm6, %v598_v40, %v845_v49  ;;  %vm784_vm8 = vcmp.gt.f32.partialorder %v1588_v45, 0.0  ;;  %v848_v57 = vmul.f32 0.2, %v1588_v45  ;;  %v1591_v3 = vpop.f32.mrb[28].mxu0 }
 0x132   : > { %1232 = vst.msk [vmem:[%s1791_s6 + $0x68] sm:$0xf] %vm1205_vm2, %v1467_v52  ;;  %v1465_v58 = vpack.c.bf16 %v909_v56, %v909_v56  ;;  %v941_v59 = vsel %vm813_vm7, %v726_v41, %v877_v54  ;;  %vm816_vm9 = vcmp.gt.f32.partialorder %v1620_v46, 0.0  ;;  %v880_v60 = vmul.f32 0.2, %v1620_v46  ;;  %v1623_v4 = vpop.f32.mrb[28].mxu1 }
 0x133   : > { %1264 = vst.msk [vmem:[%s1791_s6 + $0xe8] sm:$0xf] %vm1205_vm2, %v1499_v55  ;;  %v1497_v61 = vpack.c.bf16 %v941_v59, %v941_v59  ;;  %v912_v62 = vsel %vm784_vm8, %v1588_v45, %v848_v57  ;;  %vm782_vm10 = vcmp.gt.f32.partialorder %v601_v50, 0.0  ;;  %v846_v63 = vmul.f32 0.2, %v601_v50  ;;  %v614_v8 = vpop.f32.mrb[29].mxu0 }
 0x134   : > { %1230 = vst.msk [vmem:[%s1791_s6 + $0x60] sm:$0xf] %vm1205_vm2, %v1465_v58  ;;  %v1468_v0 = vpack.c.bf16 %v912_v62, %v912_v62  ;;  %v944_v1 = vsel %vm816_vm9, %v1620_v46, %v880_v60  ;;  %vm814_vm11 = vcmp.gt.f32.partialorder %v729_v51, 0.0  ;;  %v878_v2 = vmul.f32 0.2, %v729_v51  ;;  %v742_v9 = vpop.f32.mrb[29].mxu1 }
 0x135   : > { %1262 = vst.msk [vmem:[%s1791_s6 + $0xe0] sm:$0xf] %vm1205_vm2, %v1497_v61  ;;  %v1500_v5 = vpack.c.bf16 %v944_v1, %v944_v1  ;;  %v910_v6 = vsel %vm782_vm10, %v601_v50, %v846_v63  ;;  %vm787_vm12 = vcmp.gt.f32.partialorder %v1591_v3, 0.0  ;;  %v851_v7 = vmul.f32 0.2, %v1591_v3  ;;  %v1592_v13 = vpop.f32.mrb[30].mxu0 }
 0x136   : > { %1233 = vst.msk [vmem:[%s1791_s6 + $0x6c] sm:$0xf] %vm1205_vm2, %v1468_v0  ;;  %v1466_v10 = vpack.c.bf16 %v910_v6, %v910_v6  ;;  %v942_v11 = vsel %vm814_vm11, %v729_v51, %v878_v2  ;;  %vm819_vm13 = vcmp.gt.f32.partialorder %v1623_v4, 0.0  ;;  %v883_v12 = vmul.f32 0.2, %v1623_v4  ;;  %v1624_v14 = vpop.f32.mrb[30].mxu1 }
 0x137   : > { %1265 = vst.msk [vmem:[%s1791_s6 + $0xec] sm:$0xf] %vm1205_vm2, %v1500_v5  ;;  %v1498_v15 = vpack.c.bf16 %v942_v11, %v942_v11  ;;  %v915_v16 = vsel %vm787_vm12, %v1591_v3, %v851_v7  ;;  %vm785_vm14 = vcmp.gt.f32.partialorder %v614_v8, 0.0  ;;  %v849_v17 = vmul.f32 0.2, %v614_v8  ;;  %v617_v18 = vpop.f32.mrb[31].mxu0 }
 0x138   : > { %v745_v19 = vpop.f32.mrb[31].mxu1  ;;  %1231 = vst.msk [vmem:[%s1791_s6 + $0x64] sm:$0xf] %vm1205_vm2, %v1466_v10  ;;  %v1471_v20 = vpack.c.bf16 %v915_v16, %v915_v16  ;;  %v947_v21 = vsel %vm819_vm13, %v1623_v4, %v883_v12  ;;  %vm817_vm15 = vcmp.gt.f32.partialorder %v742_v9, 0.0  ;;  %v881_v22 = vmul.f32 0.2, %v742_v9 }
 0x139   : > { %1263 = vst.msk [vmem:[%s1791_s6 + $0xe4] sm:$0xf] %vm1205_vm2, %v1498_v15  ;;  %v1503_v23 = vpack.c.bf16 %v947_v21, %v947_v21  ;;  %v913_v24 = vsel %vm785_vm14, %v614_v8, %v849_v17  ;;  %vm788_vm0 = vcmp.gt.f32.partialorder %v1592_v13, 0.0  ;;  %v852_v25 = vmul.f32 0.2, %v1592_v13 }
 0x13a   : > { %1236 = vst.msk [vmem:[%s1791_s6 + $0x78] sm:$0xf] %vm1205_vm2, %v1471_v20  ;;  %v1469_v26 = vpack.c.bf16 %v913_v24, %v913_v24  ;;  %v945_v27 = vsel %vm817_vm15, %v742_v9, %v881_v22  ;;  %vm820_vm1 = vcmp.gt.f32.partialorder %v1624_v14, 0.0  ;;  %v884_v28 = vmul.f32 0.2, %v1624_v14 }
 0x13b   : > { %1268 = vst.msk [vmem:[%s1791_s6 + $0xf8] sm:$0xf] %vm1205_vm2, %v1503_v23  ;;  %v1501_v29 = vpack.c.bf16 %v945_v27, %v945_v27  ;;  %v916_v30 = vsel %vm788_vm0, %v1592_v13, %v852_v25  ;;  %vm786_vm3 = vcmp.gt.f32.partialorder %v617_v18, 0.0  ;;  %v850_v31 = vmul.f32 0.2, %v617_v18 }
 0x13c   : > { %1234 = vst.msk [vmem:[%s1791_s6 + $0x70] sm:$0xf] %vm1205_vm2, %v1469_v26  ;;  %v1472_v32 = vpack.c.bf16 %v916_v30, %v916_v30  ;;  %v948_v33 = vsel %vm820_vm1, %v1624_v14, %v884_v28  ;;  %vm818_vm4 = vcmp.gt.f32.partialorder %v745_v19, 0.0  ;;  %v882_v34 = vmul.f32 0.2, %v745_v19 }
 0x13d   : > { %1266 = vst.msk [vmem:[%s1791_s6 + $0xf0] sm:$0xf] %vm1205_vm2, %v1501_v29  ;;  %v1504_v35 = vpack.c.bf16 %v948_v33, %v948_v33  ;;  %v914_v36 = vsel %vm786_vm3, %v617_v18, %v850_v31 }
 0x13e   : > { %1237 = vst.msk [vmem:[%s1791_s6 + $0x7c] sm:$0xf] %vm1205_vm2, %v1472_v32  ;;  %v1470_v37 = vpack.c.bf16 %v914_v36, %v914_v36  ;;  %v946_v38 = vsel %vm818_vm4, %v745_v19, %v882_v34 }
 0x13f   : > { %1269 = vst.msk [vmem:[%s1791_s6 + $0xfc] sm:$0xf] %vm1205_vm2, %v1504_v35  ;;  %v1502_v39 = vpack.c.bf16 %v946_v38, %v946_v38 }
 0x140   : > { %1235 = vst.msk [vmem:[%s1791_s6 + $0x74] sm:$0xf] %vm1205_vm2, %v1470_v37 }
 0x141   : > { %1267 = vst.msk [vmem:[%s1791_s6 + $0xf4] sm:$0xf] %vm1205_vm2, %v1502_v39 }
 0x142 PF: > { %s12_s9 = sadd.s32 1, %s1695_s9  }
 0x143   : > { %p9_p4 = scmp.ge.s32.totalorder %s12_s9, 10  }
 0x145   :  { %11 = sbr.rel (!%p9_p4) target bundleno = 1 (0x1), region = 58 }

// kernel: a_call__.6
= control target key start
LH: loop header
LB: loop body
LE: loop exit
PB: predicated region body
PF: predicated region fallthrough
CT: control target
= control target key end

     0   :  { %s1902_s12 = smov 0   ;;  %s2468_s0 = inlined_call_operand.vmem [shape: bf16[1024,128], index: 0, kind: input, shape index: {}]   ;;  %s2469_s1 = inlined_call_operand.vmem [shape: bf16[128,16], index: 1, kind: input, shape index: {}]   ;;  %s2470_s2 = inlined_call_operand.vmem [shape: bf16[1024,16], index: 2, kind: output, shape index: {0}]   ;;  %s2471_s3 = inlined_call_operand.vmem [shape: f32[2,16], index: 3, kind: output, shape index: {1}]  }
   0x1 LB: > { %s1508_s13 = sadd.s32 4294967295, %s1879_s12   ;;  %p1512_p0 = scmp.ge.s32.totalorder %s1879_s12, 1  ;;  %s1879_s12 = sphi %s1902_s12, %s14_s12  }
   0x2   : > { %p136_p1 = scmp.lt.s32.totalorder %s1879_s12, 3 }
   0x4   : > { %p137_p2 = pnand %p1512_p0, %p136_p1 }
   0x5   : > { %s1513_s14 = sshll.u32 (!%p137_p2), %s1508_s13, 6  ;;  %p1517_p4 = scmp.ne.s32.totalorder (!%p137_p2), %s1508_s13, 0 }
   0x6   : > { %140 = sbr.rel (%p137_p2) target bundleno = 413 (0x19d), region = 28  ;;  %p161_p3 = scmp.lt.s32.totalorder (!%p137_p2), %s1513_s14, 127 }
   0xd   : > { %s2473_s14 = smov (!%p161_p3, %s1513_s14), 127  ;;  %176 = sbr.rel (%p1517_p4) target bundleno = 20 (0x14), region = 32 }
   0xe   : > { %s1514_s15 = sshll.u32 %s2473_s14, 2  ;;  %vm177_vm0 = vcmask (!%p1517_p4), 123904   ;;  %v1881_v0 = vmov (!%p1517_p4), 0.0  }
   0xf   : > { %s1913_s18 = scalar_lea.vmem %s2468_s0, %s1514_s15  ;;  %s1918_s21 = scalar_lea.vmem %s2470_s2, %s1514_s15  ;;  %178 = vst.msk [vmem:[%s2471_s3] sm:$0x3] (!%p1517_p4), %vm177_vm0, %v1881_v0 }
  0x14 PF: > { %v1833_v1 = vld [vmem:[%s2469_s1] sm:$0xff]   ;;  %v1834_v2 = vld [vmem:[%s2469_s1 + $0x8] sm:$0xff]   ;;  %v1835_v3 = vld [vmem:[%s2469_s1 + $0x10] sm:$0xff]   ;;  %vm1044_vm1 = vcmask 125952   ;;  %vm1109_vm2 = vcmask 130048   ;;  %vm1441_vm3 = vcmask 1040384  }
  0x15   : > { %1728 = vmatprep.subr.bf16.mxu0 %v1833_v1  ;;  %1808 = vmatprep.subr.bf16.mxu1 %v1833_v1  ;;  %v1836_v4 = vld [vmem:[%s2469_s1 + $0x18] sm:$0xff]   ;;  %v1841_v5 = vld [vmem:[%s1913_s18] sm:$0xff]   ;;  %v1838_v7 = vld [vmem:[%s2469_s1 + $0x28] sm:$0xff]   ;;  %vm1444_vm4 = vcmask 123904  }
  0x16   : > { %1729 = vmatpush3.bf16.msra.mxu0 %v1833_v1  ;;  %1816 = vmatpush3.bf16.msra.mxu1 %v1833_v1  ;;  %v1837_v6 = vld [vmem:[%s2469_s1 + $0x20] sm:$0xff]   ;;  %v1839_v8 = vld [vmem:[%s2469_s1 + $0x30] sm:$0xff]   ;;  %v1840_v9 = vld [vmem:[%s2469_s1 + $0x38] sm:$0xff]  }
  0x17   : > { %1730 = vmatprep.subr.bf16.mxu0 %v1834_v2  ;;  %1809 = vmatprep.subr.bf16.mxu1 %v1834_v2  ;;  %v1857_v10 = vld [vmem:[%s1913_s18 + $0x80] sm:$0xff]   ;;  %v1842_v11 = vld [vmem:[%s1913_s18 + $0x8] sm:$0xff]   ;;  %v1843_v12 = vld [vmem:[%s1913_s18 + $0x10] sm:$0xff]  }
  0x18   : > { %1744 = vmatprep.mubr.bf16.mxu0 %v1841_v5  ;;  %1776 = vmatprep.mubr.bf16.mxu1 %v1857_v10  ;;  %v1858_v13 = vld [vmem:[%s1913_s18 + $0x88] sm:$0xff]   ;;  %v1859_v14 = vld [vmem:[%s1913_s18 + $0x90] sm:$0xff]   ;;  %v1844_v15 = vld [vmem:[%s1913_s18 + $0x18] sm:$0xff]  }
  0x19   : > { %v1845_v16 = vld [vmem:[%s1913_s18 + $0x20] sm:$0xff]   ;;  %v1860_v17 = vld [vmem:[%s1913_s18 + $0x98] sm:$0xff]   ;;  %v1846_v19 = vld [vmem:[%s1913_s18 + $0x28] sm:$0xff]  }
  0x1a   : > { %1731 = vmatpush3.bf16.msra.mxu0 %v1834_v2  ;;  %1817 = vmatpush3.bf16.msra.mxu1 %v1834_v2  ;;  %v1861_v18 = vld [vmem:[%s1913_s18 + $0xa0] sm:$0xff]   ;;  %v1862_v20 = vld [vmem:[%s1913_s18 + $0xa8] sm:$0xff]   ;;  %v1847_v21 = vld [vmem:[%s1913_s18 + $0x30] sm:$0xff]  }
  0x1b   : > { %1732 = vmatprep.subr.bf16.mxu0 %v1835_v3  ;;  %1810 = vmatprep.subr.bf16.mxu1 %v1835_v3  ;;  %v1863_v22 = vld [vmem:[%s1913_s18 + $0xb0] sm:$0xff]   ;;  %v1848_v23 = vld [vmem:[%s1913_s18 + $0x38] sm:$0xff]   ;;  %v1849_v25 = vld [vmem:[%s1913_s18 + $0x40] sm:$0xff]  }
  0x1c   : > { %v1864_v24 = vld [vmem:[%s1913_s18 + $0xb8] sm:$0xff]   ;;  %v1865_v26 = vld [vmem:[%s1913_s18 + $0xc0] sm:$0xff]   ;;  %v1850_v27 = vld [vmem:[%s1913_s18 + $0x48] sm:$0xff]  }
  0x1d   : > { %v1866_v28 = vld [vmem:[%s1913_s18 + $0xc8] sm:$0xff]   ;;  %v1851_v29 = vld [vmem:[%s1913_s18 + $0x50] sm:$0xff]   ;;  %v1852_v31 = vld [vmem:[%s1913_s18 + $0x58] sm:$0xff]  }
  0x1e   : > { %1733 = vmatpush3.bf16.msra.mxu0 %v1835_v3  ;;  %1818 = vmatpush3.bf16.msra.mxu1 %v1835_v3  ;;  %v1867_v30 = vld [vmem:[%s1913_s18 + $0xd0] sm:$0xff]   ;;  %v1868_v32 = vld [vmem:[%s1913_s18 + $0xd8] sm:$0xff]   ;;  %v1853_v33 = vld [vmem:[%s1913_s18 + $0x60] sm:$0xff]  }
  0x1f   : > { %1734 = vmatprep.subr.bf16.mxu0 %v1836_v4  ;;  %1811 = vmatprep.subr.bf16.mxu1 %v1836_v4  ;;  %v1869_v34 = vld [vmem:[%s1913_s18 + $0xe0] sm:$0xff]   ;;  %v1854_v35 = vld [vmem:[%s1913_s18 + $0x68] sm:$0xff]   ;;  %v1855_v37 = vld [vmem:[%s1913_s18 + $0x70] sm:$0xff]  }
  0x20   : > { %v1870_v36 = vld [vmem:[%s1913_s18 + $0xe8] sm:$0xff]   ;;  %v1871_v38 = vld [vmem:[%s1913_s18 + $0xf0] sm:$0xff]   ;;  %v1856_v39 = vld [vmem:[%s1913_s18 + $0x78] sm:$0xff]  }
  0x21   : > { %v1872_v40 = vld [vmem:[%s1913_s18 + $0xf8] sm:$0xff]  }
  0x22   : > { %1735 = vmatpush3.bf16.msra.mxu0 %v1836_v4  ;;  %1819 = vmatpush3.bf16.msra.mxu1 %v1836_v4 }
  0x23   : > { %1736 = vmatprep.subr.bf16.mxu0 %v1837_v6  ;;  %1812 = vmatprep.subr.bf16.mxu1 %v1837_v6 }
  0x26   : > { %1737 = vmatpush3.bf16.msra.mxu0 %v1837_v6  ;;  %1820 = vmatpush3.bf16.msra.mxu1 %v1837_v6 }
  0x27   : > { %1738 = vmatprep.subr.bf16.mxu0 %v1838_v7  ;;  %1813 = vmatprep.subr.bf16.mxu1 %v1838_v7 }
  0x2a   : > { %1739 = vmatpush3.bf16.msra.mxu0 %v1838_v7  ;;  %1821 = vmatpush3.bf16.msra.mxu1 %v1838_v7 }
  0x2b   : > { %1740 = vmatprep.subr.bf16.mxu0 %v1839_v8  ;;  %1814 = vmatprep.subr.bf16.mxu1 %v1839_v8 }
  0x2e   : > { %1741 = vmatpush3.bf16.msra.mxu0 %v1839_v8  ;;  %1822 = vmatpush3.bf16.msra.mxu1 %v1839_v8 }
  0x2f   : > { %1742 = vmatprep.subr.bf16.mxu0 %v1840_v9  ;;  %1815 = vmatprep.subr.bf16.mxu1 %v1840_v9 }
  0x32   : > { %1743 = vmatpush3.bf16.msra.mxu0 %v1840_v9  ;;  %1823 = vmatpush3.bf16.msra.mxu1 %v1840_v9 }
  0x35   : > { %1745 = vmatmul.mubr.bf16.vlgmr.msra.gmra.mrb[0].mxu0 %v1842_v11  ;;  %1777 = vmatmul.mubr.bf16.vlgmr.msra.gmra.mrb[0].mxu1 %v1858_v13 }
  0x36   : > { %1748 = vmatprep.mubr.bf16.mxu0 %v1843_v12  ;;  %1780 = vmatprep.mubr.bf16.mxu1 %v1859_v14 }
  0x3d   : > { %1749 = vmatmul.mubr.bf16.gmra.mrb[4].mxu0 %v1844_v15  ;;  %1781 = vmatmul.mubr.bf16.gmra.mrb[4].mxu1 %v1860_v17 }
  0x3e   : > { %1752 = vmatprep.mubr.bf16.mxu0 %v1845_v16  ;;  %1784 = vmatprep.mubr.bf16.mxu1 %v1861_v18 }
  0x45   : > { %1753 = vmatmul.mubr.bf16.gmra.mrb[8].mxu0 %v1846_v19  ;;  %1785 = vmatmul.mubr.bf16.gmra.mrb[8].mxu1 %v1862_v20 }
  0x46   : > { %1756 = vmatprep.mubr.bf16.mxu0 %v1847_v21  ;;  %1788 = vmatprep.mubr.bf16.mxu1 %v1863_v22 }
  0x4d   : > { %1757 = vmatmul.mubr.bf16.gmra.mrb[12].mxu0 %v1848_v23  ;;  %1789 = vmatmul.mubr.bf16.gmra.mrb[12].mxu1 %v1864_v24 }
  0x4e   : > { %1760 = vmatprep.mubr.bf16.mxu0 %v1849_v25  ;;  %1792 = vmatprep.mubr.bf16.mxu1 %v1865_v26 }
  0x55   : > { %1761 = vmatmul.mubr.bf16.gmra.mrb[16].mxu0 %v1850_v27  ;;  %1793 = vmatmul.mubr.bf16.gmra.mrb[16].mxu1 %v1866_v28 }
  0x56   : > { %1764 = vmatprep.mubr.bf16.mxu0 %v1851_v29  ;;  %1796 = vmatprep.mubr.bf16.mxu1 %v1867_v30 }
  0x5d   : > { %1765 = vmatmul.mubr.bf16.gmra.mrb[20].mxu0 %v1852_v31  ;;  %1797 = vmatmul.mubr.bf16.gmra.mrb[20].mxu1 %v1868_v32 }
  0x5e   : > { %1768 = vmatprep.mubr.bf16.mxu0 %v1853_v33  ;;  %1800 = vmatprep.mubr.bf16.mxu1 %v1869_v34 }
  0x65   : > { %1769 = vmatmul.mubr.bf16.gmra.mrb[24].mxu0 %v1854_v35  ;;  %1801 = vmatmul.mubr.bf16.gmra.mrb[24].mxu1 %v1870_v36 }
  0x66   : > { %1772 = vmatprep.mubr.bf16.mxu0 %v1855_v37  ;;  %1804 = vmatprep.mubr.bf16.mxu1 %v1871_v38 }
  0x6d   : > { %1773 = vmatmul.mubr.bf16.gmra.mrb[28].mxu0 %v1856_v39  ;;  %1805 = vmatmul.mubr.bf16.gmra.mrb[28].mxu1 %v1872_v40 }
 0x108   : > { %v1746_v41 = vpop.f32.mrb[0].mxu0  ;;  %v1979_v42 = vpop.f32.mrb[0].mxu1 }
 0x109   : > { %v1626_v43 = vpack.c.bf16 %v1746_v41, %v1746_v41  ;;  %v533_v44 = vpop.f32.mrb[1].mxu0  ;;  %v1658_v45 = vpack.c.bf16 %v1979_v42, %v1979_v42  ;;  %v1983_v46 = vpop.f32.mrb[1].mxu1  ;;  %v1245_v51 = vmul.f32 %v1746_v41, %v1746_v41  ;;  %v1113_v62 = vsel %vm1109_vm2, %v1746_v41, 0.0 }
 0x10a   : > { %v1624_v47 = vpack.c.bf16 %v533_v44, %v533_v44  ;;  %v1243_v48 = vmul.f32 %v533_v44, %v533_v44  ;;  %v1747_v49 = vpop.f32.mrb[2].mxu0  ;;  %v1985_v50 = vpop.f32.mrb[2].mxu1  ;;  %v1110_v55 = vsel %vm1109_vm2, %v533_v44, 0.0  ;;  %v1656_v61 = vpack.c.bf16 %v1983_v46, %v1983_v46 }
 0x10b   : > { %1047 = vst.msk [vmem:[%s1918_s21 + $0x8] sm:$0xf] %vm1044_vm1, %v1626_v43  ;;  %v1627_v52 = vpack.c.bf16 %v1747_v49, %v1747_v49  ;;  %v536_v53 = vpop.f32.mrb[3].mxu0  ;;  %1079 = vst.msk [vmem:[%s1918_s21 + $0x88] sm:$0xf] %vm1044_vm1, %v1658_v45  ;;  %v1991_v54 = vpop.f32.mrb[3].mxu1  ;;  %v1246_v59 = vmul.f32 %v1747_v49, %v1747_v49  ;;  %v1659_v1 = vpack.c.bf16 %v1985_v50, %v1985_v50 }
 0x10c   : > { %1045 = vst.msk [vmem:[%s1918_s21] sm:$0xf] %vm1044_vm1, %v1624_v47  ;;  %v1625_v56 = vpack.c.bf16 %v536_v53, %v536_v53  ;;  %v1111_v57 = vsel %vm1109_vm2, %v536_v53, 0.0  ;;  %v1244_v58 = vmul.f32 %v536_v53, %v536_v53  ;;  %v1307_v63 = vsel %vm1109_vm2, %v1243_v48, 0.0  ;;  %1077 = vst.msk [vmem:[%s1918_s21 + $0x80] sm:$0xf] %vm1044_vm1, %v1656_v61 }
 0x10d   : > { %1048 = vst.msk [vmem:[%s1918_s21 + $0xc] sm:$0xf] %vm1044_vm1, %v1627_v52  ;;  %v1112_v60 = vadd.f32 %v1111_v57, %v1110_v55  ;;  %v1310_v4 = vsel %vm1109_vm2, %v1245_v51, 0.0  ;;  %1080 = vst.msk [vmem:[%s1918_s21 + $0x8c] sm:$0xf] %vm1044_vm1, %v1659_v1  ;;  %v1657_v6 = vpack.c.bf16 %v1991_v54, %v1991_v54  ;;  %v1115_v8 = vsel %vm1109_vm2, %v1747_v49, 0.0 }
 0x10e   : > { %1046 = vst.msk [vmem:[%s1918_s21 + $0x4] sm:$0xf] %vm1044_vm1, %v1625_v56  ;;  %v1308_v0 = vsel %vm1109_vm2, %v1244_v58, 0.0  ;;  %v1312_v9 = vsel %vm1109_vm2, %v1246_v59, 0.0 }
 0x10f   : > { %v1114_v2 = vadd.f32 %v1113_v62, %v1112_v60  ;;  %v1309_v3 = vadd.f32 %v1308_v0, %v1307_v63  ;;  %1078 = vst.msk [vmem:[%s1918_s21 + $0x84] sm:$0xf] %vm1044_vm1, %v1657_v6 }
 0x110   : > { %v1750_v5 = vpop.f32.mrb[4].mxu0  ;;  %v2015_v7 = vpop.f32.mrb[4].mxu1 }
 0x111   : > { %v1311_v10 = vadd.f32 %v1310_v4, %v1309_v3  ;;  %v1630_v11 = vpack.c.bf16 %v1750_v5, %v1750_v5  ;;  %v549_v12 = vpop.f32.mrb[5].mxu0  ;;  %v2019_v13 = vpop.f32.mrb[5].mxu1  ;;  %v1116_v15 = vadd.f32 %v1115_v8, %v1114_v2  ;;  %v1249_v27 = vmul.f32 %v1750_v5, %v1750_v5 }
 0x112   : > { %v1628_v14 = vpack.c.bf16 %v549_v12, %v549_v12  ;;  %v1117_v16 = vsel %vm1109_vm2, %v549_v12, 0.0  ;;  %v1247_v17 = vmul.f32 %v549_v12, %v549_v12  ;;  %v1751_v18 = vpop.f32.mrb[6].mxu0  ;;  %v2024_v19 = vpop.f32.mrb[6].mxu1  ;;  %v1662_v32 = vpack.c.bf16 %v2015_v7, %v2015_v7 }
 0x113   : > { %1051 = vst.msk [vmem:[%s1918_s21 + $0x18] sm:$0xf] %vm1044_vm1, %v1630_v11  ;;  %v1313_v20 = vadd.f32 %v1312_v9, %v1311_v10  ;;  %v1631_v21 = vpack.c.bf16 %v1751_v18, %v1751_v18  ;;  %v552_v22 = vpop.f32.mrb[7].mxu0  ;;  %v2028_v23 = vpop.f32.mrb[7].mxu1  ;;  %v1118_v24 = vadd.f32 %v1117_v16, %v1116_v15  ;;  %v1121_v33 = vsel %vm1109_vm2, %v1750_v5, 0.0 }
 0x114   : > { %1049 = vst.msk [vmem:[%s1918_s21 + $0x10] sm:$0xf] %vm1044_vm1, %v1628_v14  ;;  %v1314_v25 = vsel %vm1109_vm2, %v1247_v17, 0.0  ;;  %v1629_v26 = vpack.c.bf16 %v552_v22, %v552_v22  ;;  %v1119_v29 = vsel %vm1109_vm2, %v552_v22, 0.0  ;;  %v1248_v30 = vmul.f32 %v552_v22, %v552_v22  ;;  %1083 = vst.msk [vmem:[%s1918_s21 + $0x98] sm:$0xf] %vm1044_vm1, %v1662_v32 }
 0x115   : > { %v1315_v28 = vadd.f32 %v1314_v25, %v1313_v20  ;;  %1052 = vst.msk [vmem:[%s1918_s21 + $0x1c] sm:$0xf] %vm1044_vm1, %v1631_v21  ;;  %v1120_v31 = vadd.f32 %v1119_v29, %v1118_v24  ;;  %v1250_v34 = vmul.f32 %v1751_v18, %v1751_v18  ;;  %v1660_v36 = vpack.c.bf16 %v2019_v13, %v2019_v13 }
 0x116   : > { %1050 = vst.msk [vmem:[%s1918_s21 + $0x14] sm:$0xf] %vm1044_vm1, %v1629_v26  ;;  %v1316_v35 = vsel %vm1109_vm2, %v1248_v30, 0.0  ;;  %v1318_v41 = vsel %vm1109_vm2, %v1249_v27, 0.0  ;;  %v1123_v43 = vsel %vm1109_vm2, %v1751_v18, 0.0  ;;  %v1663_v6 = vpack.c.bf16 %v2024_v19, %v2024_v19 }
 0x117   : > { %v1122_v37 = vadd.f32 %v1121_v33, %v1120_v31  ;;  %v1317_v38 = vadd.f32 %v1316_v35, %v1315_v28  ;;  %1081 = vst.msk [vmem:[%s1918_s21 + $0x90] sm:$0xf] %vm1044_vm1, %v1660_v36  ;;  %v1320_v56 = vsel %vm1109_vm2, %v1250_v34, 0.0  ;;  %v1661_v15 = vpack.c.bf16 %v2028_v23, %v2028_v23 }
 0x118   : > { %v1754_v39 = vpop.f32.mrb[8].mxu0  ;;  %v2046_v40 = vpop.f32.mrb[8].mxu1  ;;  %1084 = vst.msk [vmem:[%s1918_s21 + $0x9c] sm:$0xf] %vm1044_vm1, %v1663_v6 }
 0x119   : > { %v1634_v44 = vpack.c.bf16 %v1754_v39, %v1754_v39  ;;  %v565_v45 = vpop.f32.mrb[9].mxu0  ;;  %v2052_v47 = vpop.f32.mrb[9].mxu1  ;;  %v1319_v48 = vadd.f32 %v1318_v41, %v1317_v38  ;;  %v1124_v51 = vadd.f32 %v1123_v43, %v1122_v37  ;;  %v1253_v0 = vmul.f32 %v1754_v39, %v1754_v39  ;;  %1082 = vst.msk [vmem:[%s1918_s21 + $0x94] sm:$0xf] %vm1044_vm1, %v1661_v15 }
 0x11a   : > { %v1632_v49 = vpack.c.bf16 %v565_v45, %v565_v45  ;;  %v1125_v52 = vsel %vm1109_vm2, %v565_v45, 0.0  ;;  %v1755_v53 = vpop.f32.mrb[10].mxu0  ;;  %v2055_v55 = vpop.f32.mrb[10].mxu1  ;;  %v1251_v57 = vmul.f32 %v565_v45, %v565_v45  ;;  %v1129_v8 = vsel %vm1109_vm2, %v1754_v39, 0.0 }
 0x11b   : > { %1055 = vst.msk [vmem:[%s1918_s21 + $0x28] sm:$0xf] %vm1044_vm1, %v1634_v44  ;;  %v1635_v58 = vpack.c.bf16 %v1755_v53, %v1755_v53  ;;  %v568_v59 = vpop.f32.mrb[11].mxu0  ;;  %v2060_v60 = vpop.f32.mrb[11].mxu1  ;;  %v1126_v61 = vadd.f32 %v1125_v52, %v1124_v51  ;;  %v1321_v62 = vadd.f32 %v1320_v56, %v1319_v48  ;;  %v1254_v9 = vmul.f32 %v1755_v53, %v1755_v53 }
 0x11c   : > { %1053 = vst.msk [vmem:[%s1918_s21 + $0x20] sm:$0xf] %vm1044_vm1, %v1632_v49  ;;  %v1633_v63 = vpack.c.bf16 %v568_v59, %v568_v59  ;;  %v1322_v1 = vsel %vm1109_vm2, %v1251_v57, 0.0  ;;  %v1127_v2 = vsel %vm1109_vm2, %v568_v59, 0.0  ;;  %v1252_v3 = vmul.f32 %v568_v59, %v568_v59 }
 0x11d   : > { %1056 = vst.msk [vmem:[%s1918_s21 + $0x2c] sm:$0xf] %vm1044_vm1, %v1635_v58  ;;  %v1323_v4 = vadd.f32 %v1322_v1, %v1321_v62  ;;  %v1128_v5 = vadd.f32 %v1127_v2, %v1126_v61  ;;  %v1326_v17 = vsel %vm1109_vm2, %v1253_v0, 0.0  ;;  %v1131_v18 = vsel %vm1109_vm2, %v1755_v53, 0.0 }
 0x11e   : > { %1054 = vst.msk [vmem:[%s1918_s21 + $0x24] sm:$0xf] %vm1044_vm1, %v1633_v63  ;;  %v1324_v10 = vsel %vm1109_vm2, %v1252_v3, 0.0  ;;  %v1328_v30 = vsel %vm1109_vm2, %v1254_v9, 0.0  ;;  %v1666_v48 = vpack.c.bf16 %v2046_v40, %v2046_v40  ;;  %v1664_v58 = vpack.c.bf16 %v2052_v47, %v2052_v47 }
 0x11f   : > { %v1130_v11 = vadd.f32 %v1129_v8, %v1128_v5  ;;  %v1325_v12 = vadd.f32 %v1324_v10, %v1323_v4 }
 0x120   : > { %v1758_v14 = vpop.f32.mrb[12].mxu0  ;;  %v2078_v16 = vpop.f32.mrb[12].mxu1  ;;  %1087 = vst.msk [vmem:[%s1918_s21 + $0xa8] sm:$0xf] %vm1044_vm1, %v1666_v48  ;;  %1085 = vst.msk [vmem:[%s1918_s21 + $0xa0] sm:$0xf] %vm1044_vm1, %v1664_v58 }
 0x121   : > { %v1638_v20 = vpack.c.bf16 %v1758_v14, %v1758_v14  ;;  %v581_v21 = vpop.f32.mrb[13].mxu0  ;;  %v2082_v22 = vpop.f32.mrb[13].mxu1  ;;  %v1327_v24 = vadd.f32 %v1326_v17, %v1325_v12  ;;  %v1132_v26 = vadd.f32 %v1131_v18, %v1130_v11  ;;  %v1257_v38 = vmul.f32 %v1758_v14, %v1758_v14 }
 0x122   : > { %v1636_v25 = vpack.c.bf16 %v581_v21, %v581_v21  ;;  %v1133_v27 = vsel %vm1109_vm2, %v581_v21, 0.0  ;;  %v1759_v28 = vpop.f32.mrb[14].mxu0  ;;  %v2087_v29 = vpop.f32.mrb[14].mxu1  ;;  %v1255_v31 = vmul.f32 %v581_v21, %v581_v21  ;;  %v1137_v49 = vsel %vm1109_vm2, %v1758_v14, 0.0 }
 0x123   : > { %1059 = vst.msk [vmem:[%s1918_s21 + $0x38] sm:$0xf] %vm1044_vm1, %v1638_v20  ;;  %v1639_v32 = vpack.c.bf16 %v1759_v28, %v1759_v28  ;;  %v584_v33 = vpop.f32.mrb[15].mxu0  ;;  %v2092_v34 = vpop.f32.mrb[15].mxu1  ;;  %v1134_v35 = vadd.f32 %v1133_v27, %v1132_v26  ;;  %v1329_v36 = vadd.f32 %v1328_v30, %v1327_v24  ;;  %v1258_v51 = vmul.f32 %v1759_v28, %v1759_v28 }
 0x124   : > { %1057 = vst.msk [vmem:[%s1918_s21 + $0x30] sm:$0xf] %vm1044_vm1, %v1636_v25  ;;  %v1637_v37 = vpack.c.bf16 %v584_v33, %v584_v33  ;;  %v1330_v39 = vsel %vm1109_vm2, %v1255_v31, 0.0  ;;  %v1135_v41 = vsel %vm1109_vm2, %v584_v33, 0.0  ;;  %v1256_v43 = vmul.f32 %v584_v33, %v584_v33 }
 0x125   : > { %1060 = vst.msk [vmem:[%s1918_s21 + $0x3c] sm:$0xf] %vm1044_vm1, %v1639_v32  ;;  %v1331_v44 = vadd.f32 %v1330_v39, %v1329_v36  ;;  %v1136_v45 = vadd.f32 %v1135_v41, %v1134_v35  ;;  %v1334_v61 = vsel %vm1109_vm2, %v1257_v38, 0.0  ;;  %v1139_v62 = vsel %vm1109_vm2, %v1759_v28, 0.0 }
 0x126   : > { %1058 = vst.msk [vmem:[%s1918_s21 + $0x34] sm:$0xf] %vm1044_vm1, %v1637_v37  ;;  %v1332_v52 = vsel %vm1109_vm2, %v1256_v43, 0.0  ;;  %v1336_v9 = vsel %vm1109_vm2, %v1258_v51, 0.0  ;;  %v1667_v28 = vpack.c.bf16 %v2055_v55, %v2055_v55  ;;  %v1665_v37 = vpack.c.bf16 %v2060_v60, %v2060_v60 }
 0x127   : > { %v1138_v53 = vadd.f32 %v1137_v49, %v1136_v45  ;;  %v1333_v56 = vadd.f32 %v1332_v52, %v1331_v44 }
 0x128   : > { %v1762_v57 = vpop.f32.mrb[16].mxu0  ;;  %v2110_v59 = vpop.f32.mrb[16].mxu1  ;;  %1088 = vst.msk [vmem:[%s1918_s21 + $0xac] sm:$0xf] %vm1044_vm1, %v1667_v28  ;;  %1086 = vst.msk [vmem:[%s1918_s21 + $0xa4] sm:$0xf] %vm1044_vm1, %v1665_v37 }
 0x129   : > { %v1642_v63 = vpack.c.bf16 %v1762_v57, %v1762_v57  ;;  %v597_v0 = vpop.f32.mrb[17].mxu0  ;;  %v2114_v1 = vpop.f32.mrb[17].mxu1  ;;  %v1335_v2 = vadd.f32 %v1334_v61, %v1333_v56  ;;  %v1140_v4 = vadd.f32 %v1139_v62, %v1138_v53  ;;  %v1261_v20 = vmul.f32 %v1762_v57, %v1762_v57 }
 0x12a   : > { %v1640_v3 = vpack.c.bf16 %v597_v0, %v597_v0  ;;  %v1141_v5 = vsel %vm1109_vm2, %v597_v0, 0.0  ;;  %v1763_v6 = vpop.f32.mrb[18].mxu0  ;;  %v2119_v8 = vpop.f32.mrb[18].mxu1  ;;  %v1259_v10 = vmul.f32 %v597_v0, %v597_v0  ;;  %v1145_v30 = vsel %vm1109_vm2, %v1762_v57, 0.0 }
 0x12b   : > { %1063 = vst.msk [vmem:[%s1918_s21 + $0x48] sm:$0xf] %vm1044_vm1, %v1642_v63  ;;  %v1643_v11 = vpack.c.bf16 %v1763_v6, %v1763_v6  ;;  %v600_v12 = vpop.f32.mrb[19].mxu0  ;;  %v2124_v14 = vpop.f32.mrb[19].mxu1  ;;  %v1142_v15 = vadd.f32 %v1141_v5, %v1140_v4  ;;  %v1337_v17 = vadd.f32 %v1336_v9, %v1335_v2  ;;  %v1262_v31 = vmul.f32 %v1763_v6, %v1763_v6 }
 0x12c   : > { %1061 = vst.msk [vmem:[%s1918_s21 + $0x40] sm:$0xf] %vm1044_vm1, %v1640_v3  ;;  %v1641_v18 = vpack.c.bf16 %v600_v12, %v600_v12  ;;  %v1338_v21 = vsel %vm1109_vm2, %v1259_v10, 0.0  ;;  %v1143_v24 = vsel %vm1109_vm2, %v600_v12, 0.0  ;;  %v1260_v25 = vmul.f32 %v600_v12, %v600_v12 }
 0x12d   : > { %1064 = vst.msk [vmem:[%s1918_s21 + $0x4c] sm:$0xf] %vm1044_vm1, %v1643_v11  ;;  %v1339_v26 = vadd.f32 %v1338_v21, %v1337_v17  ;;  %v1144_v27 = vadd.f32 %v1143_v24, %v1142_v15  ;;  %v1342_v39 = vsel %vm1109_vm2, %v1261_v20, 0.0  ;;  %v1147_v41 = vsel %vm1109_vm2, %v1763_v6, 0.0 }
 0x12e   : > { %1062 = vst.msk [vmem:[%s1918_s21 + $0x44] sm:$0xf] %vm1044_vm1, %v1641_v18  ;;  %v1340_v32 = vsel %vm1109_vm2, %v1260_v25, 0.0  ;;  %v1344_v57 = vsel %vm1109_vm2, %v1262_v31, 0.0  ;;  %v1670_v12 = vpack.c.bf16 %v2078_v16, %v2078_v16  ;;  %v1668_v25 = vpack.c.bf16 %v2082_v22, %v2082_v22 }
 0x12f   : > { %v1146_v33 = vadd.f32 %v1145_v30, %v1144_v27  ;;  %v1341_v35 = vadd.f32 %v1340_v32, %v1339_v26 }
 0x130   : > { %v1766_v36 = vpop.f32.mrb[20].mxu0  ;;  %v2142_v38 = vpop.f32.mrb[20].mxu1  ;;  %1091 = vst.msk [vmem:[%s1918_s21 + $0xb8] sm:$0xf] %vm1044_vm1, %v1670_v12  ;;  %1089 = vst.msk [vmem:[%s1918_s21 + $0xb0] sm:$0xf] %vm1044_vm1, %v1668_v25 }
 0x131   : > { %v1646_v43 = vpack.c.bf16 %v1766_v36, %v1766_v36  ;;  %v613_v44 = vpop.f32.mrb[21].mxu0  ;;  %v2146_v45 = vpop.f32.mrb[21].mxu1  ;;  %v1343_v48 = vadd.f32 %v1342_v39, %v1341_v35  ;;  %v1148_v51 = vadd.f32 %v1147_v41, %v1146_v33  ;;  %v1265_v4 = vmul.f32 %v1766_v36, %v1766_v36 }
 0x132   : > { %v1644_v49 = vpack.c.bf16 %v613_v44, %v613_v44  ;;  %v1149_v52 = vsel %vm1109_vm2, %v613_v44, 0.0  ;;  %v1767_v53 = vpop.f32.mrb[22].mxu0  ;;  %v2151_v56 = vpop.f32.mrb[22].mxu1  ;;  %v1263_v58 = vmul.f32 %v613_v44, %v613_v44  ;;  %v1153_v15 = vsel %vm1109_vm2, %v1766_v36, 0.0 }
 0x133   : > { %1067 = vst.msk [vmem:[%s1918_s21 + $0x58] sm:$0xf] %vm1044_vm1, %v1646_v43  ;;  %v1647_v61 = vpack.c.bf16 %v1767_v53, %v1767_v53  ;;  %v616_v62 = vpop.f32.mrb[23].mxu0  ;;  %v2156_v63 = vpop.f32.mrb[23].mxu1  ;;  %v1150_v0 = vadd.f32 %v1149_v52, %v1148_v51  ;;  %v1345_v2 = vadd.f32 %v1344_v57, %v1343_v48  ;;  %v1266_v17 = vmul.f32 %v1767_v53, %v1767_v53 }
 0x134   : > { %1065 = vst.msk [vmem:[%s1918_s21 + $0x50] sm:$0xf] %vm1044_vm1, %v1644_v49  ;;  %v1645_v3 = vpack.c.bf16 %v616_v62, %v616_v62  ;;  %v1346_v5 = vsel %vm1109_vm2, %v1263_v58, 0.0  ;;  %v1151_v6 = vsel %vm1109_vm2, %v616_v62, 0.0  ;;  %v1264_v9 = vmul.f32 %v616_v62, %v616_v62 }
 0x135   : > { %1068 = vst.msk [vmem:[%s1918_s21 + $0x5c] sm:$0xf] %vm1044_vm1, %v1647_v61  ;;  %v1347_v10 = vadd.f32 %v1346_v5, %v1345_v2  ;;  %v1152_v11 = vadd.f32 %v1151_v6, %v1150_v0  ;;  %v1350_v27 = vsel %vm1109_vm2, %v1265_v4, 0.0  ;;  %v1155_v28 = vsel %vm1109_vm2, %v1767_v53, 0.0 }
 0x136   : > { %1066 = vst.msk [vmem:[%s1918_s21 + $0x54] sm:$0xf] %vm1044_vm1, %v1645_v3  ;;  %v1348_v18 = vsel %vm1109_vm2, %v1264_v9, 0.0  ;;  %v1352_v43 = vsel %vm1109_vm2, %v1266_v17, 0.0  ;;  %v1671_v4 = vpack.c.bf16 %v2087_v29, %v2087_v29 }
 0x137   : > { %v1154_v20 = vadd.f32 %v1153_v15, %v1152_v11  ;;  %v1349_v21 = vadd.f32 %v1348_v18, %v1347_v10  ;;  %v1669_v15 = vpack.c.bf16 %v2092_v34, %v2092_v34 }
 0x138   : > { %v1770_v24 = vpop.f32.mrb[24].mxu0  ;;  %v2174_v26 = vpop.f32.mrb[24].mxu1  ;;  %1092 = vst.msk [vmem:[%s1918_s21 + $0xbc] sm:$0xf] %vm1044_vm1, %v1671_v4 }
 0x139   : > { %v1650_v30 = vpack.c.bf16 %v1770_v24, %v1770_v24  ;;  %v629_v31 = vpop.f32.mrb[25].mxu0  ;;  %v2178_v32 = vpop.f32.mrb[25].mxu1  ;;  %v1351_v33 = vadd.f32 %v1350_v27, %v1349_v21  ;;  %v1156_v36 = vadd.f32 %v1155_v28, %v1154_v20  ;;  %v1269_v58 = vmul.f32 %v1770_v24, %v1770_v24  ;;  %1090 = vst.msk [vmem:[%s1918_s21 + $0xb4] sm:$0xf] %vm1044_vm1, %v1669_v15 }
 0x13a   : > { %v1648_v35 = vpack.c.bf16 %v629_v31, %v629_v31  ;;  %v1157_v37 = vsel %vm1109_vm2, %v629_v31, 0.0  ;;  %v1771_v39 = vpop.f32.mrb[26].mxu0  ;;  %v2183_v41 = vpop.f32.mrb[26].mxu1  ;;  %v1267_v44 = vmul.f32 %v629_v31, %v629_v31  ;;  %v1161_v5 = vsel %vm1109_vm2, %v1770_v24, 0.0 }
 0x13b   : > { %1071 = vst.msk [vmem:[%s1918_s21 + $0x68] sm:$0xf] %vm1044_vm1, %v1650_v30  ;;  %v1651_v48 = vpack.c.bf16 %v1771_v39, %v1771_v39  ;;  %v632_v49 = vpop.f32.mrb[27].mxu0  ;;  %v2188_v51 = vpop.f32.mrb[27].mxu1  ;;  %v1158_v52 = vadd.f32 %v1157_v37, %v1156_v36  ;;  %v1353_v53 = vadd.f32 %v1352_v43, %v1351_v33  ;;  %v1270_v6 = vmul.f32 %v1771_v39, %v1771_v39 }
 0x13c   : > { %1069 = vst.msk [vmem:[%s1918_s21 + $0x60] sm:$0xf] %vm1044_vm1, %v1648_v35  ;;  %v1649_v57 = vpack.c.bf16 %v632_v49, %v632_v49  ;;  %v1354_v61 = vsel %vm1109_vm2, %v1267_v44, 0.0  ;;  %v1159_v62 = vsel %vm1109_vm2, %v632_v49, 0.0  ;;  %v1268_v0 = vmul.f32 %v632_v49, %v632_v49 }
 0x13d   : > { %1072 = vst.msk [vmem:[%s1918_s21 + $0x6c] sm:$0xf] %vm1044_vm1, %v1651_v48  ;;  %v1355_v2 = vadd.f32 %v1354_v61, %v1353_v53  ;;  %v1160_v3 = vadd.f32 %v1159_v62, %v1158_v52  ;;  %v1358_v18 = vsel %vm1109_vm2, %v1269_v58, 0.0  ;;  %v1163_v20 = vsel %vm1109_vm2, %v1771_v39, 0.0 }
 0x13e   : > { %1070 = vst.msk [vmem:[%s1918_s21 + $0x64] sm:$0xf] %vm1044_vm1, %v1649_v57  ;;  %v1356_v9 = vsel %vm1109_vm2, %v1268_v0, 0.0  ;;  %v1360_v36 = vsel %vm1109_vm2, %v1270_v6, 0.0  ;;  %v1275_v6 = vmul.f32 %v1983_v46, %v1983_v46 }
 0x13f   : > { %v1162_v10 = vadd.f32 %v1161_v5, %v1160_v3  ;;  %v1357_v11 = vadd.f32 %v1356_v9, %v1355_v2  ;;  %v1674_v2 = vpack.c.bf16 %v2110_v59, %v2110_v59 }
 0x140   : > { %v1774_v12 = vpop.f32.mrb[28].mxu0  ;;  %v2206_v17 = vpop.f32.mrb[28].mxu1 }
 0x141   : > { %v1654_v21 = vpack.c.bf16 %v1774_v12, %v1774_v12  ;;  %v645_v24 = vpop.f32.mrb[29].mxu0  ;;  %v2210_v25 = vpop.f32.mrb[29].mxu1  ;;  %v1359_v27 = vadd.f32 %v1358_v18, %v1357_v11  ;;  %v1164_v30 = vadd.f32 %v1163_v20, %v1162_v10  ;;  %v1273_v53 = vmul.f32 %v1774_v12, %v1774_v12  ;;  %1095 = vst.msk [vmem:[%s1918_s21 + $0xc8] sm:$0xf] %vm1044_vm1, %v1674_v2 }
 0x142   : > { %v1652_v28 = vpack.c.bf16 %v645_v24, %v645_v24  ;;  %v1165_v31 = vsel %vm1109_vm2, %v645_v24, 0.0  ;;  %v1775_v33 = vpop.f32.mrb[30].mxu0  ;;  %v2215_v35 = vpop.f32.mrb[30].mxu1  ;;  %v1271_v37 = vmul.f32 %v645_v24, %v645_v24  ;;  %v1169_v3 = vsel %vm1109_vm2, %v1774_v12, 0.0 }
 0x143   : > { %1075 = vst.msk [vmem:[%s1918_s21 + $0x78] sm:$0xf] %vm1044_vm1, %v1654_v21  ;;  %v1655_v39 = vpack.c.bf16 %v1775_v33, %v1775_v33  ;;  %v648_v43 = vpop.f32.mrb[31].mxu0  ;;  %v2220_v44 = vpop.f32.mrb[31].mxu1  ;;  %v1166_v48 = vadd.f32 %v1165_v31, %v1164_v30  ;;  %v1361_v49 = vadd.f32 %v1360_v36, %v1359_v27  ;;  %v1274_v4 = vmul.f32 %v1775_v33, %v1775_v33 }
 0x144   : > { %1073 = vst.msk [vmem:[%s1918_s21 + $0x70] sm:$0xf] %vm1044_vm1, %v1652_v28  ;;  %v1653_v52 = vpack.c.bf16 %v648_v43, %v648_v43  ;;  %v1362_v57 = vsel %vm1109_vm2, %v1271_v37, 0.0  ;;  %v1167_v58 = vsel %vm1109_vm2, %v648_v43, 0.0  ;;  %v1272_v61 = vmul.f32 %v648_v43, %v648_v43 }
 0x145   : > { %1076 = vst.msk [vmem:[%s1918_s21 + $0x7c] sm:$0xf] %vm1044_vm1, %v1655_v39  ;;  %v1363_v62 = vadd.f32 %v1362_v57, %v1361_v49  ;;  %v1168_v0 = vadd.f32 %v1167_v58, %v1166_v48  ;;  %v1672_v11 = vpack.c.bf16 %v2114_v1, %v2114_v1  ;;  %v1366_v15 = vsel %vm1109_vm2, %v1273_v53, 0.0 }
 0x146   : > { %1074 = vst.msk [vmem:[%s1918_s21 + $0x74] sm:$0xf] %vm1044_vm1, %v1653_v52  ;;  %v1364_v5 = vsel %vm1109_vm2, %v1272_v61, 0.0  ;;  %v1171_v18 = vsel %vm1109_vm2, %v1775_v33, 0.0  ;;  %v1173_v12 = vsel %vm1109_vm2, %v1983_v46, 0.0  ;;  %v1675_v20 = vpack.c.bf16 %v2119_v8, %v2119_v8 }
 0x147   : > { %v1170_v9 = vadd.f32 %v1169_v3, %v1168_v0  ;;  %v1365_v10 = vadd.f32 %v1364_v5, %v1363_v62  ;;  %1093 = vst.msk [vmem:[%s1918_s21 + $0xc0] sm:$0xf] %vm1044_vm1, %v1672_v11  ;;  %v1673_v27 = vpack.c.bf16 %v2124_v14, %v2124_v14  ;;  %v1368_v28 = vsel %vm1109_vm2, %v1274_v4, 0.0 }
 0x148   : > { %v1370_v30 = vsel %vm1109_vm2, %v1275_v6, 0.0  ;;  %v1276_v31 = vmul.f32 %v1991_v54, %v1991_v54  ;;  %1096 = vst.msk [vmem:[%s1918_s21 + $0xcc] sm:$0xf] %vm1044_vm1, %v1675_v20  ;;  %v1678_v46 = vpack.c.bf16 %v2142_v38, %v2142_v38  ;;  %v1277_v37 = vmul.f32 %v1979_v42, %v1979_v42 }
 0x149   : > { %v1367_v21 = vadd.f32 %v1366_v15, %v1365_v10  ;;  %v1172_v24 = vadd.f32 %v1171_v18, %v1170_v9  ;;  %1094 = vst.msk [vmem:[%s1918_s21 + $0xc4] sm:$0xf] %vm1044_vm1, %v1673_v27  ;;  %v1175_v39 = vsel %vm1109_vm2, %v1991_v54, 0.0  ;;  %v1676_v43 = vpack.c.bf16 %v2146_v45, %v2146_v45 }
 0x14a   : > { %1099 = vst.msk [vmem:[%s1918_s21 + $0xd8] sm:$0xf] %vm1044_vm1, %v1678_v46  ;;  %v1177_v48 = vsel %vm1109_vm2, %v1979_v42, 0.0  ;;  %v1679_v53 = vpack.c.bf16 %v2151_v56, %v2151_v56  ;;  %v1278_v57 = vmul.f32 %v1985_v50, %v1985_v50  ;;  %v1372_v58 = vsel %vm1109_vm2, %v1276_v31, 0.0 }
 0x14b   : > { %v1174_v33 = vadd.f32 %v1173_v12, %v1172_v24  ;;  %v1369_v36 = vadd.f32 %v1368_v28, %v1367_v21  ;;  %v1279_v54 = vmul.f32 %v2019_v13, %v2019_v13  ;;  %1097 = vst.msk [vmem:[%s1918_s21 + $0xd0] sm:$0xf] %vm1044_vm1, %v1676_v43  ;;  %v1677_v61 = vpack.c.bf16 %v2156_v63, %v2156_v63 }
 0x14c   : > { %1100 = vst.msk [vmem:[%s1918_s21 + $0xdc] sm:$0xf] %vm1044_vm1, %v1679_v53  ;;  %v1374_v0 = vsel %vm1109_vm2, %v1277_v37, 0.0  ;;  %v1179_v2 = vsel %vm1109_vm2, %v1985_v50, 0.0  ;;  %v1181_v3 = vsel %vm1109_vm2, %v2019_v13, 0.0  ;;  %v1682_v4 = vpack.c.bf16 %v2174_v26, %v2174_v26 }
 0x14d   : > { %v1371_v49 = vadd.f32 %v1370_v30, %v1369_v36  ;;  %v1176_v52 = vadd.f32 %v1175_v39, %v1174_v33  ;;  %1098 = vst.msk [vmem:[%s1918_s21 + $0xd4] sm:$0xf] %vm1044_vm1, %v1677_v61  ;;  %v1680_v9 = vpack.c.bf16 %v2178_v32, %v2178_v32  ;;  %v1376_v10 = vsel %vm1109_vm2, %v1278_v57, 0.0 }
 0x14e   : > { %v1378_v11 = vsel %vm1109_vm2, %v1279_v54, 0.0  ;;  %v1280_v50 = vmul.f32 %v2028_v23, %v2028_v23  ;;  %1103 = vst.msk [vmem:[%s1918_s21 + $0xe8] sm:$0xf] %vm1044_vm1, %v1682_v4  ;;  %v1683_v13 = vpack.c.bf16 %v2183_v41, %v2183_v41  ;;  %v1281_v12 = vmul.f32 %v2015_v7, %v2015_v7 }
 0x14f   : > { %v1178_v42 = vadd.f32 %v1177_v48, %v1176_v52  ;;  %v1373_v62 = vadd.f32 %v1372_v58, %v1371_v49  ;;  %1101 = vst.msk [vmem:[%s1918_s21 + $0xe0] sm:$0xf] %vm1044_vm1, %v1680_v9  ;;  %v1183_v20 = vsel %vm1109_vm2, %v2028_v23, 0.0  ;;  %v1681_v21 = vpack.c.bf16 %v2188_v51, %v2188_v51 }
 0x150   : > { %1104 = vst.msk [vmem:[%s1918_s21 + $0xec] sm:$0xf] %vm1044_vm1, %v1683_v13  ;;  %v1185_v24 = vsel %vm1109_vm2, %v2015_v7, 0.0  ;;  %v1686_v30 = vpack.c.bf16 %v2206_v17, %v2206_v17  ;;  %v1282_v31 = vmul.f32 %v2024_v19, %v2024_v19  ;;  %v1380_v46 = vsel %vm1109_vm2, %v1280_v50, 0.0 }
 0x151   : > { %v1375_v5 = vadd.f32 %v1374_v0, %v1373_v62  ;;  %v1180_v6 = vadd.f32 %v1179_v2, %v1178_v42  ;;  %v1283_v23 = vmul.f32 %v2052_v47, %v2052_v47  ;;  %1102 = vst.msk [vmem:[%s1918_s21 + $0xe4] sm:$0xf] %vm1044_vm1, %v1681_v21  ;;  %v1684_v33 = vpack.c.bf16 %v2210_v25, %v2210_v25 }
 0x152   : > { %1107 = vst.msk [vmem:[%s1918_s21 + $0xf8] sm:$0xf] %vm1044_vm1, %v1686_v30  ;;  %v1382_v37 = vsel %vm1109_vm2, %v1281_v12, 0.0  ;;  %v1187_v39 = vsel %vm1109_vm2, %v2024_v19, 0.0  ;;  %v1189_v43 = vsel %vm1109_vm2, %v2052_v47, 0.0  ;;  %v1687_v48 = vpack.c.bf16 %v2215_v35, %v2215_v35 }
 0x153   : > { %v1182_v15 = vadd.f32 %v1181_v3, %v1180_v6  ;;  %v1377_v18 = vadd.f32 %v1376_v10, %v1375_v5  ;;  %1105 = vst.msk [vmem:[%s1918_s21 + $0xf0] sm:$0xf] %vm1044_vm1, %v1684_v33  ;;  %v1685_v53 = vpack.c.bf16 %v2220_v44, %v2220_v44  ;;  %v1384_v57 = vsel %vm1109_vm2, %v1282_v31, 0.0 }
 0x154   : > { %v1386_v58 = vsel %vm1109_vm2, %v1283_v23, 0.0  ;;  %v1284_v19 = vmul.f32 %v2060_v60, %v2060_v60  ;;  %1108 = vst.msk [vmem:[%s1918_s21 + $0xfc] sm:$0xf] %vm1044_vm1, %v1687_v48  ;;  %v1285_v61 = vmul.f32 %v2046_v40, %v2046_v40  ;;  %v1191_v42 = vsel %vm1109_vm2, %v2060_v60, 0.0 }
 0x155   : > { %v1379_v27 = vadd.f32 %v1378_v11, %v1377_v18  ;;  %v1184_v28 = vadd.f32 %v1183_v20, %v1182_v15  ;;  %1106 = vst.msk [vmem:[%s1918_s21 + $0xf4] sm:$0xf] %vm1044_vm1, %v1685_v53  ;;  %v1193_v2 = vsel %vm1109_vm2, %v2046_v40, 0.0  ;;  %v1286_v3 = vmul.f32 %v2055_v55, %v2055_v55 }
 0x156   : > { %v1388_v4 = vsel %vm1109_vm2, %v1284_v19, 0.0  ;;  %v1287_v5 = vmul.f32 %v2082_v22, %v2082_v22  ;;  %v1390_v10 = vsel %vm1109_vm2, %v1285_v61, 0.0  ;;  %v1195_v60 = vsel %vm1109_vm2, %v2055_v55, 0.0 }
 0x157   : > { %v1186_v7 = vadd.f32 %v1185_v24, %v1184_v28  ;;  %v1381_v36 = vadd.f32 %v1380_v46, %v1379_v27  ;;  %v1197_v11 = vsel %vm1109_vm2, %v2082_v22, 0.0  ;;  %v1392_v13 = vsel %vm1109_vm2, %v1286_v3, 0.0 }
 0x158   : > { %v1394_v15 = vsel %vm1109_vm2, %v1287_v5, 0.0  ;;  %v1288_v18 = vmul.f32 %v2092_v34, %v2092_v34  ;;  %v1289_v21 = vmul.f32 %v2078_v16, %v2078_v16  ;;  %v1199_v55 = vsel %vm1109_vm2, %v2092_v34, 0.0 }
 0x159   : > { %v1383_v49 = vadd.f32 %v1382_v37, %v1381_v36  ;;  %v1188_v52 = vadd.f32 %v1187_v39, %v1186_v7  ;;  %v1201_v22 = vsel %vm1109_vm2, %v2078_v16, 0.0  ;;  %v1290_v28 = vmul.f32 %v2087_v29, %v2087_v29 }
 0x15a   : > { %v1396_v30 = vsel %vm1109_vm2, %v1288_v18, 0.0  ;;  %v1291_v31 = vmul.f32 %v2114_v1, %v2114_v1  ;;  %v1398_v33 = vsel %vm1109_vm2, %v1289_v21, 0.0  ;;  %v1203_v34 = vsel %vm1109_vm2, %v2087_v29, 0.0 }
 0x15b   : > { %v1190_v47 = vadd.f32 %v1189_v43, %v1188_v52  ;;  %v1385_v54 = vadd.f32 %v1384_v57, %v1383_v49  ;;  %v1205_v7 = vsel %vm1109_vm2, %v2114_v1, 0.0  ;;  %v1400_v37 = vsel %vm1109_vm2, %v1290_v28, 0.0 }
 0x15c   : > { %v1402_v39 = vsel %vm1109_vm2, %v1291_v31, 0.0  ;;  %v1292_v43 = vmul.f32 %v2124_v14, %v2124_v14  ;;  %v1293_v52 = vmul.f32 %v2110_v59, %v2110_v59  ;;  %v1207_v29 = vsel %vm1109_vm2, %v2124_v14, 0.0 }
 0x15d   : > { %v1387_v62 = vadd.f32 %v1386_v58, %v1385_v54  ;;  %v1192_v0 = vadd.f32 %v1191_v42, %v1190_v47  ;;  %v1209_v1 = vsel %vm1109_vm2, %v2110_v59, 0.0  ;;  %v1294_v58 = vmul.f32 %v2119_v8, %v2119_v8 }
 0x15e   : > { %v1404_v19 = vsel %vm1109_vm2, %v1292_v43, 0.0  ;;  %v1295_v47 = vmul.f32 %v2146_v45, %v2146_v45  ;;  %v1406_v42 = vsel %vm1109_vm2, %v1293_v52, 0.0  ;;  %v1211_v14 = vsel %vm1109_vm2, %v2119_v8, 0.0 }
 0x15f   : > { %v1194_v6 = vadd.f32 %v1193_v2, %v1192_v0  ;;  %v1389_v9 = vadd.f32 %v1388_v4, %v1387_v62  ;;  %v1213_v62 = vsel %vm1109_vm2, %v2146_v45, 0.0  ;;  %v1408_v2 = vsel %vm1109_vm2, %v1294_v58, 0.0 }
 0x160   : > { %v1410_v3 = vsel %vm1109_vm2, %v1295_v47, 0.0  ;;  %v1296_v4 = vmul.f32 %v2156_v63, %v2156_v63  ;;  %v1215_v8 = vsel %vm1109_vm2, %v2156_v63, 0.0  ;;  %v1217_v45 = vsel %vm1109_vm2, %v2142_v38, 0.0 }
 0x161   : > { %v1391_v50 = vadd.f32 %v1390_v10, %v1389_v9  ;;  %v1196_v40 = vadd.f32 %v1195_v60, %v1194_v6  ;;  %v1297_v9 = vmul.f32 %v2142_v38, %v2142_v38  ;;  %v1219_v63 = vsel %vm1109_vm2, %v2151_v56, 0.0 }
 0x162   : > { %v1301_v28 = vmul.f32 %v2174_v26, %v2174_v26 }
 0x163   : > { %v1198_v12 = vadd.f32 %v1197_v11, %v1196_v40  ;;  %v1393_v20 = vadd.f32 %v1392_v13, %v1391_v50  ;;  %v1298_v11 = vmul.f32 %v2151_v56, %v2151_v56  ;;  %v1412_v50 = vsel %vm1109_vm2, %v1296_v4, 0.0 }
 0x164   : > { %v1299_v40 = vmul.f32 %v2178_v32, %v2178_v32  ;;  %v1414_v18 = vsel %vm1109_vm2, %v1297_v9, 0.0  ;;  %v1223_v56 = vsel %vm1109_vm2, %v2188_v51, 0.0 }
 0x165   : > { %v1395_v24 = vadd.f32 %v1394_v15, %v1393_v20  ;;  %v1200_v27 = vadd.f32 %v1199_v55, %v1198_v12  ;;  %v1221_v12 = vsel %vm1109_vm2, %v2178_v32, 0.0  ;;  %v1416_v21 = vsel %vm1109_vm2, %v1298_v11, 0.0 }
 0x166   : > { %v1418_v55 = vsel %vm1109_vm2, %v1299_v40, 0.0  ;;  %v1225_v32 = vsel %vm1109_vm2, %v2174_v26, 0.0 }
 0x167   : > { %v1202_v46 = vadd.f32 %v1201_v22, %v1200_v27  ;;  %v1397_v23 = vadd.f32 %v1396_v30, %v1395_v24  ;;  %v1300_v24 = vmul.f32 %v2188_v51, %v2188_v51  ;;  %v1227_v51 = vsel %vm1109_vm2, %v2183_v41, 0.0 }
 0x169   : > { %v1399_v36 = vadd.f32 %v1398_v33, %v1397_v23  ;;  %v1204_v16 = vadd.f32 %v1203_v34, %v1202_v46  ;;  %v1302_v46 = vmul.f32 %v2183_v41, %v2183_v41  ;;  %v1420_v23 = vsel %vm1109_vm2, %v1300_v24, 0.0 }
 0x16a   : > { %v1303_v33 = vmul.f32 %v2210_v25, %v2210_v25  ;;  %v1231_v41 = vsel %vm1109_vm2, %v2220_v44, 0.0 }
 0x16b   : > { %v1206_v48 = vadd.f32 %v1205_v7, %v1204_v16  ;;  %v1401_v49 = vadd.f32 %v1400_v37, %v1399_v36  ;;  %v1422_v36 = vsel %vm1109_vm2, %v1301_v28, 0.0  ;;  %v1229_v16 = vsel %vm1109_vm2, %v2210_v25, 0.0 }
 0x16c   : > { %v1426_v43 = vsel %vm1109_vm2, %v1303_v33, 0.0  ;;  %v1233_v25 = vsel %vm1109_vm2, %v2206_v17, 0.0 }
 0x16d   : > { %v1403_v53 = vadd.f32 %v1402_v39, %v1401_v49  ;;  %v1208_v57 = vadd.f32 %v1207_v29, %v1206_v48  ;;  %v1424_v39 = vsel %vm1109_vm2, %v1302_v46, 0.0  ;;  %v1304_v48 = vmul.f32 %v2220_v44, %v2220_v44 }
 0x16e   : > { %v1305_v29 = vmul.f32 %v2206_v17, %v2206_v17 }
 0x16f   : > { %v1210_v54 = vadd.f32 %v1209_v1, %v1208_v57  ;;  %v1405_v61 = vadd.f32 %v1404_v19, %v1403_v53  ;;  %v1306_v1 = vmul.f32 %v2215_v35, %v2215_v35  ;;  %v1428_v58 = vsel %vm1109_vm2, %v1304_v48, 0.0 }
 0x171   : > { %v1407_v0 = vadd.f32 %v1406_v42, %v1405_v61  ;;  %v1212_v59 = vadd.f32 %v1211_v14, %v1210_v54  ;;  %v1430_v54 = vsel %vm1109_vm2, %v1305_v29, 0.0  ;;  %v1235_v61 = vsel %vm1109_vm2, %v2215_v35, 0.0  ;;  %v1440_v35 = vld [vmem:[%s2471_s3] sm:$0x3] }
 0x172   : > { %v1432_v44 = vsel %vm1109_vm2, %v1306_v1, 0.0 }
 0x173   : > { %v1214_v5 = vadd.f32 %v1213_v62, %v1212_v59  ;;  %v1409_v6 = vadd.f32 %v1408_v2, %v1407_v0 }
 0x175   : > { %v1411_v10 = vadd.f32 %v1410_v3, %v1409_v6  ;;  %v1216_v60 = vadd.f32 %v1215_v8, %v1214_v5 }
 0x177   : > { %v1218_v13 = vadd.f32 %v1217_v45, %v1216_v60  ;;  %v1413_v15 = vadd.f32 %v1412_v50, %v1411_v10 }
 0x179   : > { %v1415_v20 = vadd.f32 %v1414_v18, %v1413_v15  ;;  %v1220_v38 = vadd.f32 %v1219_v63, %v1218_v13 }
 0x17b   : > { %v1222_v27 = vadd.f32 %v1221_v12, %v1220_v38  ;;  %v1417_v22 = vadd.f32 %v1416_v21, %v1415_v20 }
 0x17d   : > { %v1419_v30 = vadd.f32 %v1418_v55, %v1417_v22  ;;  %v1224_v31 = vadd.f32 %v1223_v56, %v1222_v27 }
 0x17f   : > { %v1226_v34 = vadd.f32 %v1225_v32, %v1224_v31  ;;  %v1421_v7 = vadd.f32 %v1420_v23, %v1419_v30 }
 0x181   : > { %v1423_v37 = vadd.f32 %v1422_v36, %v1421_v7  ;;  %v1228_v26 = vadd.f32 %v1227_v51, %v1226_v34 }
 0x183   : > { %v1230_v49 = vadd.f32 %v1229_v16, %v1228_v26  ;;  %v1425_v52 = vadd.f32 %v1424_v39, %v1423_v37 }
 0x185   : > { %v1427_v53 = vadd.f32 %v1426_v43, %v1425_v52  ;;  %v1232_v57 = vadd.f32 %v1231_v41, %v1230_v49 }
 0x187   : > { %v1234_v19 = vadd.f32 %v1233_v25, %v1232_v57  ;;  %v1429_v47 = vadd.f32 %v1428_v58, %v1427_v53 }
 0x189   : > { %v1236_v42 = vadd.f32 %v1235_v61, %v1234_v19  ;;  %v1431_v14 = vadd.f32 %v1430_v54, %v1429_v47 }
 0x18b   : > { %v1237_v62 = vrot.slane %v1236_v42, 4  ;;  %v1433_v0 = vadd.f32 %v1432_v44, %v1431_v14 }
 0x18d   : > { %v1238_v59 = vadd.f32 %v1237_v62, %v1236_v42  ;;  %v1434_v17 = vrot.slane %v1433_v0, 4 }
 0x18f   : > { %v1239_v2 = vrot.slane %v1238_v59, 2  ;;  %v1435_v3 = vadd.f32 %v1434_v17, %v1433_v0 }
 0x191   : > { %v1240_v4 = vadd.f32 %v1239_v2, %v1238_v59  ;;  %v1436_v5 = vrot.slane %v1435_v3, 2 }
 0x193   : > { %v1241_v6 = vrot.slane %v1240_v4, 1  ;;  %v1437_v9 = vadd.f32 %v1436_v5, %v1435_v3 }
 0x195   : > { %v1438_v8 = vrot.slane %v1437_v9, 1  ;;  %v1242_v10 = vadd.f32 %v1241_v6, %v1240_v4 }
 0x197   : > { %v1439_v60 = vadd.f32 %v1438_v8, %v1437_v9 }
 0x199   : > { %v1442_v45 = vsel %vm1441_vm3, %v1242_v10, %v1439_v60 }
 0x19a   : > { %v1443_v11 = vadd.f32 %v1442_v45, %v1440_v35 }
 0x19c   : > { %1445 = vst.msk [vmem:[%s2471_s3] sm:$0x3] %vm1444_vm4, %v1443_v11 }
 0x19d PF: > { %s14_s12 = sadd.s32 1, %s1879_s12  }
 0x19e   : > { %p11_p5 = scmp.ge.s32.totalorder %s14_s12, 4  }
 0x1a0   :  { %13 = sbr.rel (!%p11_p5) target bundleno = 1 (0x1), region = 70 }

// kernel: a_call__.7
= control target key start
LH: loop header
LB: loop body
LE: loop exit
PB: predicated region body
PF: predicated region fallthrough
CT: control target
= control target key end

     0   :  { %s1351_s12 = smov 0   ;;  %s1681_s0 = inlined_call_operand.vmem [shape: bf16[1024,16], index: 0, kind: input, shape index: {}]   ;;  %s1682_s1 = inlined_call_operand.vmem [shape: f32[1,16], index: 1, kind: input, shape index: {}]   ;;  %s1683_s2 = inlined_call_operand.vmem [shape: f32[1,16], index: 2, kind: input, shape index: {}]   ;;  %s1684_s3 = inlined_call_operand.vmem [shape: bf16[1024,16], index: 3, kind: output, shape index: {}]  }
   0x1 LB: > { %s1013_s13 = sadd.s32 4294967295, %s1329_s12   ;;  %p1017_p0 = scmp.ge.s32.totalorder %s1329_s12, 1  ;;  %s1329_s12 = sphi %s1351_s12, %s13_s12  }
   0x2   : > { %p138_p1 = scmp.lt.s32.totalorder %s1329_s12, 3 }
   0x4   : > { %p139_p2 = pnand %p1017_p0, %p138_p1 }
   0x5   : > { %s1018_s14 = sshll.u32 (!%p139_p2), %s1013_s13, 6  ;;  %v1372_v0 = vld [vmem:[%s1682_s1] ss:$0 sm:$0xff] (!%p139_p2)  ;;  %vm892_vm0 = vcmask (!%p139_p2), 125952  }
   0x6   : > { %142 = sbr.rel (%p139_p2) target bundleno = 135 (0x87), region = 32  ;;  %p163_p3 = scmp.lt.s32.totalorder (!%p139_p2), %s1018_s14, 127  ;;  %v1381_v9 = vld [vmem:[%s1683_s2] ss:$0 sm:$0xff] (!%p139_p2) }
   0xd   : > { %s1686_s14 = smov (!%p163_p3, %s1018_s14), 127 }
   0xe   : > { %s1019_s15 = sshll.u32 %s1686_s14, 2 }
   0xf   : > { %s1367_s18 = scalar_lea.vmem %s1681_s0, %s1019_s15  ;;  %s1404_s25 = scalar_lea.vmem %s1684_s3, %s1019_s15 }
  0x10   : > { %v1155_v1 = vld [vmem:[%s1367_s18] sm:$0xff]   ;;  %v1282_v2 = vld [vmem:[%s1367_s18 + $0x8] sm:$0xff]   ;;  %v1283_v3 = vld [vmem:[%s1367_s18 + $0x10] sm:$0xff]  }
  0x11   : > { %v1156_v4 = vunpack.c.l.bf16 %v1155_v1  ;;  %v1157_v5 = vunpack.c.h.bf16 %v1155_v1  ;;  %v1160_v6 = vunpack.c.l.bf16 %v1282_v2  ;;  %v1161_v7 = vunpack.c.h.bf16 %v1282_v2  ;;  %v1284_v8 = vld [vmem:[%s1367_s18 + $0x18] sm:$0xff]   ;;  %v1285_v41 = vld [vmem:[%s1367_s18 + $0x20] sm:$0xff]   ;;  %v1286_v45 = vld [vmem:[%s1367_s18 + $0x28] sm:$0xff]  }
  0x12   : > { %v1164_v10 = vunpack.c.l.bf16 %v1283_v3  ;;  %v1165_v11 = vunpack.c.h.bf16 %v1283_v3  ;;  %v1168_v12 = vunpack.c.l.bf16 %v1284_v8  ;;  %v1169_v13 = vunpack.c.h.bf16 %v1284_v8  ;;  %v1287_v56 = vld [vmem:[%s1367_s18 + $0x30] sm:$0xff]   ;;  %v1288_v57 = vld [vmem:[%s1367_s18 + $0x38] sm:$0xff]  }
  0x13   : > { %v309_v14 = vmul.f32 %v1156_v4, %v1372_v0  ;;  %v310_v15 = vmul.f32 %v1157_v5, %v1372_v0  ;;  %v311_v16 = vmul.f32 %v1160_v6, %v1372_v0  ;;  %v312_v17 = vmul.f32 %v1161_v7, %v1372_v0 }
  0x14   : > { %v313_v18 = vmul.f32 %v1164_v10, %v1372_v0  ;;  %v314_v19 = vmul.f32 %v1165_v11, %v1372_v0  ;;  %v315_v20 = vmul.f32 %v1168_v12, %v1372_v0  ;;  %v316_v21 = vmul.f32 %v1169_v13, %v1372_v0 }
  0x15   : > { %v380_v22 = vadd.f32 %v1381_v9, %v309_v14  ;;  %v381_v23 = vadd.f32 %v1381_v9, %v310_v15  ;;  %v382_v24 = vadd.f32 %v1381_v9, %v311_v16  ;;  %v383_v25 = vadd.f32 %v1381_v9, %v312_v17 }
  0x16   : > { %v384_v26 = vadd.f32 %v1381_v9, %v313_v18  ;;  %v385_v27 = vadd.f32 %v1381_v9, %v314_v19  ;;  %v386_v28 = vadd.f32 %v1381_v9, %v315_v20  ;;  %v387_v29 = vadd.f32 %v1381_v9, %v316_v21 }
  0x17   : > { %vm444_vm1 = vcmp.gt.f32.partialorder %v380_v22, 0.0  ;;  %v508_v30 = vmul.f32 0.2, %v380_v22  ;;  %vm445_vm2 = vcmp.gt.f32.partialorder %v381_v23, 0.0  ;;  %v509_v31 = vmul.f32 0.2, %v381_v23 }
  0x18   : > { %vm446_vm3 = vcmp.gt.f32.partialorder %v382_v24, 0.0  ;;  %v510_v32 = vmul.f32 0.2, %v382_v24  ;;  %vm447_vm4 = vcmp.gt.f32.partialorder %v383_v25, 0.0  ;;  %v511_v33 = vmul.f32 0.2, %v383_v25 }
  0x19   : > { %v572_v34 = vsel %vm444_vm1, %v380_v22, %v508_v30  ;;  %v573_v35 = vsel %vm445_vm2, %v381_v23, %v509_v31  ;;  %vm448_vm5 = vcmp.gt.f32.partialorder %v384_v26, 0.0  ;;  %v512_v36 = vmul.f32 0.2, %v384_v26 }
  0x1a   : > { %v1090_v37 = vpack.c.bf16 %v572_v34, %v572_v34  ;;  %v1091_v38 = vpack.c.bf16 %v573_v35, %v573_v35  ;;  %v574_v39 = vsel %vm446_vm3, %v382_v24, %v510_v32  ;;  %v575_v40 = vsel %vm447_vm4, %v383_v25, %v511_v33  ;;  %v1289_v24 = vld [vmem:[%s1367_s18 + $0x40] sm:$0xff]  }
  0x1b   : > { %v1092_v42 = vpack.c.bf16 %v574_v39, %v574_v39  ;;  %v1093_v43 = vpack.c.bf16 %v575_v40, %v575_v40  ;;  %v576_v44 = vsel %vm448_vm5, %v384_v26, %v512_v36  ;;  %vm449_vm6 = vcmp.gt.f32.partialorder %v385_v27, 0.0 }
  0x1c   : > { %893 = vst.msk [vmem:[%s1404_s25] sm:$0xf] %vm892_vm0, %v1090_v37  ;;  %894 = vst.msk [vmem:[%s1404_s25 + $0x4] sm:$0xf] %vm892_vm0, %v1091_v38  ;;  %v1094_v46 = vpack.c.bf16 %v576_v44, %v576_v44  ;;  %v513_v47 = vmul.f32 0.2, %v385_v27  ;;  %v1172_v50 = vunpack.c.l.bf16 %v1285_v41  ;;  %v1173_v51 = vunpack.c.h.bf16 %v1285_v41 }
  0x1d   : > { %vm450_vm7 = vcmp.gt.f32.partialorder %v386_v28, 0.0  ;;  %v514_v48 = vmul.f32 0.2, %v386_v28  ;;  %895 = vst.msk [vmem:[%s1404_s25 + $0x8] sm:$0xf] %vm892_vm0, %v1092_v42  ;;  %vm451_vm8 = vcmp.gt.f32.partialorder %v387_v29, 0.0  ;;  %v1176_v54 = vunpack.c.l.bf16 %v1286_v45 }
  0x1e   : > { %896 = vst.msk [vmem:[%s1404_s25 + $0xc] sm:$0xf] %vm892_vm0, %v1093_v43  ;;  %v515_v49 = vmul.f32 0.2, %v387_v29  ;;  %897 = vst.msk [vmem:[%s1404_s25 + $0x10] sm:$0xf] %vm892_vm0, %v1094_v46  ;;  %v577_v52 = vsel %vm449_vm6, %v385_v27, %v513_v47  ;;  %v1177_v55 = vunpack.c.h.bf16 %v1286_v45  ;;  %v317_v61 = vmul.f32 %v1172_v50, %v1372_v0 }
  0x1f   : > { %v578_v53 = vsel %vm450_vm7, %v386_v28, %v514_v48  ;;  %v1095_v58 = vpack.c.bf16 %v577_v52, %v577_v52  ;;  %v318_v63 = vmul.f32 %v1173_v51, %v1372_v0  ;;  %v319_v1 = vmul.f32 %v1176_v54, %v1372_v0  ;;  %v1290_v28 = vld [vmem:[%s1367_s18 + $0x48] sm:$0xff]   ;;  %v1291_v48 = vld [vmem:[%s1367_s18 + $0x50] sm:$0xff]  }
  0x20   : > { %v1096_v59 = vpack.c.bf16 %v578_v53, %v578_v53  ;;  %v579_v60 = vsel %vm451_vm8, %v387_v29, %v515_v49  ;;  %v320_v2 = vmul.f32 %v1177_v55, %v1372_v0  ;;  %v388_v3 = vadd.f32 %v1381_v9, %v317_v61 }
  0x21   : > { %v1097_v62 = vpack.c.bf16 %v579_v60, %v579_v60  ;;  %898 = vst.msk [vmem:[%s1404_s25 + $0x14] sm:$0xf] %vm892_vm0, %v1095_v58  ;;  %v1180_v4 = vunpack.c.l.bf16 %v1287_v56  ;;  %v1181_v5 = vunpack.c.h.bf16 %v1287_v56  ;;  %v1184_v6 = vunpack.c.l.bf16 %v1288_v57 }
  0x22   : > { %899 = vst.msk [vmem:[%s1404_s25 + $0x18] sm:$0xf] %vm892_vm0, %v1096_v59  ;;  %v389_v7 = vadd.f32 %v1381_v9, %v318_v63  ;;  %v390_v8 = vadd.f32 %v1381_v9, %v319_v1  ;;  %v391_v10 = vadd.f32 %v1381_v9, %v320_v2  ;;  %v1185_v11 = vunpack.c.h.bf16 %v1288_v57 }
  0x23   : > { %900 = vst.msk [vmem:[%s1404_s25 + $0x1c] sm:$0xf] %vm892_vm0, %v1097_v62  ;;  %vm452_vm9 = vcmp.gt.f32.partialorder %v388_v3, 0.0  ;;  %v516_v12 = vmul.f32 0.2, %v388_v3  ;;  %v321_v13 = vmul.f32 %v1180_v4, %v1372_v0  ;;  %v322_v14 = vmul.f32 %v1181_v5, %v1372_v0  ;;  %v1292_v4 = vld [vmem:[%s1367_s18 + $0x58] sm:$0xff]  }
  0x24   : > { %vm453_vm10 = vcmp.gt.f32.partialorder %v389_v7, 0.0  ;;  %v517_v15 = vmul.f32 0.2, %v389_v7  ;;  %vm454_vm11 = vcmp.gt.f32.partialorder %v390_v8, 0.0  ;;  %v518_v16 = vmul.f32 0.2, %v390_v8 }
  0x25   : > { %v580_v17 = vsel %vm452_vm9, %v388_v3, %v516_v12  ;;  %vm455_vm12 = vcmp.gt.f32.partialorder %v391_v10, 0.0  ;;  %v519_v18 = vmul.f32 0.2, %v391_v10  ;;  %v392_v19 = vadd.f32 %v1381_v9, %v321_v13 }
  0x26   : > { %v1098_v20 = vpack.c.bf16 %v580_v17, %v580_v17  ;;  %v581_v21 = vsel %vm453_vm10, %v389_v7, %v517_v15  ;;  %v582_v22 = vsel %vm454_vm11, %v390_v8, %v518_v16  ;;  %v393_v23 = vadd.f32 %v1381_v9, %v322_v14 }
  0x27   : > { %v1099_v25 = vpack.c.bf16 %v581_v21, %v581_v21  ;;  %v1100_v26 = vpack.c.bf16 %v582_v22, %v582_v22  ;;  %v583_v27 = vsel %vm455_vm12, %v391_v10, %v519_v18  ;;  %vm456_vm13 = vcmp.gt.f32.partialorder %v392_v19, 0.0  ;;  %v1293_v10 = vld [vmem:[%s1367_s18 + $0x60] sm:$0xff]  }
  0x28   : > { %901 = vst.msk [vmem:[%s1404_s25 + $0x20] sm:$0xf] %vm892_vm0, %v1098_v20  ;;  %v1101_v29 = vpack.c.bf16 %v583_v27, %v583_v27  ;;  %v520_v30 = vmul.f32 0.2, %v392_v19  ;;  %vm457_vm14 = vcmp.gt.f32.partialorder %v393_v23, 0.0  ;;  %v323_v32 = vmul.f32 %v1184_v6, %v1372_v0 }
  0x29   : > { %v521_v31 = vmul.f32 0.2, %v393_v23  ;;  %902 = vst.msk [vmem:[%s1404_s25 + $0x24] sm:$0xf] %vm892_vm0, %v1099_v25  ;;  %903 = vst.msk [vmem:[%s1404_s25 + $0x28] sm:$0xf] %vm892_vm0, %v1100_v26  ;;  %v324_v33 = vmul.f32 %v1185_v11, %v1372_v0  ;;  %v1188_v34 = vunpack.c.l.bf16 %v1289_v24  ;;  %v1189_v35 = vunpack.c.h.bf16 %v1289_v24 }
  0x2a   : > { %904 = vst.msk [vmem:[%s1404_s25 + $0x2c] sm:$0xf] %vm892_vm0, %v1101_v29  ;;  %v584_v36 = vsel %vm456_vm13, %v392_v19, %v520_v30  ;;  %v1192_v38 = vunpack.c.l.bf16 %v1290_v28  ;;  %v1193_v39 = vunpack.c.h.bf16 %v1290_v28  ;;  %v394_v42 = vadd.f32 %v1381_v9, %v323_v32  ;;  %v1294_v19 = vld [vmem:[%s1367_s18 + $0x68] sm:$0xff]  }
  0x2b   : > { %v585_v37 = vsel %vm457_vm14, %v393_v23, %v521_v31  ;;  %v1102_v40 = vpack.c.bf16 %v584_v36, %v584_v36  ;;  %v395_v43 = vadd.f32 %v1381_v9, %v324_v33  ;;  %v325_v44 = vmul.f32 %v1188_v34, %v1372_v0 }
  0x2c   : > { %v1103_v41 = vpack.c.bf16 %v585_v37, %v585_v37  ;;  %v326_v45 = vmul.f32 %v1189_v35, %v1372_v0  ;;  %v327_v46 = vmul.f32 %v1192_v38, %v1372_v0  ;;  %v328_v47 = vmul.f32 %v1193_v39, %v1372_v0 }
  0x2d   : > { %905 = vst.msk [vmem:[%s1404_s25 + $0x30] sm:$0xf] %vm892_vm0, %v1102_v40  ;;  %vm458_vm15 = vcmp.gt.f32.partialorder %v394_v42, 0.0  ;;  %v522_v49 = vmul.f32 0.2, %v394_v42  ;;  %vm459_vm1 = vcmp.gt.f32.partialorder %v395_v43, 0.0  ;;  %v396_v51 = vadd.f32 %v1381_v9, %v325_v44 }
  0x2e   : > { %906 = vst.msk [vmem:[%s1404_s25 + $0x34] sm:$0xf] %vm892_vm0, %v1103_v41  ;;  %v523_v50 = vmul.f32 0.2, %v395_v43  ;;  %v397_v52 = vadd.f32 %v1381_v9, %v326_v45  ;;  %v398_v53 = vadd.f32 %v1381_v9, %v327_v46  ;;  %v399_v54 = vadd.f32 %v1381_v9, %v328_v47  ;;  %v1295_v46 = vld [vmem:[%s1367_s18 + $0x70] sm:$0xff]   ;;  %v1296_v47 = vld [vmem:[%s1367_s18 + $0x78] sm:$0xff]  }
  0x2f   : > { %v586_v55 = vsel %vm458_vm15, %v394_v42, %v522_v49  ;;  %v1196_v57 = vunpack.c.l.bf16 %v1291_v48  ;;  %v1197_v58 = vunpack.c.h.bf16 %v1291_v48  ;;  %vm460_vm2 = vcmp.gt.f32.partialorder %v396_v51, 0.0 }
  0x30   : > { %v587_v56 = vsel %vm459_vm1, %v395_v43, %v523_v50  ;;  %v1104_v59 = vpack.c.bf16 %v586_v55, %v586_v55  ;;  %v524_v61 = vmul.f32 0.2, %v396_v51  ;;  %vm461_vm3 = vcmp.gt.f32.partialorder %v397_v52, 0.0 }
  0x31   : > { %v1105_v60 = vpack.c.bf16 %v587_v56, %v587_v56  ;;  %v525_v62 = vmul.f32 0.2, %v397_v52  ;;  %vm462_vm4 = vcmp.gt.f32.partialorder %v398_v53, 0.0  ;;  %v526_v63 = vmul.f32 0.2, %v398_v53 }
  0x32   : > { %907 = vst.msk [vmem:[%s1404_s25 + $0x38] sm:$0xf] %vm892_vm0, %v1104_v59  ;;  %v588_v1 = vsel %vm460_vm2, %v396_v51, %v524_v61  ;;  %vm463_vm5 = vcmp.gt.f32.partialorder %v399_v54, 0.0  ;;  %v527_v2 = vmul.f32 0.2, %v399_v54  ;;  %v329_v3 = vmul.f32 %v1196_v57, %v1372_v0 }
  0x33   : > { %908 = vst.msk [vmem:[%s1404_s25 + $0x3c] sm:$0xf] %vm892_vm0, %v1105_v60  ;;  %v1106_v5 = vpack.c.bf16 %v588_v1, %v588_v1  ;;  %v589_v6 = vsel %vm461_vm3, %v397_v52, %v525_v62  ;;  %v590_v7 = vsel %vm462_vm4, %v398_v53, %v526_v63  ;;  %v330_v8 = vmul.f32 %v1197_v58, %v1372_v0  ;;  %v1297_v52 = vld [vmem:[%s1367_s18 + $0x80] sm:$0xff]  }
  0x34   : > { %v1107_v11 = vpack.c.bf16 %v589_v6, %v589_v6  ;;  %v1108_v12 = vpack.c.bf16 %v590_v7, %v590_v7  ;;  %v591_v13 = vsel %vm463_vm5, %v399_v54, %v527_v2  ;;  %v400_v14 = vadd.f32 %v1381_v9, %v329_v3 }
  0x35   : > { %909 = vst.msk [vmem:[%s1404_s25 + $0x40] sm:$0xf] %vm892_vm0, %v1106_v5  ;;  %v1109_v15 = vpack.c.bf16 %v591_v13, %v591_v13  ;;  %v401_v16 = vadd.f32 %v1381_v9, %v330_v8  ;;  %v1200_v17 = vunpack.c.l.bf16 %v1292_v4  ;;  %v1201_v18 = vunpack.c.h.bf16 %v1292_v4 }
  0x36   : > { %910 = vst.msk [vmem:[%s1404_s25 + $0x44] sm:$0xf] %vm892_vm0, %v1107_v11  ;;  %911 = vst.msk [vmem:[%s1404_s25 + $0x48] sm:$0xf] %vm892_vm0, %v1108_v12  ;;  %vm464_vm6 = vcmp.gt.f32.partialorder %v400_v14, 0.0  ;;  %v1204_v21 = vunpack.c.l.bf16 %v1293_v10  ;;  %v1205_v22 = vunpack.c.h.bf16 %v1293_v10  ;;  %v1208_v29 = vunpack.c.l.bf16 %v1294_v19 }
  0x37   : > { %v528_v20 = vmul.f32 0.2, %v400_v14  ;;  %912 = vst.msk [vmem:[%s1404_s25 + $0x4c] sm:$0xf] %vm892_vm0, %v1109_v15  ;;  %vm465_vm7 = vcmp.gt.f32.partialorder %v401_v16, 0.0  ;;  %v331_v24 = vmul.f32 %v1200_v17, %v1372_v0  ;;  %v332_v25 = vmul.f32 %v1201_v18, %v1372_v0 }
  0x38   : > { %v529_v23 = vmul.f32 0.2, %v401_v16  ;;  %v333_v27 = vmul.f32 %v1204_v21, %v1372_v0  ;;  %v334_v28 = vmul.f32 %v1205_v22, %v1372_v0  ;;  %v335_v37 = vmul.f32 %v1208_v29, %v1372_v0  ;;  %v1299_v29 = vld [vmem:[%s1367_s18 + $0x90] sm:$0xff]  }
  0x39   : > { %v592_v26 = vsel %vm464_vm6, %v400_v14, %v528_v20  ;;  %v402_v32 = vadd.f32 %v1381_v9, %v331_v24  ;;  %v403_v33 = vadd.f32 %v1381_v9, %v332_v25  ;;  %v1209_v45 = vunpack.c.h.bf16 %v1294_v19  ;;  %v1298_v24 = vld [vmem:[%s1367_s18 + $0x88] sm:$0xff]  }
  0x3a   : > { %v1110_v30 = vpack.c.bf16 %v592_v26, %v592_v26  ;;  %v593_v31 = vsel %vm465_vm7, %v401_v16, %v529_v23  ;;  %v404_v35 = vadd.f32 %v1381_v9, %v333_v27  ;;  %v405_v36 = vadd.f32 %v1381_v9, %v334_v28 }
  0x3b   : > { %v1111_v34 = vpack.c.bf16 %v593_v31, %v593_v31  ;;  %vm466_vm8 = vcmp.gt.f32.partialorder %v402_v32, 0.0  ;;  %v530_v38 = vmul.f32 0.2, %v402_v32  ;;  %vm467_vm9 = vcmp.gt.f32.partialorder %v403_v33, 0.0 }
  0x3c   : > { %913 = vst.msk [vmem:[%s1404_s25 + $0x50] sm:$0xf] %vm892_vm0, %v1110_v30  ;;  %v531_v39 = vmul.f32 0.2, %v403_v33  ;;  %vm468_vm10 = vcmp.gt.f32.partialorder %v404_v35, 0.0  ;;  %vm469_vm11 = vcmp.gt.f32.partialorder %v405_v36, 0.0  ;;  %v406_v44 = vadd.f32 %v1381_v9, %v335_v37 }
  0x3d   : > { %914 = vst.msk [vmem:[%s1404_s25 + $0x54] sm:$0xf] %vm892_vm0, %v1111_v34  ;;  %v532_v40 = vmul.f32 0.2, %v404_v35  ;;  %v533_v41 = vmul.f32 0.2, %v405_v36  ;;  %v594_v42 = vsel %vm466_vm8, %v402_v32, %v530_v38  ;;  %v336_v56 = vmul.f32 %v1209_v45, %v1372_v0 }
  0x3e   : > { %v595_v43 = vsel %vm467_vm9, %v403_v33, %v531_v39  ;;  %v1112_v48 = vpack.c.bf16 %v594_v42, %v594_v42  ;;  %vm470_vm12 = vcmp.gt.f32.partialorder %v406_v44, 0.0  ;;  %v534_v55 = vmul.f32 0.2, %v406_v44  ;;  %v1300_v33 = vld [vmem:[%s1367_s18 + $0x98] sm:$0xff]   ;;  %v1301_v42 = vld [vmem:[%s1367_s18 + $0xa0] sm:$0xff]  }
  0x3f   : > { %v1113_v49 = vpack.c.bf16 %v595_v43, %v595_v43  ;;  %v596_v50 = vsel %vm468_vm10, %v404_v35, %v532_v40  ;;  %v597_v51 = vsel %vm469_vm11, %v405_v36, %v533_v41  ;;  %v1212_v57 = vunpack.c.l.bf16 %v1295_v46 }
  0x40   : > { %v1114_v53 = vpack.c.bf16 %v596_v50, %v596_v50  ;;  %v1115_v54 = vpack.c.bf16 %v597_v51, %v597_v51  ;;  %915 = vst.msk [vmem:[%s1404_s25 + $0x58] sm:$0xf] %vm892_vm0, %v1112_v48  ;;  %v1213_v58 = vunpack.c.h.bf16 %v1295_v46  ;;  %v1216_v59 = vunpack.c.l.bf16 %v1296_v47 }
  0x41   : > { %916 = vst.msk [vmem:[%s1404_s25 + $0x5c] sm:$0xf] %vm892_vm0, %v1113_v49  ;;  %v598_v60 = vsel %vm470_vm12, %v406_v44, %v534_v55  ;;  %v1217_v61 = vunpack.c.h.bf16 %v1296_v47  ;;  %v1220_v62 = vunpack.c.l.bf16 %v1297_v52  ;;  %v1221_v63 = vunpack.c.h.bf16 %v1297_v52 }
  0x42   : > { %917 = vst.msk [vmem:[%s1404_s25 + $0x60] sm:$0xf] %vm892_vm0, %v1114_v53  ;;  %918 = vst.msk [vmem:[%s1404_s25 + $0x64] sm:$0xf] %vm892_vm0, %v1115_v54  ;;  %v1116_v1 = vpack.c.bf16 %v598_v60, %v598_v60  ;;  %v407_v2 = vadd.f32 %v1381_v9, %v336_v56  ;;  %v337_v3 = vmul.f32 %v1212_v57, %v1372_v0  ;;  %v1224_v37 = vunpack.c.l.bf16 %v1298_v24 }
  0x43   : > { %v338_v4 = vmul.f32 %v1213_v58, %v1372_v0  ;;  %v339_v5 = vmul.f32 %v1216_v59, %v1372_v0  ;;  %v340_v6 = vmul.f32 %v1217_v61, %v1372_v0  ;;  %v341_v7 = vmul.f32 %v1220_v62, %v1372_v0 }
  0x44   : > { %v342_v8 = vmul.f32 %v1221_v63, %v1372_v0  ;;  %919 = vst.msk [vmem:[%s1404_s25 + $0x68] sm:$0xf] %vm892_vm0, %v1116_v1  ;;  %vm471_vm13 = vcmp.gt.f32.partialorder %v407_v2, 0.0  ;;  %v535_v10 = vmul.f32 0.2, %v407_v2  ;;  %v408_v11 = vadd.f32 %v1381_v9, %v337_v3 }
  0x45   : > { %v409_v12 = vadd.f32 %v1381_v9, %v338_v4  ;;  %v410_v13 = vadd.f32 %v1381_v9, %v339_v5  ;;  %v411_v14 = vadd.f32 %v1381_v9, %v340_v6  ;;  %v412_v15 = vadd.f32 %v1381_v9, %v341_v7  ;;  %v1302_v7 = vld [vmem:[%s1367_s18 + $0xa8] sm:$0xff]  }
  0x46   : > { %v413_v16 = vadd.f32 %v1381_v9, %v342_v8  ;;  %v599_v17 = vsel %vm471_vm13, %v407_v2, %v535_v10  ;;  %vm472_vm14 = vcmp.gt.f32.partialorder %v408_v11, 0.0  ;;  %v536_v18 = vmul.f32 0.2, %v408_v11 }
  0x47   : > { %vm473_vm15 = vcmp.gt.f32.partialorder %v409_v12, 0.0  ;;  %v1117_v19 = vpack.c.bf16 %v599_v17, %v599_v17  ;;  %v537_v20 = vmul.f32 0.2, %v409_v12  ;;  %vm474_vm1 = vcmp.gt.f32.partialorder %v410_v13, 0.0 }
  0x48   : > { %v538_v21 = vmul.f32 0.2, %v410_v13  ;;  %v600_v22 = vsel %vm472_vm14, %v408_v11, %v536_v18  ;;  %vm475_vm2 = vcmp.gt.f32.partialorder %v411_v14, 0.0  ;;  %v539_v23 = vmul.f32 0.2, %v411_v14 }
  0x49   : > { %vm476_vm3 = vcmp.gt.f32.partialorder %v412_v15, 0.0  ;;  %920 = vst.msk [vmem:[%s1404_s25 + $0x6c] sm:$0xf] %vm892_vm0, %v1117_v19  ;;  %v1118_v25 = vpack.c.bf16 %v600_v22, %v600_v22  ;;  %v601_v26 = vsel %vm473_vm15, %v409_v12, %v537_v20  ;;  %v540_v28 = vmul.f32 0.2, %v412_v15  ;;  %v1303_v12 = vld [vmem:[%s1367_s18 + $0xb0] sm:$0xff]  }
  0x4a   : > { %v602_v27 = vsel %vm474_vm1, %v410_v13, %v538_v21  ;;  %v1119_v30 = vpack.c.bf16 %v601_v26, %v601_v26  ;;  %v603_v32 = vsel %vm475_vm2, %v411_v14, %v539_v23  ;;  %vm477_vm4 = vcmp.gt.f32.partialorder %v413_v16, 0.0 }
  0x4b   : > { %v1120_v31 = vpack.c.bf16 %v602_v27, %v602_v27  ;;  %921 = vst.msk [vmem:[%s1404_s25 + $0x70] sm:$0xf] %vm892_vm0, %v1118_v25  ;;  %v1121_v34 = vpack.c.bf16 %v603_v32, %v603_v32  ;;  %v604_v35 = vsel %vm476_vm3, %v412_v15, %v540_v28  ;;  %v541_v36 = vmul.f32 0.2, %v413_v16 }
  0x4c   : > { %922 = vst.msk [vmem:[%s1404_s25 + $0x74] sm:$0xf] %vm892_vm0, %v1119_v30  ;;  %v1122_v38 = vpack.c.bf16 %v604_v35, %v604_v35  ;;  %v1225_v39 = vunpack.c.h.bf16 %v1298_v24  ;;  %v1228_v40 = vunpack.c.l.bf16 %v1299_v29  ;;  %v1229_v41 = vunpack.c.h.bf16 %v1299_v29  ;;  %v1304_v29 = vld [vmem:[%s1367_s18 + $0xb8] sm:$0xff]  }
  0x4d   : > { %923 = vst.msk [vmem:[%s1404_s25 + $0x78] sm:$0xf] %vm892_vm0, %v1120_v31  ;;  %924 = vst.msk [vmem:[%s1404_s25 + $0x7c] sm:$0xf] %vm892_vm0, %v1121_v34  ;;  %v605_v43 = vsel %vm477_vm4, %v413_v16, %v541_v36  ;;  %v343_v44 = vmul.f32 %v1224_v37, %v1372_v0  ;;  %v1232_v45 = vunpack.c.l.bf16 %v1300_v33  ;;  %v1233_v46 = vunpack.c.h.bf16 %v1300_v33 }
  0x4e   : > { %925 = vst.msk [vmem:[%s1404_s25 + $0x80] sm:$0xf] %vm892_vm0, %v1122_v38  ;;  %v1123_v47 = vpack.c.bf16 %v605_v43, %v605_v43  ;;  %v344_v48 = vmul.f32 %v1225_v39, %v1372_v0  ;;  %v345_v49 = vmul.f32 %v1228_v40, %v1372_v0  ;;  %v346_v50 = vmul.f32 %v1229_v41, %v1372_v0 }
  0x4f   : > { %v414_v51 = vadd.f32 %v1381_v9, %v343_v44  ;;  %v347_v52 = vmul.f32 %v1232_v45, %v1372_v0  ;;  %v348_v53 = vmul.f32 %v1233_v46, %v1372_v0  ;;  %v1236_v54 = vunpack.c.l.bf16 %v1301_v42  ;;  %v1305_v45 = vld [vmem:[%s1367_s18 + $0xc0] sm:$0xff]  }
  0x50   : > { %926 = vst.msk [vmem:[%s1404_s25 + $0x84] sm:$0xf] %vm892_vm0, %v1123_v47  ;;  %v415_v55 = vadd.f32 %v1381_v9, %v344_v48  ;;  %v416_v56 = vadd.f32 %v1381_v9, %v345_v49  ;;  %v417_v57 = vadd.f32 %v1381_v9, %v346_v50  ;;  %v1237_v58 = vunpack.c.h.bf16 %v1301_v42 }
  0x51   : > { %vm478_vm5 = vcmp.gt.f32.partialorder %v414_v51, 0.0  ;;  %v542_v59 = vmul.f32 0.2, %v414_v51  ;;  %v418_v60 = vadd.f32 %v1381_v9, %v347_v52  ;;  %v419_v61 = vadd.f32 %v1381_v9, %v348_v53  ;;  %v1306_v53 = vld [vmem:[%s1367_s18 + $0xc8] sm:$0xff]  }
  0x52   : > { %vm479_vm6 = vcmp.gt.f32.partialorder %v415_v55, 0.0  ;;  %v543_v62 = vmul.f32 0.2, %v415_v55  ;;  %vm480_vm7 = vcmp.gt.f32.partialorder %v416_v56, 0.0  ;;  %v544_v63 = vmul.f32 0.2, %v416_v56 }
  0x53   : > { %v606_v1 = vsel %vm478_vm5, %v414_v51, %v542_v59  ;;  %vm481_vm8 = vcmp.gt.f32.partialorder %v417_v57, 0.0  ;;  %v545_v2 = vmul.f32 0.2, %v417_v57  ;;  %vm482_vm9 = vcmp.gt.f32.partialorder %v418_v60, 0.0 }
  0x54   : > { %v1124_v3 = vpack.c.bf16 %v606_v1, %v606_v1  ;;  %v607_v4 = vsel %vm479_vm6, %v415_v55, %v543_v62  ;;  %v608_v5 = vsel %vm480_vm7, %v416_v56, %v544_v63  ;;  %v546_v6 = vmul.f32 0.2, %v418_v60 }
  0x55   : > { %v1125_v8 = vpack.c.bf16 %v607_v4, %v607_v4  ;;  %v1126_v10 = vpack.c.bf16 %v608_v5, %v608_v5  ;;  %v609_v11 = vsel %vm481_vm8, %v417_v57, %v545_v2  ;;  %vm483_vm10 = vcmp.gt.f32.partialorder %v419_v61, 0.0 }
  0x56   : > { %927 = vst.msk [vmem:[%s1404_s25 + $0x88] sm:$0xf] %vm892_vm0, %v1124_v3  ;;  %v1127_v13 = vpack.c.bf16 %v609_v11, %v609_v11  ;;  %v610_v14 = vsel %vm482_vm9, %v418_v60, %v546_v6  ;;  %v547_v15 = vmul.f32 0.2, %v419_v61  ;;  %v349_v16 = vmul.f32 %v1236_v54, %v1372_v0 }
  0x57   : > { %928 = vst.msk [vmem:[%s1404_s25 + $0x8c] sm:$0xf] %vm892_vm0, %v1125_v8  ;;  %929 = vst.msk [vmem:[%s1404_s25 + $0x90] sm:$0xf] %vm892_vm0, %v1126_v10  ;;  %v1128_v17 = vpack.c.bf16 %v610_v14, %v610_v14  ;;  %v350_v18 = vmul.f32 %v1237_v58, %v1372_v0  ;;  %v1240_v19 = vunpack.c.l.bf16 %v1302_v7  ;;  %v1241_v20 = vunpack.c.h.bf16 %v1302_v7  ;;  %v1590_v58 = vld [vmem:[%s1367_s18 + $0xd0] sm:$0xff]  }
  0x58   : > { %930 = vst.msk [vmem:[%s1404_s25 + $0x94] sm:$0xf] %vm892_vm0, %v1127_v13  ;;  %v611_v21 = vsel %vm483_vm10, %v419_v61, %v547_v15  ;;  %v420_v22 = vadd.f32 %v1381_v9, %v349_v16  ;;  %v1244_v23 = vunpack.c.l.bf16 %v1303_v12  ;;  %v1245_v24 = vunpack.c.h.bf16 %v1303_v12 }
  0x59   : > { %931 = vst.msk [vmem:[%s1404_s25 + $0x98] sm:$0xf] %vm892_vm0, %v1128_v17  ;;  %v1129_v25 = vpack.c.bf16 %v611_v21, %v611_v21  ;;  %v421_v26 = vadd.f32 %v1381_v9, %v350_v18  ;;  %v351_v27 = vmul.f32 %v1240_v19, %v1372_v0  ;;  %v352_v28 = vmul.f32 %v1241_v20, %v1372_v0 }
  0x5a   : > { %vm484_vm11 = vcmp.gt.f32.partialorder %v420_v22, 0.0  ;;  %v548_v30 = vmul.f32 0.2, %v420_v22  ;;  %v353_v31 = vmul.f32 %v1244_v23, %v1372_v0  ;;  %v354_v32 = vmul.f32 %v1245_v24, %v1372_v0 }
  0x5b   : > { %932 = vst.msk [vmem:[%s1404_s25 + $0x9c] sm:$0xf] %vm892_vm0, %v1129_v25  ;;  %vm485_vm12 = vcmp.gt.f32.partialorder %v421_v26, 0.0  ;;  %v549_v33 = vmul.f32 0.2, %v421_v26  ;;  %v422_v34 = vadd.f32 %v1381_v9, %v351_v27  ;;  %v423_v35 = vadd.f32 %v1381_v9, %v352_v28  ;;  %v1308_v25 = vld [vmem:[%s1367_s18 + $0xd8] sm:$0xff]  }
  0x5c   : > { %v612_v36 = vsel %vm484_vm11, %v420_v22, %v548_v30  ;;  %v424_v37 = vadd.f32 %v1381_v9, %v353_v31  ;;  %v425_v38 = vadd.f32 %v1381_v9, %v354_v32  ;;  %v1248_v39 = vunpack.c.l.bf16 %v1304_v29 }
  0x5d   : > { %v1130_v40 = vpack.c.bf16 %v612_v36, %v612_v36  ;;  %v613_v41 = vsel %vm485_vm12, %v421_v26, %v549_v33  ;;  %vm486_vm13 = vcmp.gt.f32.partialorder %v422_v34, 0.0  ;;  %v550_v42 = vmul.f32 0.2, %v422_v34  ;;  %v1310_v36 = vld [vmem:[%s1367_s18 + $0xe8] sm:$0xff]  }
  0x5e   : > { %v1131_v43 = vpack.c.bf16 %v613_v41, %v613_v41  ;;  %vm487_vm14 = vcmp.gt.f32.partialorder %v423_v35, 0.0  ;;  %v551_v44 = vmul.f32 0.2, %v423_v35  ;;  %vm488_vm15 = vcmp.gt.f32.partialorder %v424_v37, 0.0  ;;  %v1311_v41 = vld [vmem:[%s1367_s18 + $0xf0] sm:$0xff]  }
  0x5f   : > { %933 = vst.msk [vmem:[%s1404_s25 + $0xa0] sm:$0xf] %vm892_vm0, %v1130_v40  ;;  %v614_v46 = vsel %vm486_vm13, %v422_v34, %v550_v42  ;;  %v552_v47 = vmul.f32 0.2, %v424_v37  ;;  %vm489_vm1 = vcmp.gt.f32.partialorder %v425_v38, 0.0  ;;  %v355_v51 = vmul.f32 %v1248_v39, %v1372_v0 }
  0x60   : > { %v553_v48 = vmul.f32 0.2, %v425_v38  ;;  %934 = vst.msk [vmem:[%s1404_s25 + $0xa4] sm:$0xf] %vm892_vm0, %v1131_v43  ;;  %v1132_v49 = vpack.c.bf16 %v614_v46, %v614_v46  ;;  %v615_v50 = vsel %vm487_vm14, %v423_v35, %v551_v44  ;;  %v1249_v52 = vunpack.c.h.bf16 %v1304_v29  ;;  %v1309_v35 = vld [vmem:[%s1367_s18 + $0xe0] sm:$0xff]  }
  0x61   : > { %v1133_v54 = vpack.c.bf16 %v615_v50, %v615_v50  ;;  %v616_v55 = vsel %vm488_vm15, %v424_v37, %v552_v47  ;;  %v1252_v57 = vunpack.c.l.bf16 %v1305_v45  ;;  %v426_v61 = vadd.f32 %v1381_v9, %v355_v51 }
  0x62   : > { %v617_v56 = vsel %vm489_vm1, %v425_v38, %v553_v48  ;;  %935 = vst.msk [vmem:[%s1404_s25 + $0xa8] sm:$0xf] %vm892_vm0, %v1132_v49  ;;  %v1134_v59 = vpack.c.bf16 %v616_v55, %v616_v55  ;;  %v356_v62 = vmul.f32 %v1249_v52, %v1372_v0  ;;  %v1253_v1 = vunpack.c.h.bf16 %v1305_v45 }
  0x63   : > { %v1135_v60 = vpack.c.bf16 %v617_v56, %v617_v56  ;;  %936 = vst.msk [vmem:[%s1404_s25 + $0xac] sm:$0xf] %vm892_vm0, %v1133_v54  ;;  %v357_v63 = vmul.f32 %v1252_v57, %v1372_v0  ;;  %v1256_v2 = vunpack.c.l.bf16 %v1306_v53  ;;  %v1257_v3 = vunpack.c.h.bf16 %v1306_v53 }
  0x64   : > { %937 = vst.msk [vmem:[%s1404_s25 + $0xb0] sm:$0xf] %vm892_vm0, %v1134_v59  ;;  %vm490_vm2 = vcmp.gt.f32.partialorder %v426_v61, 0.0  ;;  %v554_v4 = vmul.f32 0.2, %v426_v61  ;;  %v427_v5 = vadd.f32 %v1381_v9, %v356_v62  ;;  %v1260_v6 = vunpack.c.l.bf16 %v1590_v58 }
  0x65   : > { %938 = vst.msk [vmem:[%s1404_s25 + $0xb4] sm:$0xf] %vm892_vm0, %v1135_v60  ;;  %v428_v7 = vadd.f32 %v1381_v9, %v357_v63  ;;  %v358_v8 = vmul.f32 %v1253_v1, %v1372_v0  ;;  %v359_v10 = vmul.f32 %v1256_v2, %v1372_v0  ;;  %v360_v11 = vmul.f32 %v1257_v3, %v1372_v0 }
  0x66   : > { %v618_v12 = vsel %vm490_vm2, %v426_v61, %v554_v4  ;;  %vm491_vm3 = vcmp.gt.f32.partialorder %v427_v5, 0.0  ;;  %v555_v13 = vmul.f32 0.2, %v427_v5  ;;  %v361_v14 = vmul.f32 %v1260_v6, %v1372_v0 }
  0x67   : > { %v1136_v15 = vpack.c.bf16 %v618_v12, %v618_v12  ;;  %vm492_vm4 = vcmp.gt.f32.partialorder %v428_v7, 0.0  ;;  %v556_v16 = vmul.f32 0.2, %v428_v7  ;;  %v429_v17 = vadd.f32 %v1381_v9, %v358_v8 }
  0x68   : > { %v619_v18 = vsel %vm491_vm3, %v427_v5, %v555_v13  ;;  %v430_v19 = vadd.f32 %v1381_v9, %v359_v10  ;;  %v431_v20 = vadd.f32 %v1381_v9, %v360_v11  ;;  %v432_v21 = vadd.f32 %v1381_v9, %v361_v14 }
  0x69   : > { %939 = vst.msk [vmem:[%s1404_s25 + $0xb8] sm:$0xf] %vm892_vm0, %v1136_v15  ;;  %v1137_v22 = vpack.c.bf16 %v619_v18, %v619_v18  ;;  %v620_v23 = vsel %vm492_vm4, %v428_v7, %v556_v16  ;;  %vm493_vm5 = vcmp.gt.f32.partialorder %v429_v17, 0.0  ;;  %v557_v24 = vmul.f32 0.2, %v429_v17  ;;  %v1312_v7 = vld [vmem:[%s1367_s18 + $0xf8] sm:$0xff]  }
  0x6a   : > { %v1138_v26 = vpack.c.bf16 %v620_v23, %v620_v23  ;;  %vm494_vm6 = vcmp.gt.f32.partialorder %v430_v19, 0.0  ;;  %v558_v27 = vmul.f32 0.2, %v430_v19  ;;  %vm495_vm7 = vcmp.gt.f32.partialorder %v431_v20, 0.0 }
  0x6b   : > { %940 = vst.msk [vmem:[%s1404_s25 + $0xbc] sm:$0xf] %vm892_vm0, %v1137_v22  ;;  %v621_v28 = vsel %vm493_vm5, %v429_v17, %v557_v24  ;;  %v559_v29 = vmul.f32 0.2, %v431_v20  ;;  %vm496_vm8 = vcmp.gt.f32.partialorder %v432_v21, 0.0  ;;  %v1261_v33 = vunpack.c.h.bf16 %v1590_v58 }
  0x6c   : > { %v560_v30 = vmul.f32 0.2, %v432_v21  ;;  %941 = vst.msk [vmem:[%s1404_s25 + $0xc0] sm:$0xf] %vm892_vm0, %v1138_v26  ;;  %v1139_v31 = vpack.c.bf16 %v621_v28, %v621_v28  ;;  %v622_v32 = vsel %vm494_vm6, %v430_v19, %v558_v27  ;;  %v1264_v34 = vunpack.c.l.bf16 %v1308_v25 }
  0x6d   : > { %v1140_v37 = vpack.c.bf16 %v622_v32, %v622_v32  ;;  %v623_v38 = vsel %vm495_vm7, %v431_v20, %v559_v29  ;;  %v1265_v40 = vunpack.c.h.bf16 %v1308_v25  ;;  %v362_v44 = vmul.f32 %v1261_v33, %v1372_v0 }
  0x6e   : > { %v624_v39 = vsel %vm496_vm8, %v432_v21, %v560_v30  ;;  %942 = vst.msk [vmem:[%s1404_s25 + $0xc4] sm:$0xf] %vm892_vm0, %v1139_v31  ;;  %v1141_v42 = vpack.c.bf16 %v623_v38, %v623_v38  ;;  %v363_v45 = vmul.f32 %v1264_v34, %v1372_v0  ;;  %v1268_v47 = vunpack.c.l.bf16 %v1309_v35 }
  0x6f   : > { %v1142_v43 = vpack.c.bf16 %v624_v39, %v624_v39  ;;  %943 = vst.msk [vmem:[%s1404_s25 + $0xc8] sm:$0xf] %vm892_vm0, %v1140_v37  ;;  %v364_v46 = vmul.f32 %v1265_v40, %v1372_v0  ;;  %v1269_v48 = vunpack.c.h.bf16 %v1309_v35  ;;  %v1272_v49 = vunpack.c.l.bf16 %v1310_v36 }
  0x70   : > { %944 = vst.msk [vmem:[%s1404_s25 + $0xcc] sm:$0xf] %vm892_vm0, %v1141_v42  ;;  %v433_v50 = vadd.f32 %v1381_v9, %v362_v44  ;;  %v434_v51 = vadd.f32 %v1381_v9, %v363_v45  ;;  %v1273_v52 = vunpack.c.h.bf16 %v1310_v36  ;;  %v1276_v53 = vunpack.c.l.bf16 %v1311_v41 }
  0x71   : > { %945 = vst.msk [vmem:[%s1404_s25 + $0xd0] sm:$0xf] %vm892_vm0, %v1142_v43  ;;  %v435_v54 = vadd.f32 %v1381_v9, %v364_v46  ;;  %v365_v55 = vmul.f32 %v1268_v47, %v1372_v0  ;;  %v366_v56 = vmul.f32 %v1269_v48, %v1372_v0  ;;  %v367_v57 = vmul.f32 %v1272_v49, %v1372_v0 }
  0x72   : > { %vm497_vm9 = vcmp.gt.f32.partialorder %v433_v50, 0.0  ;;  %v561_v58 = vmul.f32 0.2, %v433_v50  ;;  %vm498_vm10 = vcmp.gt.f32.partialorder %v434_v51, 0.0  ;;  %v562_v59 = vmul.f32 0.2, %v434_v51 }
  0x73   : > { %vm499_vm11 = vcmp.gt.f32.partialorder %v435_v54, 0.0  ;;  %v563_v60 = vmul.f32 0.2, %v435_v54  ;;  %v436_v61 = vadd.f32 %v1381_v9, %v365_v55  ;;  %v437_v62 = vadd.f32 %v1381_v9, %v366_v56 }
  0x74   : > { %v625_v63 = vsel %vm497_vm9, %v433_v50, %v561_v58  ;;  %v626_v1 = vsel %vm498_vm10, %v434_v51, %v562_v59  ;;  %v438_v2 = vadd.f32 %v1381_v9, %v367_v57  ;;  %v368_v3 = vmul.f32 %v1273_v52, %v1372_v0 }
  0x75   : > { %v1143_v4 = vpack.c.bf16 %v625_v63, %v625_v63  ;;  %v1144_v5 = vpack.c.bf16 %v626_v1, %v626_v1  ;;  %v627_v6 = vsel %vm499_vm11, %v435_v54, %v563_v60  ;;  %vm500_vm12 = vcmp.gt.f32.partialorder %v436_v61, 0.0 }
  0x76   : > { %v1145_v8 = vpack.c.bf16 %v627_v6, %v627_v6  ;;  %v564_v10 = vmul.f32 0.2, %v436_v61  ;;  %vm501_vm13 = vcmp.gt.f32.partialorder %v437_v62, 0.0  ;;  %v565_v11 = vmul.f32 0.2, %v437_v62 }
  0x77   : > { %946 = vst.msk [vmem:[%s1404_s25 + $0xd4] sm:$0xf] %vm892_vm0, %v1143_v4  ;;  %947 = vst.msk [vmem:[%s1404_s25 + $0xd8] sm:$0xf] %vm892_vm0, %v1144_v5  ;;  %vm502_vm14 = vcmp.gt.f32.partialorder %v438_v2, 0.0  ;;  %v439_v13 = vadd.f32 %v1381_v9, %v368_v3  ;;  %v369_v14 = vmul.f32 %v1276_v53, %v1372_v0  ;;  %v1277_v17 = vunpack.c.h.bf16 %v1311_v41 }
  0x78   : > { %v566_v12 = vmul.f32 0.2, %v438_v2  ;;  %948 = vst.msk [vmem:[%s1404_s25 + $0xdc] sm:$0xf] %vm892_vm0, %v1145_v8  ;;  %v628_v15 = vsel %vm500_vm12, %v436_v61, %v564_v10  ;;  %v629_v16 = vsel %vm501_vm13, %v437_v62, %v565_v11  ;;  %v1280_v18 = vunpack.c.l.bf16 %v1312_v7  ;;  %v1321_v0 = vld [vmem:[%s1682_s1] ss:$0 sm:$0xff] }
  0x79   : > { %v1146_v19 = vpack.c.bf16 %v628_v15, %v628_v15  ;;  %v1147_v20 = vpack.c.bf16 %v629_v16, %v629_v16  ;;  %vm503_vm15 = vcmp.gt.f32.partialorder %v439_v13, 0.0  ;;  %v567_v23 = vmul.f32 0.2, %v439_v13 }
  0x7a   : > { %v630_v21 = vsel %vm502_vm14, %v438_v2, %v566_v12  ;;  %v440_v24 = vadd.f32 %v1381_v9, %v369_v14  ;;  %v370_v25 = vmul.f32 %v1321_v0, %v1277_v17  ;;  %v371_v26 = vmul.f32 %v1321_v0, %v1280_v18  ;;  %v1322_v9 = vld [vmem:[%s1683_s2] ss:$0 sm:$0xff] }
  0x7b   : > { %v1148_v22 = vpack.c.bf16 %v630_v21, %v630_v21  ;;  %949 = vst.msk [vmem:[%s1404_s25 + $0xe0] sm:$0xf] %vm892_vm0, %v1146_v19  ;;  %950 = vst.msk [vmem:[%s1404_s25 + $0xe4] sm:$0xf] %vm892_vm0, %v1147_v20  ;;  %v1281_v27 = vunpack.c.h.bf16 %v1312_v7  ;;  %v631_v28 = vsel %vm503_vm15, %v439_v13, %v567_v23 }
  0x7c   : > { %vm504_vm1 = vcmp.gt.f32.partialorder %v440_v24, 0.0  ;;  %v568_v29 = vmul.f32 0.2, %v440_v24  ;;  %v441_v30 = vadd.f32 %v1322_v9, %v370_v25  ;;  %v1149_v31 = vpack.c.bf16 %v631_v28, %v631_v28 }
  0x7d   : > { %951 = vst.msk [vmem:[%s1404_s25 + $0xe8] sm:$0xf] %vm892_vm0, %v1148_v22  ;;  %v442_v32 = vadd.f32 %v1322_v9, %v371_v26  ;;  %v372_v33 = vmul.f32 %v1321_v0, %v1281_v27 }
  0x7e   : > { %v632_v34 = vsel %vm504_vm1, %v440_v24, %v568_v29  ;;  %vm505_vm2 = vcmp.gt.f32.partialorder %v441_v30, 0.0  ;;  %v569_v35 = vmul.f32 0.2, %v441_v30  ;;  %952 = vst.msk [vmem:[%s1404_s25 + $0xec] sm:$0xf] %vm892_vm0, %v1149_v31 }
  0x7f   : > { %v1150_v36 = vpack.c.bf16 %v632_v34, %v632_v34  ;;  %vm506_vm3 = vcmp.gt.f32.partialorder %v442_v32, 0.0  ;;  %v570_v37 = vmul.f32 0.2, %v442_v32  ;;  %v443_v38 = vadd.f32 %v1322_v9, %v372_v33 }
  0x80   : > { %v633_v39 = vsel %vm505_vm2, %v441_v30, %v569_v35 }
  0x81   : > { %953 = vst.msk [vmem:[%s1404_s25 + $0xf0] sm:$0xf] %vm892_vm0, %v1150_v36  ;;  %v1151_v40 = vpack.c.bf16 %v633_v39, %v633_v39  ;;  %v634_v41 = vsel %vm506_vm3, %v442_v32, %v570_v37  ;;  %vm507_vm4 = vcmp.gt.f32.partialorder %v443_v38, 0.0  ;;  %v571_v42 = vmul.f32 0.2, %v443_v38 }
  0x82   : > { %v1152_v43 = vpack.c.bf16 %v634_v41, %v634_v41 }
  0x83   : > { %954 = vst.msk [vmem:[%s1404_s25 + $0xf4] sm:$0xf] %vm892_vm0, %v1151_v40  ;;  %v635_v44 = vsel %vm507_vm4, %v443_v38, %v571_v42 }
  0x84   : > { %955 = vst.msk [vmem:[%s1404_s25 + $0xf8] sm:$0xf] %vm892_vm0, %v1152_v43  ;;  %v1153_v45 = vpack.c.bf16 %v635_v44, %v635_v44 }
  0x86   : > { %956 = vst.msk [vmem:[%s1404_s25 + $0xfc] sm:$0xf] %vm892_vm0, %v1153_v45 }
  0x87 PF: > { %s13_s12 = sadd.s32 1, %s1329_s12  }
  0x88   : > { %p10_p4 = scmp.ge.s32.totalorder %s13_s12, 4  }
  0x8a   :  { %12 = sbr.rel (!%p10_p4) target bundleno = 1 (0x1), region = 62 }

// kernel: a_call__.8
= control target key start
LH: loop header
LB: loop body
LE: loop exit
PB: predicated region body
PF: predicated region fallthrough
CT: control target
= control target key end

     0   :  { %vm18_vm0 = vcmask 254976   ;;  %v1152_v48 = vmov 0.0   ;;  %vm629_vm1 = vcmask 257024   ;;  %vm662_vm2 = vcmask 261120   ;;  %s1632_s1 = inlined_call_operand.vmem [shape: bf16[256,32], index: 1, kind: input, shape index: {}]   ;;  %s1633_s0 = inlined_call_operand.vmem [shape: bf16[256,256], index: 0, kind: input, shape index: {}]   ;;  %s1634_s3 = inlined_call_operand.vmem [shape: f32[2,32], index: 3, kind: output, shape index: {1}]   ;;  %s1635_s2 = inlined_call_operand.vmem [shape: bf16[256,32], index: 2, kind: output, shape index: {0}]  }
   0x1   :  { %v1088_v0 = vld [vmem:[%s1632_s1 + $0x40] sm:$0xff]   ;;  %v1090_v2 = vld [vmem:[%s1632_s1 + $0x48] sm:$0xff]   ;;  %v1092_v4 = vld [vmem:[%s1632_s1 + $0x50] sm:$0xff]   ;;  %19 = vst.msk [vmem:[%s1634_s3] sm:$0x3] %vm18_vm0, %v1152_v48  ;;  %vm834_vm3 = vcmask 1040384  }
   0x2   :  { %v1089_v1 = vld [vmem:[%s1632_s1] sm:$0xff]   ;;  %959 = vmatprep.subr.bf16.mxu0 %v1088_v0  ;;  %1071 = vmatprep.subr.bf16.mxu1 %v1088_v0  ;;  %v1091_v3 = vld [vmem:[%s1632_s1 + $0x8] sm:$0xff]   ;;  %v1093_v5 = vld [vmem:[%s1632_s1 + $0x10] sm:$0xff]  }
   0x3   :  { %960 = vmatpush3.bf16.msra.mxu0 %v1089_v1  ;;  %1079 = vmatpush3.bf16.msra.mxu1 %v1089_v1  ;;  %v1094_v6 = vld [vmem:[%s1632_s1 + $0x58] sm:$0xff]   ;;  %v1096_v8 = vld [vmem:[%s1632_s1 + $0x60] sm:$0xff]   ;;  %v1098_v10 = vld [vmem:[%s1632_s1 + $0x68] sm:$0xff]  }
   0x4   :  { %961 = vmatprep.subr.bf16.mxu0 %v1090_v2  ;;  %1072 = vmatprep.subr.bf16.mxu1 %v1090_v2  ;;  %v1095_v7 = vld [vmem:[%s1632_s1 + $0x18] sm:$0xff]   ;;  %v1097_v9 = vld [vmem:[%s1632_s1 + $0x20] sm:$0xff]   ;;  %v1099_v12 = vld [vmem:[%s1632_s1 + $0x28] sm:$0xff]  }
   0x5   :  { %v1106_v11 = vld [vmem:[%s1633_s0 + $0x4] ss:$8 sps:$4 sm:$0xff]   ;;  %v1100_v13 = vld [vmem:[%s1632_s1 + $0x70] sm:$0xff]   ;;  %v1102_v16 = vld [vmem:[%s1632_s1 + $0x78] sm:$0xff]  }
   0x6   :  { %372 = vmatprep.mubr.bf16.mxu0 %v1106_v11  ;;  %v1118_v14 = vld [vmem:[%s1633_s0 + $0x84] ss:$8 sps:$4 sm:$0xff]   ;;  %v1101_v15 = vld [vmem:[%s1632_s1 + $0x30] sm:$0xff]   ;;  %v1103_v17 = vld [vmem:[%s1632_s1 + $0x38] sm:$0xff]  }
   0x7   :  { %962 = vmatpush3.bf16.msra.mxu0 %v1091_v3  ;;  %1080 = vmatpush3.bf16.msra.mxu1 %v1091_v3  ;;  %v1104_v18 = vld [vmem:[%s1633_s0] ss:$8 sps:$4 sm:$0xff]   ;;  %v1107_v19 = vld [vmem:[%s1633_s0 + $0x14] ss:$8 sps:$4 sm:$0xff]   ;;  %v1109_v22 = vld [vmem:[%s1633_s0 + $0x10] ss:$8 sps:$4 sm:$0xff]  }
   0x8   :  { %963 = vmatprep.subr.bf16.mxu0 %v1092_v4  ;;  %1073 = vmatprep.subr.bf16.mxu1 %v1092_v4  ;;  %v1116_v20 = vld [vmem:[%s1633_s0 + $0x80] ss:$8 sps:$4 sm:$0xff]   ;;  %v1122_v21 = vld [vmem:[%s1633_s0 + $0x94] ss:$8 sps:$4 sm:$0xff]   ;;  %v1110_v23 = vld [vmem:[%s1633_s0 + $0x24] ss:$8 sps:$4 sm:$0xff]  }
   0x9   :  { %436 = vmatprep.mubr.bf16.mxu1 %v1118_v14  ;;  %v1124_v24 = vld [vmem:[%s1633_s0 + $0x90] ss:$8 sps:$4 sm:$0xff]   ;;  %v1128_v25 = vld [vmem:[%s1633_s0 + $0xa4] ss:$8 sps:$4 sm:$0xff]   ;;  %v1112_v26 = vld [vmem:[%s1633_s0 + $0x20] ss:$8 sps:$4 sm:$0xff]  }
   0xa   :  { %v1113_v27 = vld [vmem:[%s1633_s0 + $0x34] ss:$8 sps:$4 sm:$0xff]   ;;  %v1130_v28 = vld [vmem:[%s1633_s0 + $0xa0] ss:$8 sps:$4 sm:$0xff]   ;;  %v1115_v30 = vld [vmem:[%s1633_s0 + $0x30] ss:$8 sps:$4 sm:$0xff]  }
   0xb   :  { %964 = vmatpush3.bf16.msra.mxu0 %v1093_v5  ;;  %1081 = vmatpush3.bf16.msra.mxu1 %v1093_v5  ;;  %v1134_v29 = vld [vmem:[%s1633_s0 + $0xb4] ss:$8 sps:$4 sm:$0xff]   ;;  %v1119_v31 = vld [vmem:[%s1633_s0 + $0x44] ss:$8 sps:$4 sm:$0xff]   ;;  %v1136_v32 = vld [vmem:[%s1633_s0 + $0xb0] ss:$8 sps:$4 sm:$0xff]  }
   0xc   :  { %965 = vmatprep.subr.bf16.mxu0 %v1094_v6  ;;  %1074 = vmatprep.subr.bf16.mxu1 %v1094_v6  ;;  %v1140_v33 = vld [vmem:[%s1633_s0 + $0xc4] ss:$8 sps:$4 sm:$0xff]   ;;  %v1121_v34 = vld [vmem:[%s1633_s0 + $0x40] ss:$8 sps:$4 sm:$0xff]   ;;  %v1125_v35 = vld [vmem:[%s1633_s0 + $0x54] ss:$8 sps:$4 sm:$0xff]  }
   0xd   :  { %v1142_v36 = vld [vmem:[%s1633_s0 + $0xc0] ss:$8 sps:$4 sm:$0xff]   ;;  %v1143_v37 = vld [vmem:[%s1633_s0 + $0xd4] ss:$8 sps:$4 sm:$0xff]   ;;  %v1127_v38 = vld [vmem:[%s1633_s0 + $0x50] ss:$8 sps:$4 sm:$0xff]  }
   0xe   :  { %v1131_v39 = vld [vmem:[%s1633_s0 + $0x64] ss:$8 sps:$4 sm:$0xff]   ;;  %v1145_v40 = vld [vmem:[%s1633_s0 + $0xd0] ss:$8 sps:$4 sm:$0xff]   ;;  %v1133_v42 = vld [vmem:[%s1633_s0 + $0x60] ss:$8 sps:$4 sm:$0xff]  }
   0xf   :  { %966 = vmatpush3.bf16.msra.mxu0 %v1095_v7  ;;  %1082 = vmatpush3.bf16.msra.mxu1 %v1095_v7  ;;  %v1146_v41 = vld [vmem:[%s1633_s0 + $0xe4] ss:$8 sps:$4 sm:$0xff]   ;;  %v1137_v43 = vld [vmem:[%s1633_s0 + $0x74] ss:$8 sps:$4 sm:$0xff]   ;;  %v1148_v44 = vld [vmem:[%s1633_s0 + $0xe0] ss:$8 sps:$4 sm:$0xff]  }
  0x10   :  { %967 = vmatprep.subr.bf16.mxu0 %v1096_v8  ;;  %1075 = vmatprep.subr.bf16.mxu1 %v1096_v8  ;;  %v1149_v45 = vld [vmem:[%s1633_s0 + $0xf4] ss:$8 sps:$4 sm:$0xff]   ;;  %v1139_v46 = vld [vmem:[%s1633_s0 + $0x70] ss:$8 sps:$4 sm:$0xff]  }
  0x11   :  { %v1151_v47 = vld [vmem:[%s1633_s0 + $0xf0] ss:$8 sps:$4 sm:$0xff]  }
  0x13   :  { %968 = vmatpush3.bf16.msra.mxu0 %v1097_v9  ;;  %1083 = vmatpush3.bf16.msra.mxu1 %v1097_v9 }
  0x14   :  { %969 = vmatprep.subr.bf16.mxu0 %v1098_v10  ;;  %1076 = vmatprep.subr.bf16.mxu1 %v1098_v10 }
  0x17   :  { %970 = vmatpush3.bf16.msra.mxu0 %v1099_v12  ;;  %1084 = vmatpush3.bf16.msra.mxu1 %v1099_v12 }
  0x18   :  { %971 = vmatprep.subr.bf16.mxu0 %v1100_v13  ;;  %1077 = vmatprep.subr.bf16.mxu1 %v1100_v13 }
  0x1b   :  { %972 = vmatpush3.bf16.msra.mxu0 %v1101_v15  ;;  %1085 = vmatpush3.bf16.msra.mxu1 %v1101_v15 }
  0x1c   :  { %973 = vmatprep.subr.bf16.mxu0 %v1102_v16  ;;  %1078 = vmatprep.subr.bf16.mxu1 %v1102_v16 }
  0x1f   :  { %974 = vmatpush3.bf16.msra.mxu0 %v1103_v17  ;;  %1086 = vmatpush3.bf16.msra.mxu1 %v1103_v17 }
  0x22   :  { %373 = vmatmul.mubr.bf16.vlgmr.msra.gmra.mrb[0].mxu0 %v1104_v18  ;;  %437 = vmatmul.mubr.bf16.vlgmr.msra.gmra.mrb[0].mxu1 %v1116_v20 }
  0x23   :  { %380 = vmatprep.mubr.bf16.mxu0 %v1107_v19  ;;  %444 = vmatprep.mubr.bf16.mxu1 %v1122_v21 }
  0x2a   :  { %381 = vmatmul.mubr.bf16.gmra.mrb[4].mxu0 %v1109_v22  ;;  %445 = vmatmul.mubr.bf16.gmra.mrb[4].mxu1 %v1124_v24 }
  0x2b   :  { %388 = vmatprep.mubr.bf16.mxu0 %v1110_v23  ;;  %452 = vmatprep.mubr.bf16.mxu1 %v1128_v25 }
  0x32   :  { %389 = vmatmul.mubr.bf16.gmra.mrb[8].mxu0 %v1112_v26  ;;  %453 = vmatmul.mubr.bf16.gmra.mrb[8].mxu1 %v1130_v28 }
  0x33   :  { %396 = vmatprep.mubr.bf16.mxu0 %v1113_v27  ;;  %460 = vmatprep.mubr.bf16.mxu1 %v1134_v29 }
  0x3a   :  { %397 = vmatmul.mubr.bf16.gmra.mrb[12].mxu0 %v1115_v30  ;;  %461 = vmatmul.mubr.bf16.gmra.mrb[12].mxu1 %v1136_v32 }
  0x3b   :  { %404 = vmatprep.mubr.bf16.mxu0 %v1119_v31  ;;  %468 = vmatprep.mubr.bf16.mxu1 %v1140_v33 }
  0x42   :  { %405 = vmatmul.mubr.bf16.gmra.mrb[16].mxu0 %v1121_v34  ;;  %469 = vmatmul.mubr.bf16.gmra.mrb[16].mxu1 %v1142_v36 }
  0x43   :  { %412 = vmatprep.mubr.bf16.mxu0 %v1125_v35  ;;  %476 = vmatprep.mubr.bf16.mxu1 %v1143_v37 }
  0x4a   :  { %413 = vmatmul.mubr.bf16.gmra.mrb[20].mxu0 %v1127_v38  ;;  %477 = vmatmul.mubr.bf16.gmra.mrb[20].mxu1 %v1145_v40 }
  0x4b   :  { %420 = vmatprep.mubr.bf16.mxu0 %v1131_v39  ;;  %484 = vmatprep.mubr.bf16.mxu1 %v1146_v41 }
  0x52   :  { %421 = vmatmul.mubr.bf16.gmra.mrb[24].mxu0 %v1133_v42  ;;  %485 = vmatmul.mubr.bf16.gmra.mrb[24].mxu1 %v1148_v44 }
  0x53   :  { %428 = vmatprep.mubr.bf16.mxu0 %v1137_v43  ;;  %492 = vmatprep.mubr.bf16.mxu1 %v1149_v45 }
  0x5a   :  { %429 = vmatmul.mubr.bf16.gmra.mrb[28].mxu0 %v1139_v46  ;;  %493 = vmatmul.mubr.bf16.gmra.mrb[28].mxu1 %v1151_v47 }
  0xf5   :  { %v975_v49 = vpop.f32.mrb[0].mxu0  ;;  %v1023_v51 = vpop.f32.mrb[0].mxu1 }
  0xf6   :  { %v976_v50 = vpop.f32.mrb[1].mxu0  ;;  %v1024_v54 = vpop.f32.mrb[1].mxu1 }
  0xf7   :  { %v977_v52 = vadd.f32 %v976_v50, %v975_v49  ;;  %v978_v53 = vpop.f32.mrb[2].mxu0  ;;  %v1321_v56 = vadd.f32 %v1024_v54, %v1023_v51  ;;  %v1026_v57 = vpop.f32.mrb[2].mxu1 }
  0xf8   :  { %v979_v55 = vpop.f32.mrb[3].mxu0  ;;  %v1027_v61 = vpop.f32.mrb[3].mxu1 }
  0xf9   :  { %v927_v58 = vpack.c.bf16 %v977_v52, %v977_v52  ;;  %v732_v59 = vmul.f32 %v977_v52, %v977_v52  ;;  %v980_v60 = vadd.f32 %v979_v55, %v978_v53  ;;  %v943_v62 = vpack.c.bf16 %v1321_v56, %v1321_v56 }
  0xfa   :  { %v1325_v63 = vadd.f32 %v1027_v61, %v1026_v57  ;;  %v663_v0 = vsel %vm662_vm2, %v977_v52, 0.0 }
  0xfb   :  { %630 = vst.msk [vmem:[%s1635_s2] sm:$0xf] %vm629_vm1, %v927_v58  ;;  %v928_v1 = vpack.c.bf16 %v980_v60, %v980_v60  ;;  %v664_v2 = vsel %vm662_vm2, %v980_v60, 0.0  ;;  %v733_v3 = vmul.f32 %v980_v60, %v980_v60  ;;  %646 = vst.msk [vmem:[%s1635_s2 + $0x40] sm:$0xf] %vm629_vm1, %v943_v62  ;;  %v764_v6 = vsel %vm662_vm2, %v732_v59, 0.0 }
  0xfc   :  { %v665_v4 = vadd.f32 %v664_v2, %v663_v0  ;;  %v944_v5 = vpack.c.bf16 %v1325_v63, %v1325_v63 }
  0xfd   :  { %631 = vst.msk [vmem:[%s1635_s2 + $0x4] sm:$0xf] %vm629_vm1, %v928_v1  ;;  %v765_v7 = vsel %vm662_vm2, %v733_v3, 0.0  ;;  %v981_v8 = vpop.f32.mrb[4].mxu0  ;;  %v1029_v11 = vpop.f32.mrb[4].mxu1 }
  0xfe   :  { %v766_v9 = vadd.f32 %v765_v7, %v764_v6  ;;  %v982_v10 = vpop.f32.mrb[5].mxu0  ;;  %647 = vst.msk [vmem:[%s1635_s2 + $0x44] sm:$0xf] %vm629_vm1, %v944_v5  ;;  %v1030_v14 = vpop.f32.mrb[5].mxu1 }
  0xff   :  { %v983_v12 = vadd.f32 %v982_v10, %v981_v8  ;;  %v984_v13 = vpop.f32.mrb[6].mxu0  ;;  %v1349_v16 = vadd.f32 %v1030_v14, %v1029_v11  ;;  %v1032_v17 = vpop.f32.mrb[6].mxu1 }
 0x100   :  { %v985_v15 = vpop.f32.mrb[7].mxu0  ;;  %v1033_v22 = vpop.f32.mrb[7].mxu1 }
 0x101   :  { %v929_v18 = vpack.c.bf16 %v983_v12, %v983_v12  ;;  %v666_v19 = vsel %vm662_vm2, %v983_v12, 0.0  ;;  %v734_v20 = vmul.f32 %v983_v12, %v983_v12  ;;  %v986_v21 = vadd.f32 %v985_v15, %v984_v13 }
 0x102   :  { %v667_v23 = vadd.f32 %v666_v19, %v665_v4  ;;  %v945_v24 = vpack.c.bf16 %v1349_v16, %v1349_v16  ;;  %v1364_v31 = vadd.f32 %v1033_v22, %v1032_v17 }
 0x103   :  { %632 = vst.msk [vmem:[%s1635_s2 + $0x8] sm:$0xf] %vm629_vm1, %v929_v18  ;;  %v767_v25 = vsel %vm662_vm2, %v734_v20, 0.0  ;;  %v930_v26 = vpack.c.bf16 %v986_v21, %v986_v21  ;;  %v668_v27 = vsel %vm662_vm2, %v986_v21, 0.0  ;;  %v735_v28 = vmul.f32 %v986_v21, %v986_v21 }
 0x104   :  { %v768_v29 = vadd.f32 %v767_v25, %v766_v9  ;;  %v669_v30 = vadd.f32 %v668_v27, %v667_v23  ;;  %648 = vst.msk [vmem:[%s1635_s2 + $0x48] sm:$0xf] %vm629_vm1, %v945_v24  ;;  %v946_v36 = vpack.c.bf16 %v1364_v31, %v1364_v31 }
 0x105   :  { %633 = vst.msk [vmem:[%s1635_s2 + $0xc] sm:$0xf] %vm629_vm1, %v930_v26  ;;  %v769_v32 = vsel %vm662_vm2, %v735_v28, 0.0  ;;  %v987_v33 = vpop.f32.mrb[8].mxu0  ;;  %v1035_v37 = vpop.f32.mrb[8].mxu1 }
 0x106   :  { %v770_v34 = vadd.f32 %v769_v32, %v768_v29  ;;  %v988_v35 = vpop.f32.mrb[9].mxu0  ;;  %v1036_v40 = vpop.f32.mrb[9].mxu1  ;;  %649 = vst.msk [vmem:[%s1635_s2 + $0x4c] sm:$0xf] %vm629_vm1, %v946_v36 }
 0x107   :  { %v989_v38 = vadd.f32 %v988_v35, %v987_v33  ;;  %v990_v39 = vpop.f32.mrb[10].mxu0  ;;  %v1377_v42 = vadd.f32 %v1036_v40, %v1035_v37  ;;  %v1038_v43 = vpop.f32.mrb[10].mxu1 }
 0x108   :  { %v991_v41 = vpop.f32.mrb[11].mxu0  ;;  %v1039_v48 = vpop.f32.mrb[11].mxu1 }
 0x109   :  { %v931_v44 = vpack.c.bf16 %v989_v38, %v989_v38  ;;  %v670_v45 = vsel %vm662_vm2, %v989_v38, 0.0  ;;  %v736_v46 = vmul.f32 %v989_v38, %v989_v38  ;;  %v992_v47 = vadd.f32 %v991_v41, %v990_v39 }
 0x10a   :  { %v671_v49 = vadd.f32 %v670_v45, %v669_v30  ;;  %v947_v50 = vpack.c.bf16 %v1377_v42, %v1377_v42  ;;  %v1392_v58 = vadd.f32 %v1039_v48, %v1038_v43 }
 0x10b   :  { %634 = vst.msk [vmem:[%s1635_s2 + $0x10] sm:$0xf] %vm629_vm1, %v931_v44  ;;  %v771_v51 = vsel %vm662_vm2, %v736_v46, 0.0  ;;  %v932_v52 = vpack.c.bf16 %v992_v47, %v992_v47  ;;  %v672_v53 = vsel %vm662_vm2, %v992_v47, 0.0  ;;  %v737_v54 = vmul.f32 %v992_v47, %v992_v47 }
 0x10c   :  { %v772_v55 = vadd.f32 %v771_v51, %v770_v34  ;;  %v673_v57 = vadd.f32 %v672_v53, %v671_v49  ;;  %650 = vst.msk [vmem:[%s1635_s2 + $0x50] sm:$0xf] %vm629_vm1, %v947_v50  ;;  %v948_v0 = vpack.c.bf16 %v1392_v58, %v1392_v58 }
 0x10d   :  { %635 = vst.msk [vmem:[%s1635_s2 + $0x14] sm:$0xf] %vm629_vm1, %v932_v52  ;;  %v773_v59 = vsel %vm662_vm2, %v737_v54, 0.0  ;;  %v993_v60 = vpop.f32.mrb[12].mxu0  ;;  %v1041_v1 = vpop.f32.mrb[12].mxu1 }
 0x10e   :  { %v774_v61 = vadd.f32 %v773_v59, %v772_v55  ;;  %v994_v62 = vpop.f32.mrb[13].mxu0  ;;  %v1042_v4 = vpop.f32.mrb[13].mxu1  ;;  %651 = vst.msk [vmem:[%s1635_s2 + $0x54] sm:$0xf] %vm629_vm1, %v948_v0 }
 0x10f   :  { %v995_v2 = vadd.f32 %v994_v62, %v993_v60  ;;  %v996_v3 = vpop.f32.mrb[14].mxu0  ;;  %v1405_v6 = vadd.f32 %v1042_v4, %v1041_v1  ;;  %v1044_v7 = vpop.f32.mrb[14].mxu1 }
 0x110   :  { %v997_v5 = vpop.f32.mrb[15].mxu0  ;;  %v1045_v12 = vpop.f32.mrb[15].mxu1 }
 0x111   :  { %v933_v8 = vpack.c.bf16 %v995_v2, %v995_v2  ;;  %v674_v9 = vsel %vm662_vm2, %v995_v2, 0.0  ;;  %v738_v10 = vmul.f32 %v995_v2, %v995_v2  ;;  %v998_v11 = vadd.f32 %v997_v5, %v996_v3 }
 0x112   :  { %v675_v13 = vadd.f32 %v674_v9, %v673_v57  ;;  %v949_v14 = vpack.c.bf16 %v1405_v6, %v1405_v6  ;;  %v1420_v22 = vadd.f32 %v1045_v12, %v1044_v7 }
 0x113   :  { %636 = vst.msk [vmem:[%s1635_s2 + $0x18] sm:$0xf] %vm629_vm1, %v933_v8  ;;  %v775_v15 = vsel %vm662_vm2, %v738_v10, 0.0  ;;  %v934_v17 = vpack.c.bf16 %v998_v11, %v998_v11  ;;  %v676_v18 = vsel %vm662_vm2, %v998_v11, 0.0  ;;  %v739_v19 = vmul.f32 %v998_v11, %v998_v11 }
 0x114   :  { %v776_v20 = vadd.f32 %v775_v15, %v774_v61  ;;  %v677_v21 = vadd.f32 %v676_v18, %v675_v13  ;;  %652 = vst.msk [vmem:[%s1635_s2 + $0x58] sm:$0xf] %vm629_vm1, %v949_v14  ;;  %v950_v27 = vpack.c.bf16 %v1420_v22, %v1420_v22 }
 0x115   :  { %637 = vst.msk [vmem:[%s1635_s2 + $0x1c] sm:$0xf] %vm629_vm1, %v934_v17  ;;  %v777_v23 = vsel %vm662_vm2, %v739_v19, 0.0  ;;  %v999_v24 = vpop.f32.mrb[16].mxu0  ;;  %v1047_v28 = vpop.f32.mrb[16].mxu1 }
 0x116   :  { %v778_v25 = vadd.f32 %v777_v23, %v776_v20  ;;  %v1000_v26 = vpop.f32.mrb[17].mxu0  ;;  %v1048_v32 = vpop.f32.mrb[17].mxu1  ;;  %653 = vst.msk [vmem:[%s1635_s2 + $0x5c] sm:$0xf] %vm629_vm1, %v950_v27 }
 0x117   :  { %v1001_v29 = vadd.f32 %v1000_v26, %v999_v24  ;;  %v1002_v30 = vpop.f32.mrb[18].mxu0  ;;  %v1433_v34 = vadd.f32 %v1048_v32, %v1047_v28  ;;  %v1050_v35 = vpop.f32.mrb[18].mxu1 }
 0x118   :  { %v1003_v33 = vpop.f32.mrb[19].mxu0  ;;  %v1051_v40 = vpop.f32.mrb[19].mxu1 }
 0x119   :  { %v935_v36 = vpack.c.bf16 %v1001_v29, %v1001_v29  ;;  %v678_v37 = vsel %vm662_vm2, %v1001_v29, 0.0  ;;  %v740_v38 = vmul.f32 %v1001_v29, %v1001_v29  ;;  %v1004_v39 = vadd.f32 %v1003_v33, %v1002_v30 }
 0x11a   :  { %v679_v41 = vadd.f32 %v678_v37, %v677_v21  ;;  %v951_v43 = vpack.c.bf16 %v1433_v34, %v1433_v34  ;;  %v1448_v50 = vadd.f32 %v1051_v40, %v1050_v35 }
 0x11b   :  { %638 = vst.msk [vmem:[%s1635_s2 + $0x20] sm:$0xf] %vm629_vm1, %v935_v36  ;;  %v779_v44 = vsel %vm662_vm2, %v740_v38, 0.0  ;;  %v936_v45 = vpack.c.bf16 %v1004_v39, %v1004_v39  ;;  %v680_v46 = vsel %vm662_vm2, %v1004_v39, 0.0  ;;  %v741_v47 = vmul.f32 %v1004_v39, %v1004_v39 }
 0x11c   :  { %v780_v48 = vadd.f32 %v779_v44, %v778_v25  ;;  %v681_v49 = vadd.f32 %v680_v46, %v679_v41  ;;  %654 = vst.msk [vmem:[%s1635_s2 + $0x60] sm:$0xf] %vm629_vm1, %v951_v43  ;;  %v952_v55 = vpack.c.bf16 %v1448_v50, %v1448_v50 }
 0x11d   :  { %639 = vst.msk [vmem:[%s1635_s2 + $0x24] sm:$0xf] %vm629_vm1, %v936_v45  ;;  %v781_v51 = vsel %vm662_vm2, %v741_v47, 0.0  ;;  %v1005_v52 = vpop.f32.mrb[20].mxu0  ;;  %v1053_v57 = vpop.f32.mrb[20].mxu1 }
 0x11e   :  { %v782_v53 = vadd.f32 %v781_v51, %v780_v48  ;;  %v1006_v54 = vpop.f32.mrb[21].mxu0  ;;  %v1054_v61 = vpop.f32.mrb[21].mxu1  ;;  %655 = vst.msk [vmem:[%s1635_s2 + $0x64] sm:$0xf] %vm629_vm1, %v952_v55 }
 0x11f   :  { %v1007_v59 = vadd.f32 %v1006_v54, %v1005_v52  ;;  %v1008_v60 = vpop.f32.mrb[22].mxu0  ;;  %v1461_v0 = vadd.f32 %v1054_v61, %v1053_v57  ;;  %v1056_v1 = vpop.f32.mrb[22].mxu1 }
 0x120   :  { %v1009_v62 = vpop.f32.mrb[23].mxu0  ;;  %v1057_v7 = vpop.f32.mrb[23].mxu1 }
 0x121   :  { %v937_v2 = vpack.c.bf16 %v1007_v59, %v1007_v59  ;;  %v682_v3 = vsel %vm662_vm2, %v1007_v59, 0.0  ;;  %v742_v4 = vmul.f32 %v1007_v59, %v1007_v59  ;;  %v1010_v5 = vadd.f32 %v1009_v62, %v1008_v60 }
 0x122   :  { %v683_v8 = vadd.f32 %v682_v3, %v681_v49  ;;  %v953_v9 = vpack.c.bf16 %v1461_v0, %v1461_v0  ;;  %v1476_v17 = vadd.f32 %v1057_v7, %v1056_v1  ;;  %v748_v7 = vmul.f32 %v1321_v56, %v1321_v56 }
 0x123   :  { %640 = vst.msk [vmem:[%s1635_s2 + $0x28] sm:$0xf] %vm629_vm1, %v937_v2  ;;  %v783_v10 = vsel %vm662_vm2, %v742_v4, 0.0  ;;  %v938_v11 = vpack.c.bf16 %v1010_v5, %v1010_v5  ;;  %v684_v12 = vsel %vm662_vm2, %v1010_v5, 0.0  ;;  %v743_v13 = vmul.f32 %v1010_v5, %v1010_v5 }
 0x124   :  { %v784_v14 = vadd.f32 %v783_v10, %v782_v53  ;;  %v685_v15 = vadd.f32 %v684_v12, %v683_v8  ;;  %656 = vst.msk [vmem:[%s1635_s2 + $0x68] sm:$0xf] %vm629_vm1, %v953_v9  ;;  %v954_v23 = vpack.c.bf16 %v1476_v17, %v1476_v17 }
 0x125   :  { %641 = vst.msk [vmem:[%s1635_s2 + $0x2c] sm:$0xf] %vm629_vm1, %v938_v11  ;;  %v785_v18 = vsel %vm662_vm2, %v743_v13, 0.0  ;;  %v1011_v19 = vpop.f32.mrb[24].mxu0  ;;  %v1059_v24 = vpop.f32.mrb[24].mxu1 }
 0x126   :  { %v786_v20 = vadd.f32 %v785_v18, %v784_v14  ;;  %v1012_v21 = vpop.f32.mrb[25].mxu0  ;;  %v1060_v27 = vpop.f32.mrb[25].mxu1  ;;  %657 = vst.msk [vmem:[%s1635_s2 + $0x6c] sm:$0xf] %vm629_vm1, %v954_v23 }
 0x127   :  { %v1013_v25 = vadd.f32 %v1012_v21, %v1011_v19  ;;  %v1014_v26 = vpop.f32.mrb[26].mxu0  ;;  %v1489_v29 = vadd.f32 %v1060_v27, %v1059_v24  ;;  %v1062_v30 = vpop.f32.mrb[26].mxu1  ;;  %v694_v19 = vsel %vm662_vm2, %v1321_v56, 0.0  ;;  %v696_v56 = vsel %vm662_vm2, %v1325_v63, 0.0 }
 0x128   :  { %v1015_v28 = vpop.f32.mrb[27].mxu0  ;;  %v1063_v37 = vpop.f32.mrb[27].mxu1  ;;  %v750_v27 = vmul.f32 %v1349_v16, %v1349_v16 }
 0x129   :  { %v939_v32 = vpack.c.bf16 %v1013_v25, %v1013_v25  ;;  %v686_v33 = vsel %vm662_vm2, %v1013_v25, 0.0  ;;  %v744_v35 = vmul.f32 %v1013_v25, %v1013_v25  ;;  %v1016_v36 = vadd.f32 %v1015_v28, %v1014_v26 }
 0x12a   :  { %v687_v38 = vadd.f32 %v686_v33, %v685_v15  ;;  %v955_v39 = vpack.c.bf16 %v1489_v29, %v1489_v29  ;;  %v1504_v47 = vadd.f32 %v1063_v37, %v1062_v30  ;;  %v795_v26 = vsel %vm662_vm2, %v748_v7, 0.0 }
 0x12b   :  { %642 = vst.msk [vmem:[%s1635_s2 + $0x30] sm:$0xf] %vm629_vm1, %v939_v32  ;;  %v787_v40 = vsel %vm662_vm2, %v744_v35, 0.0  ;;  %v940_v41 = vpack.c.bf16 %v1016_v36, %v1016_v36  ;;  %v688_v43 = vsel %vm662_vm2, %v1016_v36, 0.0  ;;  %v745_v44 = vmul.f32 %v1016_v36, %v1016_v36 }
 0x12c   :  { %v788_v45 = vadd.f32 %v787_v40, %v786_v20  ;;  %v689_v46 = vadd.f32 %v688_v43, %v687_v38  ;;  %658 = vst.msk [vmem:[%s1635_s2 + $0x70] sm:$0xf] %vm629_vm1, %v955_v39  ;;  %v956_v53 = vpack.c.bf16 %v1504_v47, %v1504_v47  ;;  %v749_v20 = vmul.f32 %v1325_v63, %v1325_v63 }
 0x12d   :  { %643 = vst.msk [vmem:[%s1635_s2 + $0x34] sm:$0xf] %vm629_vm1, %v940_v41  ;;  %v789_v48 = vsel %vm662_vm2, %v745_v44, 0.0  ;;  %v1017_v49 = vpop.f32.mrb[28].mxu0  ;;  %v1065_v54 = vpop.f32.mrb[28].mxu1  ;;  %v698_v33 = vsel %vm662_vm2, %v1349_v16, 0.0  ;;  %v751_v35 = vmul.f32 %v1364_v31, %v1364_v31  ;;  %v752_v39 = vmul.f32 %v1377_v42, %v1377_v42 }
 0x12e   :  { %v790_v51 = vadd.f32 %v789_v48, %v788_v45  ;;  %v1018_v52 = vpop.f32.mrb[29].mxu0  ;;  %v1066_v59 = vpop.f32.mrb[29].mxu1  ;;  %659 = vst.msk [vmem:[%s1635_s2 + $0x74] sm:$0xf] %vm629_vm1, %v956_v53  ;;  %v797_v32 = vsel %vm662_vm2, %v749_v20, 0.0  ;;  %v799_v37 = vsel %vm662_vm2, %v750_v27, 0.0  ;;  %v753_v44 = vmul.f32 %v1392_v58, %v1392_v58 }
 0x12f   :  { %v1019_v55 = vadd.f32 %v1018_v52, %v1017_v49  ;;  %v1020_v57 = vpop.f32.mrb[30].mxu0  ;;  %v1517_v61 = vadd.f32 %v1066_v59, %v1065_v54  ;;  %v1068_v62 = vpop.f32.mrb[30].mxu1  ;;  %v700_v38 = vsel %vm662_vm2, %v1364_v31, 0.0  ;;  %v801_v43 = vsel %vm662_vm2, %v751_v35, 0.0 }
 0x130   :  { %v1021_v60 = vpop.f32.mrb[31].mxu0  ;;  %v1069_v5 = vpop.f32.mrb[31].mxu1  ;;  %v702_v16 = vsel %vm662_vm2, %v1377_v42, 0.0  ;;  %v803_v48 = vsel %vm662_vm2, %v752_v39, 0.0  ;;  %v704_v31 = vsel %vm662_vm2, %v1392_v58, 0.0  ;;  %v754_v49 = vmul.f32 %v1405_v6, %v1405_v6 }
 0x131   :  { %v941_v1 = vpack.c.bf16 %v1019_v55, %v1019_v55  ;;  %v690_v2 = vsel %vm662_vm2, %v1019_v55, 0.0  ;;  %v746_v3 = vmul.f32 %v1019_v55, %v1019_v55  ;;  %v1022_v4 = vadd.f32 %v1021_v60, %v1020_v57 }
 0x132   :  { %v691_v8 = vadd.f32 %v690_v2, %v689_v46  ;;  %v957_v9 = vpack.c.bf16 %v1517_v61, %v1517_v61  ;;  %v1534_v18 = vadd.f32 %v1069_v5, %v1068_v62  ;;  %v805_v53 = vsel %vm662_vm2, %v753_v44, 0.0 }
 0x133   :  { %644 = vst.msk [vmem:[%s1635_s2 + $0x38] sm:$0xf] %vm629_vm1, %v941_v1  ;;  %v791_v10 = vsel %vm662_vm2, %v746_v3, 0.0  ;;  %v942_v11 = vpack.c.bf16 %v1022_v4, %v1022_v4  ;;  %v692_v12 = vsel %vm662_vm2, %v1022_v4, 0.0  ;;  %v747_v13 = vmul.f32 %v1022_v4, %v1022_v4 }
 0x134   :  { %v792_v14 = vadd.f32 %v791_v10, %v790_v51  ;;  %v693_v15 = vadd.f32 %v692_v12, %v691_v8  ;;  %660 = vst.msk [vmem:[%s1635_s2 + $0x78] sm:$0xf] %vm629_vm1, %v957_v9  ;;  %v958_v25 = vpack.c.bf16 %v1534_v18, %v1534_v18  ;;  %v706_v42 = vsel %vm662_vm2, %v1405_v6, 0.0 }
 0x135   :  { %645 = vst.msk [vmem:[%s1635_s2 + $0x3c] sm:$0xf] %vm629_vm1, %v942_v11  ;;  %v793_v21 = vsel %vm662_vm2, %v747_v13, 0.0  ;;  %v755_v54 = vmul.f32 %v1420_v22, %v1420_v22  ;;  %v807_v59 = vsel %vm662_vm2, %v754_v49, 0.0  ;;  %v708_v58 = vsel %vm662_vm2, %v1420_v22, 0.0 }
 0x136   :  { %v695_v23 = vadd.f32 %v694_v19, %v693_v15  ;;  %v794_v24 = vadd.f32 %v793_v21, %v792_v14  ;;  %661 = vst.msk [vmem:[%s1635_s2 + $0x7c] sm:$0xf] %vm629_vm1, %v958_v25  ;;  %v756_v60 = vmul.f32 %v1433_v34, %v1433_v34  ;;  %v710_v6 = vsel %vm662_vm2, %v1433_v34, 0.0 }
 0x137   :  { %v809_v2 = vsel %vm662_vm2, %v755_v54, 0.0  ;;  %v757_v3 = vmul.f32 %v1448_v50, %v1448_v50  ;;  %v712_v22 = vsel %vm662_vm2, %v1448_v50, 0.0  ;;  %v758_v8 = vmul.f32 %v1461_v0, %v1461_v0 }
 0x138   :  { %v697_v28 = vadd.f32 %v696_v56, %v695_v23  ;;  %v796_v30 = vadd.f32 %v795_v26, %v794_v24  ;;  %v811_v7 = vsel %vm662_vm2, %v756_v60, 0.0  ;;  %v714_v34 = vsel %vm662_vm2, %v1461_v0, 0.0 }
 0x139   :  { %v813_v11 = vsel %vm662_vm2, %v757_v3, 0.0  ;;  %v759_v12 = vmul.f32 %v1476_v17, %v1476_v17  ;;  %v815_v15 = vsel %vm662_vm2, %v758_v8, 0.0  ;;  %v716_v50 = vsel %vm662_vm2, %v1476_v17, 0.0 }
 0x13a   :  { %v699_v36 = vadd.f32 %v698_v33, %v697_v28  ;;  %v798_v63 = vadd.f32 %v797_v32, %v796_v30  ;;  %v760_v19 = vmul.f32 %v1489_v29, %v1489_v29  ;;  %v718_v0 = vsel %vm662_vm2, %v1489_v29, 0.0 }
 0x13b   :  { %v817_v23 = vsel %vm662_vm2, %v759_v12, 0.0  ;;  %v761_v24 = vmul.f32 %v1504_v47, %v1504_v47  ;;  %v762_v25 = vmul.f32 %v1517_v61, %v1517_v61  ;;  %v720_v27 = vsel %vm662_vm2, %v1504_v47, 0.0 }
 0x13c   :  { %v701_v40 = vadd.f32 %v700_v38, %v699_v36  ;;  %v800_v41 = vadd.f32 %v799_v37, %v798_v63  ;;  %v819_v17 = vsel %vm662_vm2, %v760_v19, 0.0  ;;  %v722_v28 = vsel %vm662_vm2, %v1517_v61, 0.0 }
 0x13d   :  { %v821_v29 = vsel %vm662_vm2, %v761_v24, 0.0  ;;  %v823_v33 = vsel %vm662_vm2, %v762_v25, 0.0  ;;  %v763_v35 = vmul.f32 %v1534_v18, %v1534_v18  ;;  %v724_v37 = vsel %vm662_vm2, %v1534_v18, 0.0  ;;  %v833_v18 = vld [vmem:[%s1634_s3] sm:$0x3] }
 0x13e   :  { %v802_v45 = vadd.f32 %v801_v43, %v800_v41  ;;  %v703_v46 = vadd.f32 %v702_v16, %v701_v40 }
 0x13f   :  { %v825_v47 = vsel %vm662_vm2, %v763_v35, 0.0 }
 0x140   :  { %v705_v51 = vadd.f32 %v704_v31, %v703_v46  ;;  %v804_v52 = vadd.f32 %v803_v48, %v802_v45 }
 0x142   :  { %v707_v55 = vadd.f32 %v706_v42, %v705_v51  ;;  %v806_v57 = vadd.f32 %v805_v53, %v804_v52 }
 0x144   :  { %v709_v62 = vadd.f32 %v708_v58, %v707_v55  ;;  %v808_v1 = vadd.f32 %v807_v59, %v806_v57 }
 0x146   :  { %v711_v4 = vadd.f32 %v710_v6, %v709_v62  ;;  %v810_v5 = vadd.f32 %v809_v2, %v808_v1 }
 0x148   :  { %v812_v9 = vadd.f32 %v811_v7, %v810_v5  ;;  %v713_v10 = vadd.f32 %v712_v22, %v711_v4 }
 0x14a   :  { %v814_v13 = vadd.f32 %v813_v11, %v812_v9  ;;  %v715_v14 = vadd.f32 %v714_v34, %v713_v10 }
 0x14c   :  { %v816_v20 = vadd.f32 %v815_v15, %v814_v13  ;;  %v717_v21 = vadd.f32 %v716_v50, %v715_v14 }
 0x14e   :  { %v818_v26 = vadd.f32 %v817_v23, %v816_v20  ;;  %v719_v56 = vadd.f32 %v718_v0, %v717_v21 }
 0x150   :  { %v820_v30 = vadd.f32 %v819_v17, %v818_v26  ;;  %v721_v32 = vadd.f32 %v720_v27, %v719_v56 }
 0x152   :  { %v822_v36 = vadd.f32 %v821_v29, %v820_v30  ;;  %v723_v63 = vadd.f32 %v722_v28, %v721_v32 }
 0x154   :  { %v824_v38 = vadd.f32 %v823_v33, %v822_v36  ;;  %v725_v39 = vadd.f32 %v724_v37, %v723_v63 }
 0x156   :  { %v726_v40 = vrot.slane %v725_v39, 4  ;;  %v826_v61 = vadd.f32 %v825_v47, %v824_v38 }
 0x158   :  { %v727_v41 = vadd.f32 %v726_v40, %v725_v39  ;;  %v827_v43 = vrot.slane %v826_v61, 4 }
 0x15a   :  { %v728_v16 = vrot.slane %v727_v41, 2  ;;  %v828_v44 = vadd.f32 %v827_v43, %v826_v61 }
 0x15c   :  { %v729_v45 = vadd.f32 %v728_v16, %v727_v41  ;;  %v829_v46 = vrot.slane %v828_v44, 2 }
 0x15e   :  { %v730_v48 = vrot.slane %v729_v45, 1  ;;  %v830_v31 = vadd.f32 %v829_v46, %v828_v44 }
 0x160   :  { %v831_v49 = vrot.slane %v830_v31, 1  ;;  %v731_v51 = vadd.f32 %v730_v48, %v729_v45 }
 0x162   :  { %v832_v52 = vadd.f32 %v831_v49, %v830_v31 }
 0x164   :  { %v835_v53 = vsel %vm834_vm3, %v731_v51, %v832_v52 }
 0x165   :  { %v836_v42 = vadd.f32 %v835_v53, %v833_v18 }
 0x167   :  { %838 = vst.msk [vmem:[%s1634_s3] sm:$0x3] %vm18_vm0, %v836_v42 }

// kernel: a_call__.9
= control target key start
LH: loop header
LB: loop body
LE: loop exit
PB: predicated region body
PF: predicated region fallthrough
CT: control target
= control target key end

     0   :  { %v32_v23 = vlaneseq  ;;  %s741_s3 = inlined_call_operand.vmem [shape: bf16[512,128], index: 3, kind: input, shape index: {}]   ;;  %s742_s0 = inlined_call_operand.vmem [shape: bf16[16,512], index: 0, kind: input, shape index: {}]   ;;  %s743_s1 = inlined_call_operand.vmem [shape: f32[1,512], index: 1, kind: input, shape index: {}]   ;;  %s744_s2 = inlined_call_operand.vmem [shape: f32[1,512], index: 2, kind: input, shape index: {}]   ;;  %s745_s4 = inlined_call_operand.vmem [shape: f32[16,128], index: 4, kind: output, shape index: {}]  }
   0x1   :  { %v556_v0 = vld [vmem:[%s741_s3 + $0x40] sm:$0xff]   ;;  %v560_v4 = vld [vmem:[%s741_s3 + $0x48] sm:$0xff]   ;;  %v564_v8 = vld [vmem:[%s741_s3 + $0x50] sm:$0xff]  }
   0x2   :  { %v557_v1 = vld [vmem:[%s741_s3 + $0xc0] sm:$0xff]   ;;  %512 = vmatprep.subr.bf16.mxu0 %v556_v0  ;;  %v561_v5 = vld [vmem:[%s741_s3 + $0xc8] sm:$0xff]   ;;  %v565_v9 = vld [vmem:[%s741_s3 + $0xd0] sm:$0xff]   ;;  %v33_v28 = vshrl.u32 %v32_v23, 7 }
   0x3   :  { %v558_v2 = vld [vmem:[%s741_s3] sm:$0xff]   ;;  %534 = vmatprep.subr.bf16.mxu1 %v557_v1  ;;  %v562_v6 = vld [vmem:[%s741_s3 + $0x8] sm:$0xff]   ;;  %v566_v10 = vld [vmem:[%s741_s3 + $0x10] sm:$0xff]  }
   0x4   :  { %v559_v3 = vld [vmem:[%s741_s3 + $0x80] sm:$0xff]   ;;  %513 = vmatpush3.bf16.msra.mxu0 %v558_v2  ;;  %v563_v7 = vld [vmem:[%s741_s3 + $0x88] sm:$0xff]   ;;  %v567_v11 = vld [vmem:[%s741_s3 + $0x90] sm:$0xff]   ;;  %v38_v33 = vsub.s32 1, %v33_v28  ;;  %v46_v35 = vsub.s32 3, %v33_v28  ;;  %v34_v39 = vsub.s32 0, %v33_v28 }
   0x5   :  { %535 = vmatpush3.bf16.msra.mxu1 %v559_v3  ;;  %514 = vmatprep.subr.bf16.mxu0 %v560_v4  ;;  %v568_v12 = vld [vmem:[%s741_s3 + $0x58] sm:$0xff]   ;;  %v572_v16 = vld [vmem:[%s741_s3 + $0x60] sm:$0xff]   ;;  %v576_v20 = vld [vmem:[%s741_s3 + $0x68] sm:$0xff]   ;;  %v42_v40 = vsub.s32 2, %v33_v28 }
   0x6   :  { %536 = vmatprep.subr.bf16.mxu1 %v561_v5  ;;  %v569_v13 = vld [vmem:[%s741_s3 + $0xd8] sm:$0xff]   ;;  %v573_v17 = vld [vmem:[%s741_s3 + $0xe0] sm:$0xff]   ;;  %v577_v21 = vld [vmem:[%s741_s3 + $0xe8] sm:$0xff]  }
   0x7   :  { %v570_v14 = vld [vmem:[%s741_s3 + $0x18] sm:$0xff]   ;;  %v574_v18 = vld [vmem:[%s741_s3 + $0x20] sm:$0xff]   ;;  %v578_v22 = vld [vmem:[%s741_s3 + $0x28] sm:$0xff]  }
   0x8   :  { %515 = vmatpush3.bf16.msra.mxu0 %v562_v6  ;;  %v571_v15 = vld [vmem:[%s741_s3 + $0x98] sm:$0xff]   ;;  %v575_v19 = vld [vmem:[%s741_s3 + $0xa0] sm:$0xff]   ;;  %v579_v24 = vld [vmem:[%s741_s3 + $0xa8] sm:$0xff]  }
   0x9   :  { %537 = vmatpush3.bf16.msra.mxu1 %v563_v7  ;;  %516 = vmatprep.subr.bf16.mxu0 %v564_v8  ;;  %v580_v25 = vld [vmem:[%s741_s3 + $0x70] sm:$0xff]   ;;  %v584_v30 = vld [vmem:[%s741_s3 + $0x78] sm:$0xff]   ;;  %v18_v36 = vld [vmem:[%s742_s0] sm:$0xff] }
   0xa   :  { %538 = vmatprep.subr.bf16.mxu1 %v565_v9  ;;  %v581_v26 = vld [vmem:[%s741_s3 + $0xf0] sm:$0xff]   ;;  %v585_v31 = vld [vmem:[%s741_s3 + $0xf8] sm:$0xff]   ;;  %v30_v38 = vld [vmem:[%s743_s1] sm:$0xf]  ;;  %v22_v41 = vunpack.c.l.bf16 %v18_v36  ;;  %v23_v42 = vunpack.c.h.bf16 %v18_v36 }
   0xb   :  { %v582_v27 = vld [vmem:[%s741_s3 + $0x30] sm:$0xff]   ;;  %v586_v32 = vld [vmem:[%s741_s3 + $0x38] sm:$0xff]   ;;  %v60_v45 = vld [vmem:[%s744_s2] sm:$0xf]  ;;  %v39_v48 = vrot.slane %v30_v38, %v38_v33  ;;  %v47_v54 = vrot.slane %v30_v38, %v46_v35  ;;  %v35_v58 = vrot.slane %v30_v38, %v34_v39  ;;  %v43_v62 = vrot.slane %v30_v38, %v42_v40 }
   0xc   :  { %517 = vmatpush3.bf16.msra.mxu0 %v566_v10  ;;  %v583_v29 = vld [vmem:[%s741_s3 + $0xb0] sm:$0xff]   ;;  %v587_v34 = vld [vmem:[%s741_s3 + $0xb8] sm:$0xff]   ;;  %v19_v46 = vld [vmem:[%s742_s0 + $0x8] sm:$0xff]  ;;  %v69_v49 = vrot.slane %v60_v45, %v38_v33  ;;  %v77_v55 = vrot.slane %v60_v45, %v46_v35  ;;  %v65_v59 = vrot.slane %v60_v45, %v34_v39  ;;  %v73_v63 = vrot.slane %v60_v45, %v42_v40 }
   0xd   :  { %539 = vmatpush3.bf16.msra.mxu1 %v567_v11  ;;  %518 = vmatprep.subr.bf16.mxu0 %v568_v12  ;;  %v20_v37 = vld [vmem:[%s742_s0 + $0x10] sm:$0xff]  ;;  %v21_v47 = vld [vmem:[%s742_s0 + $0x18] sm:$0xff]  ;;  %v24_v50 = vunpack.c.l.bf16 %v19_v46  ;;  %v25_v51 = vunpack.c.h.bf16 %v19_v46  ;;  %v53_v56 = vmul.f32 %v39_v48, %v23_v42  ;;  %v52_v2 = vmul.f32 %v35_v58, %v22_v41 }
   0xe   :  { %540 = vmatprep.subr.bf16.mxu1 %v569_v13  ;;  %v26_v43 = vunpack.c.l.bf16 %v20_v37  ;;  %v27_v44 = vunpack.c.h.bf16 %v20_v37  ;;  %v28_v52 = vunpack.c.l.bf16 %v21_v47  ;;  %v29_v53 = vunpack.c.h.bf16 %v21_v47 }
   0xf   :  { %v55_v60 = vmul.f32 %v47_v54, %v25_v51  ;;  %v83_v0 = vadd.f32 %v69_v49, %v53_v56  ;;  %v54_v6 = vmul.f32 %v43_v62, %v24_v50 }
  0x10   :  { %519 = vmatpush3.bf16.msra.mxu0 %v570_v14  ;;  %v57_v57 = vmul.f32 %v39_v48, %v27_v44  ;;  %v59_v61 = vmul.f32 %v47_v54, %v29_v53  ;;  %v56_v3 = vmul.f32 %v35_v58, %v26_v43  ;;  %v58_v7 = vmul.f32 %v43_v62, %v28_v52 }
  0x11   :  { %541 = vmatpush3.bf16.msra.mxu1 %v571_v15  ;;  %520 = vmatprep.subr.bf16.mxu0 %v572_v16  ;;  %v85_v4 = vadd.f32 %v77_v55, %v55_v60  ;;  %vm91_vm0 = vcmp.gt.f32.partialorder %v83_v0, 0.0  ;;  %v99_v8 = vmul.f32 0.2, %v83_v0  ;;  %v82_v14 = vadd.f32 %v65_v59, %v52_v2 }
  0x12   :  { %542 = vmatprep.subr.bf16.mxu1 %v573_v17  ;;  %v87_v1 = vadd.f32 %v69_v49, %v57_v57  ;;  %v89_v5 = vadd.f32 %v77_v55, %v59_v61  ;;  %v86_v15 = vadd.f32 %v65_v59, %v56_v3  ;;  %v88_v23 = vadd.f32 %v73_v63, %v58_v7 }
  0x13   :  { %vm93_vm2 = vcmp.gt.f32.partialorder %v85_v4, 0.0  ;;  %v101_v10 = vmul.f32 0.2, %v85_v4  ;;  %v107_v12 = vsel %vm91_vm0, %v83_v0, %v99_v8  ;;  %vm90_vm4 = vcmp.gt.f32.partialorder %v82_v14, 0.0 }
  0x14   :  { %521 = vmatpush3.bf16.msra.mxu0 %v574_v18  ;;  %vm95_vm1 = vcmp.gt.f32.partialorder %v87_v1, 0.0  ;;  %v103_v9 = vmul.f32 0.2, %v87_v1  ;;  %vm97_vm3 = vcmp.gt.f32.partialorder %v89_v5, 0.0  ;;  %v105_v11 = vmul.f32 0.2, %v89_v5 }
  0x15   :  { %543 = vmatpush3.bf16.msra.mxu1 %v575_v19  ;;  %522 = vmatprep.subr.bf16.mxu0 %v576_v20  ;;  %v109_v17 = vsel %vm93_vm2, %v85_v4, %v101_v10  ;;  %v84_v19 = vadd.f32 %v73_v63, %v54_v6  ;;  %vm94_vm5 = vcmp.gt.f32.partialorder %v86_v15, 0.0  ;;  %vm96_vm7 = vcmp.gt.f32.partialorder %v88_v23, 0.0 }
  0x16   :  { %544 = vmatprep.subr.bf16.mxu1 %v577_v21  ;;  %v111_v13 = vsel %vm95_vm1, %v87_v1, %v103_v9  ;;  %v113_v18 = vsel %vm97_vm3, %v89_v5, %v105_v11  ;;  %v98_v21 = vmul.f32 0.2, %v82_v14 }
  0x17   :  { %v115_v16 = vpack.c.bf16 %v111_v13, %v107_v12  ;;  %v117_v20 = vpack.c.bf16 %v113_v18, %v109_v17  ;;  %vm92_vm6 = vcmp.gt.f32.partialorder %v84_v19, 0.0 }
  0x18   :  { %523 = vmatpush3.bf16.msra.mxu0 %v578_v22  ;;  %v102_v22 = vmul.f32 0.2, %v86_v15 }
  0x19   :  { %545 = vmatpush3.bf16.msra.mxu1 %v579_v24  ;;  %524 = vmatprep.subr.bf16.mxu0 %v580_v25  ;;  %v100_v24 = vmul.f32 0.2, %v84_v19  ;;  %v106_v25 = vsel %vm90_vm4, %v82_v14, %v98_v21 }
  0x1a   :  { %546 = vmatprep.subr.bf16.mxu1 %v581_v26  ;;  %406 = vmatprep.mubr.bf16.mxu0 %v115_v16  ;;  %v110_v26 = vsel %vm94_vm5, %v86_v15, %v102_v22 }
  0x1b   :  { %447 = vmatprep.mubr.bf16.mxu1 %v117_v20  ;;  %v108_v28 = vsel %vm92_vm6, %v84_v19, %v100_v24 }
  0x1c   :  { %525 = vmatpush3.bf16.msra.mxu0 %v582_v27  ;;  %v104_v27 = vmul.f32 0.2, %v88_v23 }
  0x1d   :  { %547 = vmatpush3.bf16.msra.mxu1 %v583_v29  ;;  %526 = vmatprep.subr.bf16.mxu0 %v584_v30  ;;  %v114_v29 = vpack.c.bf16 %v110_v26, %v106_v25 }
  0x1e   :  { %548 = vmatprep.subr.bf16.mxu1 %v585_v31  ;;  %v112_v30 = vsel %vm96_vm7, %v88_v23, %v104_v27 }
  0x1f   :  { %v116_v31 = vpack.c.bf16 %v112_v30, %v108_v28 }
  0x20   :  { %527 = vmatpush3.bf16.msra.mxu0 %v586_v32 }
  0x21   :  { %549 = vmatpush3.bf16.msra.mxu1 %v587_v34 }
  0x23   :  { %407 = vmatmul.mubr.bf16.vlgmr.msra.gmra.mrb[0].mxu0 %v114_v29 }
  0x24   :  { %448 = vmatmul.mubr.bf16.vlgmr.msra.gmra.mrb[0].mxu1 %v116_v31 }
  0xf6   :  { %v528_v32 = vpop.f32.mrb[0].mxu0 }
  0xf7   :  { %v529_v33 = vpop.f32.mrb[1].mxu0  ;;  %v550_v34 = vpop.f32.mrb[0].mxu1 }
  0xf8   :  { %v530_v35 = vadd.f32 %v529_v33, %v528_v32  ;;  %v531_v36 = vpop.f32.mrb[2].mxu0  ;;  %v551_v37 = vpop.f32.mrb[1].mxu1 }
  0xf9   :  { %v532_v38 = vpop.f32.mrb[3].mxu0  ;;  %v552_v39 = vadd.f32 %v551_v37, %v550_v34  ;;  %v553_v40 = vpop.f32.mrb[2].mxu1 }
  0xfa   :  { %v533_v41 = vadd.f32 %v532_v38, %v531_v36  ;;  %v554_v42 = vpop.f32.mrb[3].mxu1 }
  0xfb   :  { %v450_v43 = vadd.f32 %v552_v39, %v530_v35  ;;  %v555_v44 = vadd.f32 %v554_v42, %v553_v40 }
  0xfd   :  { %v456_v45 = vand.u32 2147483647, %v450_v43  ;;  %v453_v46 = vadd.f32 %v555_v44, %v533_v41  ;;  %vm468_vm8 = vcmp.ge.f32.partialorder %v450_v43, 0.0 }
  0xff   :  { %v458_v47 = vsub.f32 0.0, %v456_v45  ;;  %v457_v48 = vand.u32 2147483647, %v453_v46  ;;  %vm469_vm9 = vcmp.ge.f32.partialorder %v453_v46, 0.0 }
 0x101   :  { %v460_v49 = vmul.f32 1.442695, %v458_v47  ;;  %v459_v50 = vsub.f32 0.0, %v457_v48 }
 0x103   :  { %588 = vpow2.f32 %v460_v49  ;;  %v462_v51 = vmul.f32 1.442695, %v459_v50 }
 0x105   :  { %590 = vpow2.f32 %v462_v51 }
 0x10d   :  { %v589_v52 = vpop.eup %588 }
 0x10e   :  { %v464_v53 = vadd.f32 1.0, %v589_v52 }
 0x10f   :  { %v591_v54 = vpop.eup %590 }
 0x110   :  { %592 = vrcp.f32 %v464_v53  ;;  %v465_v55 = vadd.f32 1.0, %v591_v54 }
 0x112   :  { %594 = vrcp.f32 %v465_v55 }
 0x11a   :  { %v593_v56 = vpop.eup %592 }
 0x11b   :  { %v470_v57 = vsub.f32 1.0, %v593_v56 }
 0x11c   :  { %v595_v58 = vpop.eup %594 }
 0x11d   :  { %v472_v59 = vsel %vm468_vm8, %v593_v56, %v470_v57  ;;  %v471_v60 = vsub.f32 1.0, %v595_v58 }
 0x11e   :  { %474 = vst [vmem:[%s745_s4] sm:$0xff] %v472_v59 }
 0x11f   :  { %v473_v61 = vsel %vm469_vm9, %v595_v58, %v471_v60 }
 0x120   :  { %475 = vst [vmem:[%s745_s4 + $0x8] sm:$0xff] %v473_v61 }

</bundles_post_ra>
